<compile_context>
chip_gen: v6e
topology: v6e:2x2x1
jax: 0.10.0
libtpu: 0.0.40
codegen_flags: <defaults>
</compile_context>

<pallas_src>
import jax
import jax.numpy as jnp
from jax.experimental import pallas as pl
from jax.experimental.pallas import tpu as pltpu


STUMP_FETS = (64, 32, 16, 8)
PACK_COLS = 64          # widest block (w0) is 64 columns


# ---------------------------------------------------------------------------
# Parameter init (PyTorch-style uniform).
# ---------------------------------------------------------------------------
def init_params(key, lidar_dim, stump_fets=STUMP_FETS, num_actions=4):
    """Linear weights stored as (in, out); LSTM weights as (I, 4H)/(H, 4H)."""
    params = {}
    dims = (lidar_dim,) + tuple(stump_fets)
    keys = jax.random.split(key, 2 * (len(dims) - 1) + 4)
    ki = 0
    for li, (fin, fout) in enumerate(zip(dims[:-1], dims[1:])):
        bound = 1.0 / (fin ** 0.5)
        params[f"w{li}"] = jax.random.uniform(keys[ki], (fin, fout), jnp.float32, -bound, bound); ki += 1
        params[f"b{li}"] = jax.random.uniform(keys[ki], (1, fout), jnp.float32, -bound, bound); ki += 1
    in_lstm = stump_fets[-1] + 2
    H = num_actions
    bound = 1.0 / (H ** 0.5)
    w_ih = jax.random.uniform(keys[ki], (in_lstm, 4 * H), jnp.float32, -bound, bound); ki += 1   # (I, 4H)
    w_hh = jax.random.uniform(keys[ki], (H, 4 * H), jnp.float32, -bound, bound); ki += 1          # (H, 4H)
    b_ih = jax.random.uniform(keys[ki], (1, 4 * H), jnp.float32, -bound, bound); ki += 1
    b_hh = jax.random.uniform(keys[ki], (1, 4 * H), jnp.float32, -bound, bound); ki += 1
    params["w_ih_feat"] = w_ih[:stump_fets[-1], :]   # (8, 4H)  PyTorch gate order i,f,g,o
    params["w_ih_tp"] = w_ih[stump_fets[-1]:, :]     # (2, 4H)
    params["w_hh"] = w_hh                            # (H, 4H)
    params["b_ih"] = b_ih
    params["b_hh"] = b_hh
    return params


# ---------------------------------------------------------------------------
# One-time 2-D packing of all weights/biases into a single (R, 64) buffer.
# ---------------------------------------------------------------------------
def pack_params(params, stump_fets=STUMP_FETS, num_actions=4):
    """Pack everything into one (R, PACK_COLS) f32 buffer (single DMA).

    Multi-row blocks start on 8-row boundaries; small blocks are column-packed
    side by side.  b_ih + b_hh are folded into one combined (1, 4H) bias.
    Returns (packed, layout) with layout[name] = (row, col, nrows, ncols)
    as static Python ints.
    """
    H = num_actions
    G4 = 4 * H
    lidar_dim = params["w0"].shape[0]

    def r8(n):
        return -(-n // 8) * 8

    assert stump_fets[0] <= PACK_COLS
    assert stump_fets[1] + max(stump_fets[2], stump_fets[3]) <= PACK_COLS
    assert 3 * G4 <= PACK_COLS

    b_comb = params["b_ih"] + params["b_hh"]                  # fold biases once

    placements = []                                           # (name, array, row, col)
    row = 0
    # strip 0: w0 (lidar_dim, 64), full width
    placements.append(("w0", params["w0"], row, 0))
    row += r8(lidar_dim)
    # strip 1: w1 on the left; w2 stacked over w3 column-packed on the right
    placements.append(("w1", params["w1"], row, 0))                              # (64, 32)
    placements.append(("w2", params["w2"], row, stump_fets[1]))                  # (32, 16)
    placements.append(("w3", params["w3"], row + r8(stump_fets[1]), stump_fets[1]))  # (16, 8)
    row += max(r8(stump_fets[0]), r8(stump_fets[1]) + r8(stump_fets[2]))
    # strip 2: all biases, one sublane each
    for li in range(len(stump_fets)):
        placements.append((f"b{li}", params[f"b{li}"], row + li, 0))
    placements.append(("b_lstm", b_comb, row + len(stump_fets), 0))              # (1, 4H)
    row += 8
    # strip 3: LSTM weights column-packed side by side
    placements.append(("w_ih_feat", params["w_ih_feat"], row, 0))                # (8, 4H)
    placements.append(("w_ih_tp", params["w_ih_tp"], row, G4))                   # (2, 4H)
    placements.append(("w_hh", params["w_hh"], row, 2 * G4))                     # (H, 4H)
    row += r8(stump_fets[-1])

    total_rows = r8(row)
    packed = jnp.zeros((total_rows, PACK_COLS), jnp.float32)
    layout = {}
    for name, arr, r, c in placements:
        arr = jnp.asarray(arr, jnp.float32)
        nr, nc = arr.shape
        assert r + nr <= total_rows and c + nc <= PACK_COLS, (name, r, c, arr.shape)
        packed = packed.at[r:r + nr, c:c + nc].set(arr)
        layout[name] = (r, c, nr, nc)
    return packed, layout


def _tree_sum(terms):
    """Balanced pairwise sum (short dependency chains on the VPU)."""
    while len(terms) > 1:
        nxt = [terms[i] + terms[i + 1] for i in range(0, len(terms) - 1, 2)]
        if len(terms) % 2:
            nxt.append(terms[-1])
        terms = nxt
    return terms[0]


# ---------------------------------------------------------------------------
# Kernel
# ---------------------------------------------------------------------------
def _build_kernel(layout, seq_len, batch, lidar_dim, num_actions):
    H = num_actions
    G4 = 4 * H
    SB = seq_len * batch

    def kernel(xtp_ref, p_ref, out_ref):
        def view(name):
            r, c, nr, nc = layout[name]
            # load 8-row-aligned full-width rows from the resident buffer,
            # then take a static lane/sublane slice of the value.
            return p_ref[r:r + nr, :][:, c:c + nc]

        def vpu_dot(xv, wname, extra=()):
            """x (M,K) @ w (K,N) as K lane-broadcast FMAs (no MXU fill/drain)."""
            _, _, K, N = layout[wname]
            w = view(wname)
            terms = [xv[:, k:k + 1] * w[k:k + 1, :] for k in range(K)]
            return _tree_sum(terms + list(extra))

        # ---- merged input slab: (S*B, D_in + 2), single DMA ----
        xtp = xtp_ref[...]
        x = xtp[:, 0:lidar_dim]                               # (S*B, D_in)
        tp0 = xtp[:, lidar_dim:lidar_dim + 1]                 # (S*B, 1)
        tp1 = xtp[:, lidar_dim + 1:lidar_dim + 2]

        # ---- stump: wide layers on MXU, narrow layers as VPU broadcast-FMAs ----
        h = x
        for li in (0, 1):                                     # 16->64, 64->32
            h = jnp.maximum(
                jnp.dot(h, view(f"w{li}"), preferred_element_type=jnp.float32)
                + view(f"b{li}"), 0.0)
        for li in (2, 3):                                     # 32->16, 16->8: skip the MXU
            _, _, _, n_out = layout[f"b{li}"]
            b = jnp.broadcast_to(view(f"b{li}"), (SB, n_out))
            h = jnp.maximum(vpu_dot(h, f"w{li}", extra=(b,)), 0.0)

        # ---- fused, lane-packed gate pre-activations gx: (S*B, 4H) ----
        w_it = view("w_ih_tp")                                # (2, 4H)
        b_l = jnp.broadcast_to(view("b_lstm"), (SB, G4))      # (1,4H)=b_ih+b_hh
        gx = vpu_dot(h, "w_ih_feat",
                     extra=(tp0 * w_it[0:1, :], tp1 * w_it[1:2, :], b_l))
        # hoist per-timestep slices off the serial recurrence chain
        gx_t = [gx[t * batch:(t + 1) * batch, :] for t in range(seq_len)]

        # loop-invariant (B, 4H) broadcasts of the W_hh rows (PyTorch i,f,g,o order)
        w_hh = view("w_hh")                                   # (H, 4H)
        whh_rows = [jnp.broadcast_to(w_hh[k:k + 1, :], (batch, G4)) for k in range(H)]

        # per-lane scale/offset: ONE tanh gives sigmoid on i/f/o lanes, tanh on g lanes
        lane = jax.lax.broadcasted_iota(jnp.int32, (batch, G4), 1)
        is_g = jnp.logical_and(lane >= 2 * H, lane < 3 * H)
        scl = jnp.where(is_g, 1.0, 0.5)
        off = jnp.where(is_g, 0.0, 0.5)

        # ---- LSTM recurrence: lane-packed (B, 4H); VPU/EUP/XLU only on the chain ----
        h_t = jnp.zeros((batch, H), jnp.float32)
        c_t = jnp.zeros((batch, H), jnp.float32)
        for t in range(seq_len):   # S is small -> full unroll (use fori_loop if S grows)
            pre = _tree_sum([gx_t[t]]
                            + [h_t[:, k:k + 1] * whh_rows[k] for k in range(H)])
            gates = scl * jnp.tanh(scl * pre) + off           # sigmoid(i,f,o)/tanh(g)
            i_g = gates[:, 0 * H:1 * H]
            f_g = gates[:, 1 * H:2 * H]
            g_g = gates[:, 2 * H:3 * H]
            o_g = gates[:, 3 * H:4 * H]
            c_t = f_g * c_t + i_g * g_g
            h_t = o_g * jnp.tanh(c_t)

        out_ref[...] = h_t                                    # last-timestep hidden

    return kernel


# ---------------------------------------------------------------------------
# Wrapper
# ---------------------------------------------------------------------------
def lstm_value_estimator(lidar_states, target_points, packed_params, layout, num_actions=4):
    """lidar_states: (S, B, D_in), target_points: (S, B, 2) -> (B, num_actions).

    For throughput, fold many envs/rollouts into B per call (the kernel is
    launch/DMA-latency bound at tiny sizes); the kernel stays grid-less and
    single-TensorCore on purpose at these problem sizes.
    """
    S, B, D = lidar_states.shape
    T = target_points.shape[-1]
    xtp = jnp.concatenate(
        [lidar_states.reshape(S * B, D), target_points.reshape(S * B, T)],
        axis=1).astype(jnp.float32)                           # one merged input slab

    kernel = _build_kernel(layout, S, B, D, num_actions)
    vmem = pl.BlockSpec(memory_space=pltpu.MemorySpace.VMEM)
    return pl.pallas_call(
        kernel,
        out_shape=jax.ShapeDtypeStruct((B, num_actions), jnp.float32),
        in_specs=[vmem, vmem],
        out_specs=vmem,
    )(xtp, packed_params)


# ---------------------------------------------------------------------------
# Pure-JAX reference mirroring the PyTorch forward.
# ---------------------------------------------------------------------------
def _reference(lidar_states, target_points, params):
    S, B, D = lidar_states.shape
    h = lidar_states.reshape(S * B, D)
    for li in range(4):
        h = jnp.maximum(h @ params[f"w{li}"] + params[f"b{li}"], 0.0)
    tp = target_points.reshape(S * B, -1)
    gx = h @ params["w_ih_feat"] + tp @ params["w_ih_tp"] + params["b_ih"] + params["b_hh"]
    H = params["w_hh"].shape[0]
    h_t = jnp.zeros((B, H), jnp.float32)
    c_t = jnp.zeros((B, H), jnp.float32)
    for t in range(S):
        g = gx[t * B:(t + 1) * B] + h_t @ params["w_hh"]
        i_g = jax.nn.sigmoid(g[:, 0 * H:1 * H])
        f_g = jax.nn.sigmoid(g[:, 1 * H:2 * H])
        g_g = jnp.tanh(g[:, 2 * H:3 * H])
        o_g = jax.nn.sigmoid(g[:, 3 * H:4 * H])
        c_t = f_g * c_t + i_g * g_g
        h_t = o_g * jnp.tanh(c_t)
    return h_t


if __name__ == "__main__":
    SEQ, BATCH, LIDAR_DIM, NUM_ACTIONS = 8, 2, 16, 4

    key = jax.random.PRNGKey(0)
    k_param, k_lidar, k_tp = jax.random.split(key, 3)

    params = init_params(k_param, LIDAR_DIM, num_actions=NUM_ACTIONS)
    packed, layout = pack_params(params, num_actions=NUM_ACTIONS)   # one-time prep

    lidar_states = jax.random.normal(k_lidar, (SEQ, BATCH, LIDAR_DIM), jnp.float32)
    target_points = jax.random.normal(k_tp, (SEQ, BATCH, 2), jnp.float32)

    out = lstm_value_estimator(lidar_states, target_points, packed, layout, NUM_ACTIONS)
    out = jax.block_until_ready(out)

    ref = _reference(lidar_states, target_points, params)
    assert out.shape == (BATCH, NUM_ACTIONS), out.shape
    assert jnp.allclose(out, ref, atol=2e-3, rtol=2e-3), (out, ref)
    print("KERNEL_OK")
</pallas_src>

<mosaic_0001>
module attributes {stable_mosaic.version = 11 : i64} {
  func.func @kernel(%arg0: memref<16x18xf32, #tpu.memory_space<vmem>>, %arg1: memref<96x64xf32, #tpu.memory_space<vmem>>, %arg2: memref<2x4xf32, #tpu.memory_space<vmem>>) attributes {dimension_semantics = [], scalar_prefetch = 0 : i64, scratch_operands = 0 : i64, tpu.core_type = #tpu.core_type<tc>} {
    %c0 = arith.constant 0 : index
    %c0_0 = arith.constant 0 : index
    %0 = vector.load %arg0[%c0, %c0_0] : memref<16x18xf32, #tpu.memory_space<vmem>>, vector<16x18xf32>
    %1 = vector.extract_strided_slice %0 {offsets = [0, 0], sizes = [16, 16], strides = [1, 1]} : vector<16x18xf32> to vector<16x16xf32>
    %2 = vector.extract_strided_slice %0 {offsets = [0, 16], sizes = [16, 1], strides = [1, 1]} : vector<16x18xf32> to vector<16x1xf32>
    %3 = vector.extract_strided_slice %0 {offsets = [0, 17], sizes = [16, 1], strides = [1, 1]} : vector<16x18xf32> to vector<16x1xf32>
    %c0_1 = arith.constant 0 : index
    %c0_2 = arith.constant 0 : index
    %4 = vector.load %arg1[%c0_1, %c0_2] : memref<96x64xf32, #tpu.memory_space<vmem>>, vector<16x64xf32>
    %cst = arith.constant dense<0.000000e+00> : vector<16x64xf32>
    %5 = tpu.matmul %1, %4, %cst {dimension_numbers = #tpu.dot_dimension_numbers<[1], [0], [0], [1], [0, 0, 1, 1], [], []>} : vector<16x16xf32>, vector<16x64xf32>, vector<16x64xf32> -> vector<16x64xf32>
    %c80 = arith.constant 80 : index
    %c0_3 = arith.constant 0 : index
    %6 = vector.load %arg1[%c80, %c0_3] : memref<96x64xf32, #tpu.memory_space<vmem>>, vector<1x64xf32>
    %7 = vector.broadcast %6 : vector<1x64xf32> to vector<16x64xf32>
    %8 = arith.addf %5, %7 : vector<16x64xf32>
    %cst_4 = arith.constant 0.000000e+00 : f32
    %9 = vector.broadcast %cst_4 : f32 to vector<16x64xf32>
    %10 = arith.maximumf %8, %9 : vector<16x64xf32>
    %c16 = arith.constant 16 : index
    %c0_5 = arith.constant 0 : index
    %11 = vector.load %arg1[%c16, %c0_5] : memref<96x64xf32, #tpu.memory_space<vmem>>, vector<64x64xf32>
    %12 = vector.extract_strided_slice %11 {offsets = [0, 0], sizes = [64, 32], strides = [1, 1]} : vector<64x64xf32> to vector<64x32xf32>
    %cst_6 = arith.constant dense<0.000000e+00> : vector<16x32xf32>
    %13 = tpu.matmul %10, %12, %cst_6 {dimension_numbers = #tpu.dot_dimension_numbers<[1], [0], [0], [1], [0, 0, 1, 1], [], []>} : vector<16x64xf32>, vector<64x32xf32>, vector<16x32xf32> -> vector<16x32xf32>
    %c81 = arith.constant 81 : index
    %c0_7 = arith.constant 0 : index
    %14 = vector.load %arg1[%c81, %c0_7] : memref<96x64xf32, #tpu.memory_space<vmem>>, vector<1x64xf32>
    %15 = vector.extract_strided_slice %14 {offsets = [0, 0], sizes = [1, 32], strides = [1, 1]} : vector<1x64xf32> to vector<1x32xf32>
    %16 = vector.broadcast %15 : vector<1x32xf32> to vector<16x32xf32>
    %17 = arith.addf %13, %16 : vector<16x32xf32>
    %cst_8 = arith.constant 0.000000e+00 : f32
    %18 = vector.broadcast %cst_8 : f32 to vector<16x32xf32>
    %19 = arith.maximumf %17, %18 : vector<16x32xf32>
    %c82 = arith.constant 82 : index
    %c0_9 = arith.constant 0 : index
    %20 = vector.load %arg1[%c82, %c0_9] : memref<96x64xf32, #tpu.memory_space<vmem>>, vector<1x64xf32>
    %21 = vector.extract_strided_slice %20 {offsets = [0, 0], sizes = [1, 16], strides = [1, 1]} : vector<1x64xf32> to vector<1x16xf32>
    %22 = vector.shape_cast %21 : vector<1x16xf32> to vector<1x16xf32>
    %23 = vector.broadcast %22 : vector<1x16xf32> to vector<16x16xf32>
    %c16_10 = arith.constant 16 : index
    %c0_11 = arith.constant 0 : index
    %24 = vector.load %arg1[%c16_10, %c0_11] : memref<96x64xf32, #tpu.memory_space<vmem>>, vector<32x64xf32>
    %25 = vector.extract_strided_slice %24 {offsets = [0, 32], sizes = [32, 16], strides = [1, 1]} : vector<32x64xf32> to vector<32x16xf32>
    %26 = vector.extract_strided_slice %19 {offsets = [0, 0], sizes = [16, 1], strides = [1, 1]} : vector<16x32xf32> to vector<16x1xf32>
    %27 = vector.extract_strided_slice %25 {offsets = [0, 0], sizes = [1, 16], strides = [1, 1]} : vector<32x16xf32> to vector<1x16xf32>
    %28 = vector.broadcast %26 : vector<16x1xf32> to vector<16x16xf32>
    %29 = vector.broadcast %27 : vector<1x16xf32> to vector<16x16xf32>
    %30 = arith.mulf %28, %29 : vector<16x16xf32>
    %31 = vector.extract_strided_slice %19 {offsets = [0, 1], sizes = [16, 1], strides = [1, 1]} : vector<16x32xf32> to vector<16x1xf32>
    %32 = vector.extract_strided_slice %25 {offsets = [1, 0], sizes = [1, 16], strides = [1, 1]} : vector<32x16xf32> to vector<1x16xf32>
    %33 = vector.broadcast %31 : vector<16x1xf32> to vector<16x16xf32>
    %34 = vector.broadcast %32 : vector<1x16xf32> to vector<16x16xf32>
    %35 = arith.mulf %33, %34 : vector<16x16xf32>
    %36 = vector.extract_strided_slice %19 {offsets = [0, 2], sizes = [16, 1], strides = [1, 1]} : vector<16x32xf32> to vector<16x1xf32>
    %37 = vector.extract_strided_slice %25 {offsets = [2, 0], sizes = [1, 16], strides = [1, 1]} : vector<32x16xf32> to vector<1x16xf32>
    %38 = vector.broadcast %36 : vector<16x1xf32> to vector<16x16xf32>
    %39 = vector.broadcast %37 : vector<1x16xf32> to vector<16x16xf32>
    %40 = arith.mulf %38, %39 : vector<16x16xf32>
    %41 = vector.extract_strided_slice %19 {offsets = [0, 3], sizes = [16, 1], strides = [1, 1]} : vector<16x32xf32> to vector<16x1xf32>
    %42 = vector.extract_strided_slice %25 {offsets = [3, 0], sizes = [1, 16], strides = [1, 1]} : vector<32x16xf32> to vector<1x16xf32>
    %43 = vector.broadcast %41 : vector<16x1xf32> to vector<16x16xf32>
    %44 = vector.broadcast %42 : vector<1x16xf32> to vector<16x16xf32>
    %45 = arith.mulf %43, %44 : vector<16x16xf32>
    %46 = vector.extract_strided_slice %19 {offsets = [0, 4], sizes = [16, 1], strides = [1, 1]} : vector<16x32xf32> to vector<16x1xf32>
    %47 = vector.extract_strided_slice %25 {offsets = [4, 0], sizes = [1, 16], strides = [1, 1]} : vector<32x16xf32> to vector<1x16xf32>
    %48 = vector.broadcast %46 : vector<16x1xf32> to vector<16x16xf32>
    %49 = vector.broadcast %47 : vector<1x16xf32> to vector<16x16xf32>
    %50 = arith.mulf %48, %49 : vector<16x16xf32>
    %51 = vector.extract_strided_slice %19 {offsets = [0, 5], sizes = [16, 1], strides = [1, 1]} : vector<16x32xf32> to vector<16x1xf32>
    %52 = vector.extract_strided_slice %25 {offsets = [5, 0], sizes = [1, 16], strides = [1, 1]} : vector<32x16xf32> to vector<1x16xf32>
    %53 = vector.broadcast %51 : vector<16x1xf32> to vector<16x16xf32>
    %54 = vector.broadcast %52 : vector<1x16xf32> to vector<16x16xf32>
    %55 = arith.mulf %53, %54 : vector<16x16xf32>
    %56 = vector.extract_strided_slice %19 {offsets = [0, 6], sizes = [16, 1], strides = [1, 1]} : vector<16x32xf32> to vector<16x1xf32>
    %57 = vector.extract_strided_slice %25 {offsets = [6, 0], sizes = [1, 16], strides = [1, 1]} : vector<32x16xf32> to vector<1x16xf32>
    %58 = vector.broadcast %56 : vector<16x1xf32> to vector<16x16xf32>
    %59 = vector.broadcast %57 : vector<1x16xf32> to vector<16x16xf32>
    %60 = arith.mulf %58, %59 : vector<16x16xf32>
    %61 = vector.extract_strided_slice %19 {offsets = [0, 7], sizes = [16, 1], strides = [1, 1]} : vector<16x32xf32> to vector<16x1xf32>
    %62 = vector.extract_strided_slice %25 {offsets = [7, 0], sizes = [1, 16], strides = [1, 1]} : vector<32x16xf32> to vector<1x16xf32>
    %63 = vector.broadcast %61 : vector<16x1xf32> to vector<16x16xf32>
    %64 = vector.broadcast %62 : vector<1x16xf32> to vector<16x16xf32>
    %65 = arith.mulf %63, %64 : vector<16x16xf32>
    %66 = vector.extract_strided_slice %19 {offsets = [0, 8], sizes = [16, 1], strides = [1, 1]} : vector<16x32xf32> to vector<16x1xf32>
    %67 = vector.extract_strided_slice %25 {offsets = [8, 0], sizes = [1, 16], strides = [1, 1]} : vector<32x16xf32> to vector<1x16xf32>
    %68 = vector.broadcast %66 : vector<16x1xf32> to vector<16x16xf32>
    %69 = vector.broadcast %67 : vector<1x16xf32> to vector<16x16xf32>
    %70 = arith.mulf %68, %69 : vector<16x16xf32>
    %71 = vector.extract_strided_slice %19 {offsets = [0, 9], sizes = [16, 1], strides = [1, 1]} : vector<16x32xf32> to vector<16x1xf32>
    %72 = vector.extract_strided_slice %25 {offsets = [9, 0], sizes = [1, 16], strides = [1, 1]} : vector<32x16xf32> to vector<1x16xf32>
    %73 = vector.broadcast %71 : vector<16x1xf32> to vector<16x16xf32>
    %74 = vector.broadcast %72 : vector<1x16xf32> to vector<16x16xf32>
    %75 = arith.mulf %73, %74 : vector<16x16xf32>
    %76 = vector.extract_strided_slice %19 {offsets = [0, 10], sizes = [16, 1], strides = [1, 1]} : vector<16x32xf32> to vector<16x1xf32>
    %77 = vector.extract_strided_slice %25 {offsets = [10, 0], sizes = [1, 16], strides = [1, 1]} : vector<32x16xf32> to vector<1x16xf32>
    %78 = vector.broadcast %76 : vector<16x1xf32> to vector<16x16xf32>
    %79 = vector.broadcast %77 : vector<1x16xf32> to vector<16x16xf32>
    %80 = arith.mulf %78, %79 : vector<16x16xf32>
    %81 = vector.extract_strided_slice %19 {offsets = [0, 11], sizes = [16, 1], strides = [1, 1]} : vector<16x32xf32> to vector<16x1xf32>
    %82 = vector.extract_strided_slice %25 {offsets = [11, 0], sizes = [1, 16], strides = [1, 1]} : vector<32x16xf32> to vector<1x16xf32>
    %83 = vector.broadcast %81 : vector<16x1xf32> to vector<16x16xf32>
    %84 = vector.broadcast %82 : vector<1x16xf32> to vector<16x16xf32>
    %85 = arith.mulf %83, %84 : vector<16x16xf32>
    %86 = vector.extract_strided_slice %19 {offsets = [0, 12], sizes = [16, 1], strides = [1, 1]} : vector<16x32xf32> to vector<16x1xf32>
    %87 = vector.extract_strided_slice %25 {offsets = [12, 0], sizes = [1, 16], strides = [1, 1]} : vector<32x16xf32> to vector<1x16xf32>
    %88 = vector.broadcast %86 : vector<16x1xf32> to vector<16x16xf32>
    %89 = vector.broadcast %87 : vector<1x16xf32> to vector<16x16xf32>
    %90 = arith.mulf %88, %89 : vector<16x16xf32>
    %91 = vector.extract_strided_slice %19 {offsets = [0, 13], sizes = [16, 1], strides = [1, 1]} : vector<16x32xf32> to vector<16x1xf32>
    %92 = vector.extract_strided_slice %25 {offsets = [13, 0], sizes = [1, 16], strides = [1, 1]} : vector<32x16xf32> to vector<1x16xf32>
    %93 = vector.broadcast %91 : vector<16x1xf32> to vector<16x16xf32>
    %94 = vector.broadcast %92 : vector<1x16xf32> to vector<16x16xf32>
    %95 = arith.mulf %93, %94 : vector<16x16xf32>
    %96 = vector.extract_strided_slice %19 {offsets = [0, 14], sizes = [16, 1], strides = [1, 1]} : vector<16x32xf32> to vector<16x1xf32>
    %97 = vector.extract_strided_slice %25 {offsets = [14, 0], sizes = [1, 16], strides = [1, 1]} : vector<32x16xf32> to vector<1x16xf32>
    %98 = vector.broadcast %96 : vector<16x1xf32> to vector<16x16xf32>
    %99 = vector.broadcast %97 : vector<1x16xf32> to vector<16x16xf32>
    %100 = arith.mulf %98, %99 : vector<16x16xf32>
    %101 = vector.extract_strided_slice %19 {offsets = [0, 15], sizes = [16, 1], strides = [1, 1]} : vector<16x32xf32> to vector<16x1xf32>
    %102 = vector.extract_strided_slice %25 {offsets = [15, 0], sizes = [1, 16], strides = [1, 1]} : vector<32x16xf32> to vector<1x16xf32>
    %103 = vector.broadcast %101 : vector<16x1xf32> to vector<16x16xf32>
    %104 = vector.broadcast %102 : vector<1x16xf32> to vector<16x16xf32>
    %105 = arith.mulf %103, %104 : vector<16x16xf32>
    %106 = vector.extract_strided_slice %19 {offsets = [0, 16], sizes = [16, 1], strides = [1, 1]} : vector<16x32xf32> to vector<16x1xf32>
    %107 = vector.extract_strided_slice %25 {offsets = [16, 0], sizes = [1, 16], strides = [1, 1]} : vector<32x16xf32> to vector<1x16xf32>
    %108 = vector.broadcast %106 : vector<16x1xf32> to vector<16x16xf32>
    %109 = vector.broadcast %107 : vector<1x16xf32> to vector<16x16xf32>
    %110 = arith.mulf %108, %109 : vector<16x16xf32>
    %111 = vector.extract_strided_slice %19 {offsets = [0, 17], sizes = [16, 1], strides = [1, 1]} : vector<16x32xf32> to vector<16x1xf32>
    %112 = vector.extract_strided_slice %25 {offsets = [17, 0], sizes = [1, 16], strides = [1, 1]} : vector<32x16xf32> to vector<1x16xf32>
    %113 = vector.broadcast %111 : vector<16x1xf32> to vector<16x16xf32>
    %114 = vector.broadcast %112 : vector<1x16xf32> to vector<16x16xf32>
    %115 = arith.mulf %113, %114 : vector<16x16xf32>
    %116 = vector.extract_strided_slice %19 {offsets = [0, 18], sizes = [16, 1], strides = [1, 1]} : vector<16x32xf32> to vector<16x1xf32>
    %117 = vector.extract_strided_slice %25 {offsets = [18, 0], sizes = [1, 16], strides = [1, 1]} : vector<32x16xf32> to vector<1x16xf32>
    %118 = vector.broadcast %116 : vector<16x1xf32> to vector<16x16xf32>
    %119 = vector.broadcast %117 : vector<1x16xf32> to vector<16x16xf32>
    %120 = arith.mulf %118, %119 : vector<16x16xf32>
    %121 = vector.extract_strided_slice %19 {offsets = [0, 19], sizes = [16, 1], strides = [1, 1]} : vector<16x32xf32> to vector<16x1xf32>
    %122 = vector.extract_strided_slice %25 {offsets = [19, 0], sizes = [1, 16], strides = [1, 1]} : vector<32x16xf32> to vector<1x16xf32>
    %123 = vector.broadcast %121 : vector<16x1xf32> to vector<16x16xf32>
    %124 = vector.broadcast %122 : vector<1x16xf32> to vector<16x16xf32>
    %125 = arith.mulf %123, %124 : vector<16x16xf32>
    %126 = vector.extract_strided_slice %19 {offsets = [0, 20], sizes = [16, 1], strides = [1, 1]} : vector<16x32xf32> to vector<16x1xf32>
    %127 = vector.extract_strided_slice %25 {offsets = [20, 0], sizes = [1, 16], strides = [1, 1]} : vector<32x16xf32> to vector<1x16xf32>
    %128 = vector.broadcast %126 : vector<16x1xf32> to vector<16x16xf32>
    %129 = vector.broadcast %127 : vector<1x16xf32> to vector<16x16xf32>
    %130 = arith.mulf %128, %129 : vector<16x16xf32>
    %131 = vector.extract_strided_slice %19 {offsets = [0, 21], sizes = [16, 1], strides = [1, 1]} : vector<16x32xf32> to vector<16x1xf32>
    %132 = vector.extract_strided_slice %25 {offsets = [21, 0], sizes = [1, 16], strides = [1, 1]} : vector<32x16xf32> to vector<1x16xf32>
    %133 = vector.broadcast %131 : vector<16x1xf32> to vector<16x16xf32>
    %134 = vector.broadcast %132 : vector<1x16xf32> to vector<16x16xf32>
    %135 = arith.mulf %133, %134 : vector<16x16xf32>
    %136 = vector.extract_strided_slice %19 {offsets = [0, 22], sizes = [16, 1], strides = [1, 1]} : vector<16x32xf32> to vector<16x1xf32>
    %137 = vector.extract_strided_slice %25 {offsets = [22, 0], sizes = [1, 16], strides = [1, 1]} : vector<32x16xf32> to vector<1x16xf32>
    %138 = vector.broadcast %136 : vector<16x1xf32> to vector<16x16xf32>
    %139 = vector.broadcast %137 : vector<1x16xf32> to vector<16x16xf32>
    %140 = arith.mulf %138, %139 : vector<16x16xf32>
    %141 = vector.extract_strided_slice %19 {offsets = [0, 23], sizes = [16, 1], strides = [1, 1]} : vector<16x32xf32> to vector<16x1xf32>
    %142 = vector.extract_strided_slice %25 {offsets = [23, 0], sizes = [1, 16], strides = [1, 1]} : vector<32x16xf32> to vector<1x16xf32>
    %143 = vector.broadcast %141 : vector<16x1xf32> to vector<16x16xf32>
    %144 = vector.broadcast %142 : vector<1x16xf32> to vector<16x16xf32>
    %145 = arith.mulf %143, %144 : vector<16x16xf32>
    %146 = vector.extract_strided_slice %19 {offsets = [0, 24], sizes = [16, 1], strides = [1, 1]} : vector<16x32xf32> to vector<16x1xf32>
    %147 = vector.extract_strided_slice %25 {offsets = [24, 0], sizes = [1, 16], strides = [1, 1]} : vector<32x16xf32> to vector<1x16xf32>
    %148 = vector.broadcast %146 : vector<16x1xf32> to vector<16x16xf32>
    %149 = vector.broadcast %147 : vector<1x16xf32> to vector<16x16xf32>
    %150 = arith.mulf %148, %149 : vector<16x16xf32>
    %151 = vector.extract_strided_slice %19 {offsets = [0, 25], sizes = [16, 1], strides = [1, 1]} : vector<16x32xf32> to vector<16x1xf32>
    %152 = vector.extract_strided_slice %25 {offsets = [25, 0], sizes = [1, 16], strides = [1, 1]} : vector<32x16xf32> to vector<1x16xf32>
    %153 = vector.broadcast %151 : vector<16x1xf32> to vector<16x16xf32>
    %154 = vector.broadcast %152 : vector<1x16xf32> to vector<16x16xf32>
    %155 = arith.mulf %153, %154 : vector<16x16xf32>
    %156 = vector.extract_strided_slice %19 {offsets = [0, 26], sizes = [16, 1], strides = [1, 1]} : vector<16x32xf32> to vector<16x1xf32>
    %157 = vector.extract_strided_slice %25 {offsets = [26, 0], sizes = [1, 16], strides = [1, 1]} : vector<32x16xf32> to vector<1x16xf32>
    %158 = vector.broadcast %156 : vector<16x1xf32> to vector<16x16xf32>
    %159 = vector.broadcast %157 : vector<1x16xf32> to vector<16x16xf32>
    %160 = arith.mulf %158, %159 : vector<16x16xf32>
    %161 = vector.extract_strided_slice %19 {offsets = [0, 27], sizes = [16, 1], strides = [1, 1]} : vector<16x32xf32> to vector<16x1xf32>
    %162 = vector.extract_strided_slice %25 {offsets = [27, 0], sizes = [1, 16], strides = [1, 1]} : vector<32x16xf32> to vector<1x16xf32>
    %163 = vector.broadcast %161 : vector<16x1xf32> to vector<16x16xf32>
    %164 = vector.broadcast %162 : vector<1x16xf32> to vector<16x16xf32>
    %165 = arith.mulf %163, %164 : vector<16x16xf32>
    %166 = vector.extract_strided_slice %19 {offsets = [0, 28], sizes = [16, 1], strides = [1, 1]} : vector<16x32xf32> to vector<16x1xf32>
    %167 = vector.extract_strided_slice %25 {offsets = [28, 0], sizes = [1, 16], strides = [1, 1]} : vector<32x16xf32> to vector<1x16xf32>
    %168 = vector.broadcast %166 : vector<16x1xf32> to vector<16x16xf32>
    %169 = vector.broadcast %167 : vector<1x16xf32> to vector<16x16xf32>
    %170 = arith.mulf %168, %169 : vector<16x16xf32>
    %171 = vector.extract_strided_slice %19 {offsets = [0, 29], sizes = [16, 1], strides = [1, 1]} : vector<16x32xf32> to vector<16x1xf32>
    %172 = vector.extract_strided_slice %25 {offsets = [29, 0], sizes = [1, 16], strides = [1, 1]} : vector<32x16xf32> to vector<1x16xf32>
    %173 = vector.broadcast %171 : vector<16x1xf32> to vector<16x16xf32>
    %174 = vector.broadcast %172 : vector<1x16xf32> to vector<16x16xf32>
    %175 = arith.mulf %173, %174 : vector<16x16xf32>
    %176 = vector.extract_strided_slice %19 {offsets = [0, 30], sizes = [16, 1], strides = [1, 1]} : vector<16x32xf32> to vector<16x1xf32>
    %177 = vector.extract_strided_slice %25 {offsets = [30, 0], sizes = [1, 16], strides = [1, 1]} : vector<32x16xf32> to vector<1x16xf32>
    %178 = vector.broadcast %176 : vector<16x1xf32> to vector<16x16xf32>
    %179 = vector.broadcast %177 : vector<1x16xf32> to vector<16x16xf32>
    %180 = arith.mulf %178, %179 : vector<16x16xf32>
    %181 = vector.extract_strided_slice %19 {offsets = [0, 31], sizes = [16, 1], strides = [1, 1]} : vector<16x32xf32> to vector<16x1xf32>
    %182 = vector.extract_strided_slice %25 {offsets = [31, 0], sizes = [1, 16], strides = [1, 1]} : vector<32x16xf32> to vector<1x16xf32>
    %183 = vector.broadcast %181 : vector<16x1xf32> to vector<16x16xf32>
    %184 = vector.broadcast %182 : vector<1x16xf32> to vector<16x16xf32>
    %185 = arith.mulf %183, %184 : vector<16x16xf32>
    %186 = arith.addf %30, %35 : vector<16x16xf32>
    %187 = arith.addf %40, %45 : vector<16x16xf32>
    %188 = arith.addf %50, %55 : vector<16x16xf32>
    %189 = arith.addf %60, %65 : vector<16x16xf32>
    %190 = arith.addf %70, %75 : vector<16x16xf32>
    %191 = arith.addf %80, %85 : vector<16x16xf32>
    %192 = arith.addf %90, %95 : vector<16x16xf32>
    %193 = arith.addf %100, %105 : vector<16x16xf32>
    %194 = arith.addf %110, %115 : vector<16x16xf32>
    %195 = arith.addf %120, %125 : vector<16x16xf32>
    %196 = arith.addf %130, %135 : vector<16x16xf32>
    %197 = arith.addf %140, %145 : vector<16x16xf32>
    %198 = arith.addf %150, %155 : vector<16x16xf32>
    %199 = arith.addf %160, %165 : vector<16x16xf32>
    %200 = arith.addf %170, %175 : vector<16x16xf32>
    %201 = arith.addf %180, %185 : vector<16x16xf32>
    %202 = arith.addf %186, %187 : vector<16x16xf32>
    %203 = arith.addf %188, %189 : vector<16x16xf32>
    %204 = arith.addf %190, %191 : vector<16x16xf32>
    %205 = arith.addf %192, %193 : vector<16x16xf32>
    %206 = arith.addf %194, %195 : vector<16x16xf32>
    %207 = arith.addf %196, %197 : vector<16x16xf32>
    %208 = arith.addf %198, %199 : vector<16x16xf32>
    %209 = arith.addf %200, %201 : vector<16x16xf32>
    %210 = arith.addf %202, %203 : vector<16x16xf32>
    %211 = arith.addf %204, %205 : vector<16x16xf32>
    %212 = arith.addf %206, %207 : vector<16x16xf32>
    %213 = arith.addf %208, %209 : vector<16x16xf32>
    %214 = arith.addf %210, %211 : vector<16x16xf32>
    %215 = arith.addf %212, %213 : vector<16x16xf32>
    %216 = arith.addf %214, %215 : vector<16x16xf32>
    %217 = arith.addf %216, %23 : vector<16x16xf32>
    %cst_12 = arith.constant 0.000000e+00 : f32
    %218 = vector.broadcast %cst_12 : f32 to vector<16x16xf32>
    %219 = arith.maximumf %217, %218 : vector<16x16xf32>
    %c83 = arith.constant 83 : index
    %c0_13 = arith.constant 0 : index
    %220 = vector.load %arg1[%c83, %c0_13] : memref<96x64xf32, #tpu.memory_space<vmem>>, vector<1x64xf32>
    %221 = vector.extract_strided_slice %220 {offsets = [0, 0], sizes = [1, 8], strides = [1, 1]} : vector<1x64xf32> to vector<1x8xf32>
    %222 = vector.shape_cast %221 : vector<1x8xf32> to vector<1x8xf32>
    %223 = vector.broadcast %222 : vector<1x8xf32> to vector<16x8xf32>
    %c48 = arith.constant 48 : index
    %c0_14 = arith.constant 0 : index
    %224 = vector.load %arg1[%c48, %c0_14] : memref<96x64xf32, #tpu.memory_space<vmem>>, vector<16x64xf32>
    %225 = vector.extract_strided_slice %224 {offsets = [0, 32], sizes = [16, 8], strides = [1, 1]} : vector<16x64xf32> to vector<16x8xf32>
    %226 = vector.extract_strided_slice %219 {offsets = [0, 0], sizes = [16, 1], strides = [1, 1]} : vector<16x16xf32> to vector<16x1xf32>
    %227 = vector.extract_strided_slice %225 {offsets = [0, 0], sizes = [1, 8], strides = [1, 1]} : vector<16x8xf32> to vector<1x8xf32>
    %228 = vector.broadcast %226 : vector<16x1xf32> to vector<16x8xf32>
    %229 = vector.broadcast %227 : vector<1x8xf32> to vector<16x8xf32>
    %230 = arith.mulf %228, %229 : vector<16x8xf32>
    %231 = vector.extract_strided_slice %219 {offsets = [0, 1], sizes = [16, 1], strides = [1, 1]} : vector<16x16xf32> to vector<16x1xf32>
    %232 = vector.extract_strided_slice %225 {offsets = [1, 0], sizes = [1, 8], strides = [1, 1]} : vector<16x8xf32> to vector<1x8xf32>
    %233 = vector.broadcast %231 : vector<16x1xf32> to vector<16x8xf32>
    %234 = vector.broadcast %232 : vector<1x8xf32> to vector<16x8xf32>
    %235 = arith.mulf %233, %234 : vector<16x8xf32>
    %236 = vector.extract_strided_slice %219 {offsets = [0, 2], sizes = [16, 1], strides = [1, 1]} : vector<16x16xf32> to vector<16x1xf32>
    %237 = vector.extract_strided_slice %225 {offsets = [2, 0], sizes = [1, 8], strides = [1, 1]} : vector<16x8xf32> to vector<1x8xf32>
    %238 = vector.broadcast %236 : vector<16x1xf32> to vector<16x8xf32>
    %239 = vector.broadcast %237 : vector<1x8xf32> to vector<16x8xf32>
    %240 = arith.mulf %238, %239 : vector<16x8xf32>
    %241 = vector.extract_strided_slice %219 {offsets = [0, 3], sizes = [16, 1], strides = [1, 1]} : vector<16x16xf32> to vector<16x1xf32>
    %242 = vector.extract_strided_slice %225 {offsets = [3, 0], sizes = [1, 8], strides = [1, 1]} : vector<16x8xf32> to vector<1x8xf32>
    %243 = vector.broadcast %241 : vector<16x1xf32> to vector<16x8xf32>
    %244 = vector.broadcast %242 : vector<1x8xf32> to vector<16x8xf32>
    %245 = arith.mulf %243, %244 : vector<16x8xf32>
    %246 = vector.extract_strided_slice %219 {offsets = [0, 4], sizes = [16, 1], strides = [1, 1]} : vector<16x16xf32> to vector<16x1xf32>
    %247 = vector.extract_strided_slice %225 {offsets = [4, 0], sizes = [1, 8], strides = [1, 1]} : vector<16x8xf32> to vector<1x8xf32>
    %248 = vector.broadcast %246 : vector<16x1xf32> to vector<16x8xf32>
    %249 = vector.broadcast %247 : vector<1x8xf32> to vector<16x8xf32>
    %250 = arith.mulf %248, %249 : vector<16x8xf32>
    %251 = vector.extract_strided_slice %219 {offsets = [0, 5], sizes = [16, 1], strides = [1, 1]} : vector<16x16xf32> to vector<16x1xf32>
    %252 = vector.extract_strided_slice %225 {offsets = [5, 0], sizes = [1, 8], strides = [1, 1]} : vector<16x8xf32> to vector<1x8xf32>
    %253 = vector.broadcast %251 : vector<16x1xf32> to vector<16x8xf32>
    %254 = vector.broadcast %252 : vector<1x8xf32> to vector<16x8xf32>
    %255 = arith.mulf %253, %254 : vector<16x8xf32>
    %256 = vector.extract_strided_slice %219 {offsets = [0, 6], sizes = [16, 1], strides = [1, 1]} : vector<16x16xf32> to vector<16x1xf32>
    %257 = vector.extract_strided_slice %225 {offsets = [6, 0], sizes = [1, 8], strides = [1, 1]} : vector<16x8xf32> to vector<1x8xf32>
    %258 = vector.broadcast %256 : vector<16x1xf32> to vector<16x8xf32>
    %259 = vector.broadcast %257 : vector<1x8xf32> to vector<16x8xf32>
    %260 = arith.mulf %258, %259 : vector<16x8xf32>
    %261 = vector.extract_strided_slice %219 {offsets = [0, 7], sizes = [16, 1], strides = [1, 1]} : vector<16x16xf32> to vector<16x1xf32>
    %262 = vector.extract_strided_slice %225 {offsets = [7, 0], sizes = [1, 8], strides = [1, 1]} : vector<16x8xf32> to vector<1x8xf32>
    %263 = vector.broadcast %261 : vector<16x1xf32> to vector<16x8xf32>
    %264 = vector.broadcast %262 : vector<1x8xf32> to vector<16x8xf32>
    %265 = arith.mulf %263, %264 : vector<16x8xf32>
    %266 = vector.extract_strided_slice %219 {offsets = [0, 8], sizes = [16, 1], strides = [1, 1]} : vector<16x16xf32> to vector<16x1xf32>
    %267 = vector.extract_strided_slice %225 {offsets = [8, 0], sizes = [1, 8], strides = [1, 1]} : vector<16x8xf32> to vector<1x8xf32>
    %268 = vector.broadcast %266 : vector<16x1xf32> to vector<16x8xf32>
    %269 = vector.broadcast %267 : vector<1x8xf32> to vector<16x8xf32>
    %270 = arith.mulf %268, %269 : vector<16x8xf32>
    %271 = vector.extract_strided_slice %219 {offsets = [0, 9], sizes = [16, 1], strides = [1, 1]} : vector<16x16xf32> to vector<16x1xf32>
    %272 = vector.extract_strided_slice %225 {offsets = [9, 0], sizes = [1, 8], strides = [1, 1]} : vector<16x8xf32> to vector<1x8xf32>
    %273 = vector.broadcast %271 : vector<16x1xf32> to vector<16x8xf32>
    %274 = vector.broadcast %272 : vector<1x8xf32> to vector<16x8xf32>
    %275 = arith.mulf %273, %274 : vector<16x8xf32>
    %276 = vector.extract_strided_slice %219 {offsets = [0, 10], sizes = [16, 1], strides = [1, 1]} : vector<16x16xf32> to vector<16x1xf32>
    %277 = vector.extract_strided_slice %225 {offsets = [10, 0], sizes = [1, 8], strides = [1, 1]} : vector<16x8xf32> to vector<1x8xf32>
    %278 = vector.broadcast %276 : vector<16x1xf32> to vector<16x8xf32>
    %279 = vector.broadcast %277 : vector<1x8xf32> to vector<16x8xf32>
    %280 = arith.mulf %278, %279 : vector<16x8xf32>
    %281 = vector.extract_strided_slice %219 {offsets = [0, 11], sizes = [16, 1], strides = [1, 1]} : vector<16x16xf32> to vector<16x1xf32>
    %282 = vector.extract_strided_slice %225 {offsets = [11, 0], sizes = [1, 8], strides = [1, 1]} : vector<16x8xf32> to vector<1x8xf32>
    %283 = vector.broadcast %281 : vector<16x1xf32> to vector<16x8xf32>
    %284 = vector.broadcast %282 : vector<1x8xf32> to vector<16x8xf32>
    %285 = arith.mulf %283, %284 : vector<16x8xf32>
    %286 = vector.extract_strided_slice %219 {offsets = [0, 12], sizes = [16, 1], strides = [1, 1]} : vector<16x16xf32> to vector<16x1xf32>
    %287 = vector.extract_strided_slice %225 {offsets = [12, 0], sizes = [1, 8], strides = [1, 1]} : vector<16x8xf32> to vector<1x8xf32>
    %288 = vector.broadcast %286 : vector<16x1xf32> to vector<16x8xf32>
    %289 = vector.broadcast %287 : vector<1x8xf32> to vector<16x8xf32>
    %290 = arith.mulf %288, %289 : vector<16x8xf32>
    %291 = vector.extract_strided_slice %219 {offsets = [0, 13], sizes = [16, 1], strides = [1, 1]} : vector<16x16xf32> to vector<16x1xf32>
    %292 = vector.extract_strided_slice %225 {offsets = [13, 0], sizes = [1, 8], strides = [1, 1]} : vector<16x8xf32> to vector<1x8xf32>
    %293 = vector.broadcast %291 : vector<16x1xf32> to vector<16x8xf32>
    %294 = vector.broadcast %292 : vector<1x8xf32> to vector<16x8xf32>
    %295 = arith.mulf %293, %294 : vector<16x8xf32>
    %296 = vector.extract_strided_slice %219 {offsets = [0, 14], sizes = [16, 1], strides = [1, 1]} : vector<16x16xf32> to vector<16x1xf32>
    %297 = vector.extract_strided_slice %225 {offsets = [14, 0], sizes = [1, 8], strides = [1, 1]} : vector<16x8xf32> to vector<1x8xf32>
    %298 = vector.broadcast %296 : vector<16x1xf32> to vector<16x8xf32>
    %299 = vector.broadcast %297 : vector<1x8xf32> to vector<16x8xf32>
    %300 = arith.mulf %298, %299 : vector<16x8xf32>
    %301 = vector.extract_strided_slice %219 {offsets = [0, 15], sizes = [16, 1], strides = [1, 1]} : vector<16x16xf32> to vector<16x1xf32>
    %302 = vector.extract_strided_slice %225 {offsets = [15, 0], sizes = [1, 8], strides = [1, 1]} : vector<16x8xf32> to vector<1x8xf32>
    %303 = vector.broadcast %301 : vector<16x1xf32> to vector<16x8xf32>
    %304 = vector.broadcast %302 : vector<1x8xf32> to vector<16x8xf32>
    %305 = arith.mulf %303, %304 : vector<16x8xf32>
    %306 = arith.addf %230, %235 : vector<16x8xf32>
    %307 = arith.addf %240, %245 : vector<16x8xf32>
    %308 = arith.addf %250, %255 : vector<16x8xf32>
    %309 = arith.addf %260, %265 : vector<16x8xf32>
    %310 = arith.addf %270, %275 : vector<16x8xf32>
    %311 = arith.addf %280, %285 : vector<16x8xf32>
    %312 = arith.addf %290, %295 : vector<16x8xf32>
    %313 = arith.addf %300, %305 : vector<16x8xf32>
    %314 = arith.addf %306, %307 : vector<16x8xf32>
    %315 = arith.addf %308, %309 : vector<16x8xf32>
    %316 = arith.addf %310, %311 : vector<16x8xf32>
    %317 = arith.addf %312, %313 : vector<16x8xf32>
    %318 = arith.addf %314, %315 : vector<16x8xf32>
    %319 = arith.addf %316, %317 : vector<16x8xf32>
    %320 = arith.addf %318, %319 : vector<16x8xf32>
    %321 = arith.addf %320, %223 : vector<16x8xf32>
    %cst_15 = arith.constant 0.000000e+00 : f32
    %322 = vector.broadcast %cst_15 : f32 to vector<16x8xf32>
    %323 = arith.maximumf %321, %322 : vector<16x8xf32>
    %c88 = arith.constant 88 : index
    %c0_16 = arith.constant 0 : index
    %324 = vector.load %arg1[%c88, %c0_16] : memref<96x64xf32, #tpu.memory_space<vmem>>, vector<2x64xf32>
    %325 = vector.extract_strided_slice %324 {offsets = [0, 16], sizes = [2, 16], strides = [1, 1]} : vector<2x64xf32> to vector<2x16xf32>
    %c84 = arith.constant 84 : index
    %c0_17 = arith.constant 0 : index
    %326 = vector.load %arg1[%c84, %c0_17] : memref<96x64xf32, #tpu.memory_space<vmem>>, vector<1x64xf32>
    %327 = vector.extract_strided_slice %326 {offsets = [0, 0], sizes = [1, 16], strides = [1, 1]} : vector<1x64xf32> to vector<1x16xf32>
    %328 = vector.shape_cast %327 : vector<1x16xf32> to vector<1x16xf32>
    %329 = vector.broadcast %328 : vector<1x16xf32> to vector<16x16xf32>
    %330 = vector.extract_strided_slice %325 {offsets = [0, 0], sizes = [1, 16], strides = [1, 1]} : vector<2x16xf32> to vector<1x16xf32>
    %331 = vector.broadcast %2 : vector<16x1xf32> to vector<16x16xf32>
    %332 = vector.broadcast %330 : vector<1x16xf32> to vector<16x16xf32>
    %333 = arith.mulf %331, %332 : vector<16x16xf32>
    %334 = vector.extract_strided_slice %325 {offsets = [1, 0], sizes = [1, 16], strides = [1, 1]} : vector<2x16xf32> to vector<1x16xf32>
    %335 = vector.broadcast %3 : vector<16x1xf32> to vector<16x16xf32>
    %336 = vector.broadcast %334 : vector<1x16xf32> to vector<16x16xf32>
    %337 = arith.mulf %335, %336 : vector<16x16xf32>
    %c88_18 = arith.constant 88 : index
    %c0_19 = arith.constant 0 : index
    %338 = vector.load %arg1[%c88_18, %c0_19] : memref<96x64xf32, #tpu.memory_space<vmem>>, vector<8x64xf32>
    %339 = vector.extract_strided_slice %338 {offsets = [0, 0], sizes = [8, 16], strides = [1, 1]} : vector<8x64xf32> to vector<8x16xf32>
    %340 = vector.extract_strided_slice %323 {offsets = [0, 0], sizes = [16, 1], strides = [1, 1]} : vector<16x8xf32> to vector<16x1xf32>
    %341 = vector.extract_strided_slice %339 {offsets = [0, 0], sizes = [1, 16], strides = [1, 1]} : vector<8x16xf32> to vector<1x16xf32>
    %342 = vector.broadcast %340 : vector<16x1xf32> to vector<16x16xf32>
    %343 = vector.broadcast %341 : vector<1x16xf32> to vector<16x16xf32>
    %344 = arith.mulf %342, %343 : vector<16x16xf32>
    %345 = vector.extract_strided_slice %323 {offsets = [0, 1], sizes = [16, 1], strides = [1, 1]} : vector<16x8xf32> to vector<16x1xf32>
    %346 = vector.extract_strided_slice %339 {offsets = [1, 0], sizes = [1, 16], strides = [1, 1]} : vector<8x16xf32> to vector<1x16xf32>
    %347 = vector.broadcast %345 : vector<16x1xf32> to vector<16x16xf32>
    %348 = vector.broadcast %346 : vector<1x16xf32> to vector<16x16xf32>
    %349 = arith.mulf %347, %348 : vector<16x16xf32>
    %350 = vector.extract_strided_slice %323 {offsets = [0, 2], sizes = [16, 1], strides = [1, 1]} : vector<16x8xf32> to vector<16x1xf32>
    %351 = vector.extract_strided_slice %339 {offsets = [2, 0], sizes = [1, 16], strides = [1, 1]} : vector<8x16xf32> to vector<1x16xf32>
    %352 = vector.broadcast %350 : vector<16x1xf32> to vector<16x16xf32>
    %353 = vector.broadcast %351 : vector<1x16xf32> to vector<16x16xf32>
    %354 = arith.mulf %352, %353 : vector<16x16xf32>
    %355 = vector.extract_strided_slice %323 {offsets = [0, 3], sizes = [16, 1], strides = [1, 1]} : vector<16x8xf32> to vector<16x1xf32>
    %356 = vector.extract_strided_slice %339 {offsets = [3, 0], sizes = [1, 16], strides = [1, 1]} : vector<8x16xf32> to vector<1x16xf32>
    %357 = vector.broadcast %355 : vector<16x1xf32> to vector<16x16xf32>
    %358 = vector.broadcast %356 : vector<1x16xf32> to vector<16x16xf32>
    %359 = arith.mulf %357, %358 : vector<16x16xf32>
    %360 = vector.extract_strided_slice %323 {offsets = [0, 4], sizes = [16, 1], strides = [1, 1]} : vector<16x8xf32> to vector<16x1xf32>
    %361 = vector.extract_strided_slice %339 {offsets = [4, 0], sizes = [1, 16], strides = [1, 1]} : vector<8x16xf32> to vector<1x16xf32>
    %362 = vector.broadcast %360 : vector<16x1xf32> to vector<16x16xf32>
    %363 = vector.broadcast %361 : vector<1x16xf32> to vector<16x16xf32>
    %364 = arith.mulf %362, %363 : vector<16x16xf32>
    %365 = vector.extract_strided_slice %323 {offsets = [0, 5], sizes = [16, 1], strides = [1, 1]} : vector<16x8xf32> to vector<16x1xf32>
    %366 = vector.extract_strided_slice %339 {offsets = [5, 0], sizes = [1, 16], strides = [1, 1]} : vector<8x16xf32> to vector<1x16xf32>
    %367 = vector.broadcast %365 : vector<16x1xf32> to vector<16x16xf32>
    %368 = vector.broadcast %366 : vector<1x16xf32> to vector<16x16xf32>
    %369 = arith.mulf %367, %368 : vector<16x16xf32>
    %370 = vector.extract_strided_slice %323 {offsets = [0, 6], sizes = [16, 1], strides = [1, 1]} : vector<16x8xf32> to vector<16x1xf32>
    %371 = vector.extract_strided_slice %339 {offsets = [6, 0], sizes = [1, 16], strides = [1, 1]} : vector<8x16xf32> to vector<1x16xf32>
    %372 = vector.broadcast %370 : vector<16x1xf32> to vector<16x16xf32>
    %373 = vector.broadcast %371 : vector<1x16xf32> to vector<16x16xf32>
    %374 = arith.mulf %372, %373 : vector<16x16xf32>
    %375 = vector.extract_strided_slice %323 {offsets = [0, 7], sizes = [16, 1], strides = [1, 1]} : vector<16x8xf32> to vector<16x1xf32>
    %376 = vector.extract_strided_slice %339 {offsets = [7, 0], sizes = [1, 16], strides = [1, 1]} : vector<8x16xf32> to vector<1x16xf32>
    %377 = vector.broadcast %375 : vector<16x1xf32> to vector<16x16xf32>
    %378 = vector.broadcast %376 : vector<1x16xf32> to vector<16x16xf32>
    %379 = arith.mulf %377, %378 : vector<16x16xf32>
    %380 = arith.addf %344, %349 : vector<16x16xf32>
    %381 = arith.addf %354, %359 : vector<16x16xf32>
    %382 = arith.addf %364, %369 : vector<16x16xf32>
    %383 = arith.addf %374, %379 : vector<16x16xf32>
    %384 = arith.addf %333, %337 : vector<16x16xf32>
    %385 = arith.addf %380, %381 : vector<16x16xf32>
    %386 = arith.addf %382, %383 : vector<16x16xf32>
    %387 = arith.addf %384, %329 : vector<16x16xf32>
    %388 = arith.addf %385, %386 : vector<16x16xf32>
    %389 = arith.addf %388, %387 : vector<16x16xf32>
    %390 = vector.extract_strided_slice %389 {offsets = [0, 0], sizes = [2, 16], strides = [1, 1]} : vector<16x16xf32> to vector<2x16xf32>
    %391 = vector.extract_strided_slice %389 {offsets = [2, 0], sizes = [2, 16], strides = [1, 1]} : vector<16x16xf32> to vector<2x16xf32>
    %392 = vector.extract_strided_slice %389 {offsets = [4, 0], sizes = [2, 16], strides = [1, 1]} : vector<16x16xf32> to vector<2x16xf32>
    %393 = vector.extract_strided_slice %389 {offsets = [6, 0], sizes = [2, 16], strides = [1, 1]} : vector<16x16xf32> to vector<2x16xf32>
    %394 = vector.extract_strided_slice %389 {offsets = [8, 0], sizes = [2, 16], strides = [1, 1]} : vector<16x16xf32> to vector<2x16xf32>
    %395 = vector.extract_strided_slice %389 {offsets = [10, 0], sizes = [2, 16], strides = [1, 1]} : vector<16x16xf32> to vector<2x16xf32>
    %396 = vector.extract_strided_slice %389 {offsets = [12, 0], sizes = [2, 16], strides = [1, 1]} : vector<16x16xf32> to vector<2x16xf32>
    %397 = vector.extract_strided_slice %389 {offsets = [14, 0], sizes = [2, 16], strides = [1, 1]} : vector<16x16xf32> to vector<2x16xf32>
    %c88_20 = arith.constant 88 : index
    %c0_21 = arith.constant 0 : index
    %398 = vector.load %arg1[%c88_20, %c0_21] : memref<96x64xf32, #tpu.memory_space<vmem>>, vector<4x64xf32>
    %399 = vector.extract_strided_slice %398 {offsets = [0, 32], sizes = [4, 16], strides = [1, 1]} : vector<4x64xf32> to vector<4x16xf32>
    %400 = vector.extract_strided_slice %399 {offsets = [0, 0], sizes = [1, 16], strides = [1, 1]} : vector<4x16xf32> to vector<1x16xf32>
    %401 = vector.shape_cast %400 : vector<1x16xf32> to vector<1x16xf32>
    %402 = vector.broadcast %401 : vector<1x16xf32> to vector<2x16xf32>
    %403 = vector.extract_strided_slice %399 {offsets = [1, 0], sizes = [1, 16], strides = [1, 1]} : vector<4x16xf32> to vector<1x16xf32>
    %404 = vector.shape_cast %403 : vector<1x16xf32> to vector<1x16xf32>
    %405 = vector.broadcast %404 : vector<1x16xf32> to vector<2x16xf32>
    %406 = vector.extract_strided_slice %399 {offsets = [2, 0], sizes = [1, 16], strides = [1, 1]} : vector<4x16xf32> to vector<1x16xf32>
    %407 = vector.shape_cast %406 : vector<1x16xf32> to vector<1x16xf32>
    %408 = vector.broadcast %407 : vector<1x16xf32> to vector<2x16xf32>
    %409 = vector.extract_strided_slice %399 {offsets = [3, 0], sizes = [1, 16], strides = [1, 1]} : vector<4x16xf32> to vector<1x16xf32>
    %410 = vector.shape_cast %409 : vector<1x16xf32> to vector<1x16xf32>
    %411 = vector.broadcast %410 : vector<1x16xf32> to vector<2x16xf32>
    %412 = tpu.iota {dimensions = array<i32: 1>} : vector<2x16xi32>
    %c8_i32 = arith.constant 8 : i32
    %413 = vector.broadcast %c8_i32 : i32 to vector<2x16xi32>
    %414 = arith.cmpi sge, %412, %413 : vector<2x16xi32>
    %c12_i32 = arith.constant 12 : i32
    %415 = vector.broadcast %c12_i32 : i32 to vector<2x16xi32>
    %416 = arith.cmpi slt, %412, %415 : vector<2x16xi32>
    %417 = arith.andi %414, %416 : vector<2x16xi1>
    %cst_22 = arith.constant 1.000000e+00 : f32
    %cst_23 = arith.constant 5.000000e-01 : f32
    %418 = vector.broadcast %cst_22 : f32 to vector<2x16xf32>
    %419 = vector.broadcast %cst_23 : f32 to vector<2x16xf32>
    %420 = arith.select %417, %418, %419 : vector<2x16xi1>, vector<2x16xf32>
    %cst_24 = arith.constant 0.000000e+00 : f32
    %cst_25 = arith.constant 5.000000e-01 : f32
    %421 = vector.broadcast %cst_24 : f32 to vector<2x16xf32>
    %422 = vector.broadcast %cst_25 : f32 to vector<2x16xf32>
    %423 = arith.select %417, %421, %422 : vector<2x16xi1>, vector<2x16xf32>
    %cst_26 = arith.constant 0.000000e+00 : f32
    %424 = vector.broadcast %cst_26 : f32 to vector<2x4xf32>
    %cst_27 = arith.constant 0.000000e+00 : f32
    %425 = vector.broadcast %cst_27 : f32 to vector<2x4xf32>
    %426 = vector.extract_strided_slice %424 {offsets = [0, 0], sizes = [2, 1], strides = [1, 1]} : vector<2x4xf32> to vector<2x1xf32>
    %427 = vector.broadcast %426 : vector<2x1xf32> to vector<2x16xf32>
    %428 = arith.mulf %427, %402 : vector<2x16xf32>
    %429 = vector.extract_strided_slice %424 {offsets = [0, 1], sizes = [2, 1], strides = [1, 1]} : vector<2x4xf32> to vector<2x1xf32>
    %430 = vector.broadcast %429 : vector<2x1xf32> to vector<2x16xf32>
    %431 = arith.mulf %430, %405 : vector<2x16xf32>
    %432 = vector.extract_strided_slice %424 {offsets = [0, 2], sizes = [2, 1], strides = [1, 1]} : vector<2x4xf32> to vector<2x1xf32>
    %433 = vector.broadcast %432 : vector<2x1xf32> to vector<2x16xf32>
    %434 = arith.mulf %433, %408 : vector<2x16xf32>
    %435 = vector.extract_strided_slice %424 {offsets = [0, 3], sizes = [2, 1], strides = [1, 1]} : vector<2x4xf32> to vector<2x1xf32>
    %436 = vector.broadcast %435 : vector<2x1xf32> to vector<2x16xf32>
    %437 = arith.mulf %436, %411 : vector<2x16xf32>
    %438 = arith.addf %390, %428 : vector<2x16xf32>
    %439 = arith.addf %431, %434 : vector<2x16xf32>
    %440 = arith.addf %438, %439 : vector<2x16xf32>
    %441 = arith.addf %440, %437 : vector<2x16xf32>
    %442 = arith.mulf %420, %441 : vector<2x16xf32>
    %443 = math.tanh %442 : vector<2x16xf32>
    %444 = arith.mulf %420, %443 : vector<2x16xf32>
    %445 = arith.addf %444, %423 : vector<2x16xf32>
    %446 = vector.extract_strided_slice %445 {offsets = [0, 0], sizes = [2, 4], strides = [1, 1]} : vector<2x16xf32> to vector<2x4xf32>
    %447 = vector.extract_strided_slice %445 {offsets = [0, 4], sizes = [2, 4], strides = [1, 1]} : vector<2x16xf32> to vector<2x4xf32>
    %448 = vector.extract_strided_slice %445 {offsets = [0, 8], sizes = [2, 4], strides = [1, 1]} : vector<2x16xf32> to vector<2x4xf32>
    %449 = vector.extract_strided_slice %445 {offsets = [0, 12], sizes = [2, 4], strides = [1, 1]} : vector<2x16xf32> to vector<2x4xf32>
    %450 = arith.mulf %447, %425 : vector<2x4xf32>
    %451 = arith.mulf %446, %448 : vector<2x4xf32>
    %452 = arith.addf %450, %451 : vector<2x4xf32>
    %453 = math.tanh %452 : vector<2x4xf32>
    %454 = arith.mulf %449, %453 : vector<2x4xf32>
    %455 = vector.extract_strided_slice %454 {offsets = [0, 0], sizes = [2, 1], strides = [1, 1]} : vector<2x4xf32> to vector<2x1xf32>
    %456 = vector.broadcast %455 : vector<2x1xf32> to vector<2x16xf32>
    %457 = arith.mulf %456, %402 : vector<2x16xf32>
    %458 = vector.extract_strided_slice %454 {offsets = [0, 1], sizes = [2, 1], strides = [1, 1]} : vector<2x4xf32> to vector<2x1xf32>
    %459 = vector.broadcast %458 : vector<2x1xf32> to vector<2x16xf32>
    %460 = arith.mulf %459, %405 : vector<2x16xf32>
    %461 = vector.extract_strided_slice %454 {offsets = [0, 2], sizes = [2, 1], strides = [1, 1]} : vector<2x4xf32> to vector<2x1xf32>
    %462 = vector.broadcast %461 : vector<2x1xf32> to vector<2x16xf32>
    %463 = arith.mulf %462, %408 : vector<2x16xf32>
    %464 = vector.extract_strided_slice %454 {offsets = [0, 3], sizes = [2, 1], strides = [1, 1]} : vector<2x4xf32> to vector<2x1xf32>
    %465 = vector.broadcast %464 : vector<2x1xf32> to vector<2x16xf32>
    %466 = arith.mulf %465, %411 : vector<2x16xf32>
    %467 = arith.addf %391, %457 : vector<2x16xf32>
    %468 = arith.addf %460, %463 : vector<2x16xf32>
    %469 = arith.addf %467, %468 : vector<2x16xf32>
    %470 = arith.addf %469, %466 : vector<2x16xf32>
    %471 = arith.mulf %420, %470 : vector<2x16xf32>
    %472 = math.tanh %471 : vector<2x16xf32>
    %473 = arith.mulf %420, %472 : vector<2x16xf32>
    %474 = arith.addf %473, %423 : vector<2x16xf32>
    %475 = vector.extract_strided_slice %474 {offsets = [0, 0], sizes = [2, 4], strides = [1, 1]} : vector<2x16xf32> to vector<2x4xf32>
    %476 = vector.extract_strided_slice %474 {offsets = [0, 4], sizes = [2, 4], strides = [1, 1]} : vector<2x16xf32> to vector<2x4xf32>
    %477 = vector.extract_strided_slice %474 {offsets = [0, 8], sizes = [2, 4], strides = [1, 1]} : vector<2x16xf32> to vector<2x4xf32>
    %478 = vector.extract_strided_slice %474 {offsets = [0, 12], sizes = [2, 4], strides = [1, 1]} : vector<2x16xf32> to vector<2x4xf32>
    %479 = arith.mulf %476, %452 : vector<2x4xf32>
    %480 = arith.mulf %475, %477 : vector<2x4xf32>
    %481 = arith.addf %479, %480 : vector<2x4xf32>
    %482 = math.tanh %481 : vector<2x4xf32>
    %483 = arith.mulf %478, %482 : vector<2x4xf32>
    %484 = vector.extract_strided_slice %483 {offsets = [0, 0], sizes = [2, 1], strides = [1, 1]} : vector<2x4xf32> to vector<2x1xf32>
    %485 = vector.broadcast %484 : vector<2x1xf32> to vector<2x16xf32>
    %486 = arith.mulf %485, %402 : vector<2x16xf32>
    %487 = vector.extract_strided_slice %483 {offsets = [0, 1], sizes = [2, 1], strides = [1, 1]} : vector<2x4xf32> to vector<2x1xf32>
    %488 = vector.broadcast %487 : vector<2x1xf32> to vector<2x16xf32>
    %489 = arith.mulf %488, %405 : vector<2x16xf32>
    %490 = vector.extract_strided_slice %483 {offsets = [0, 2], sizes = [2, 1], strides = [1, 1]} : vector<2x4xf32> to vector<2x1xf32>
    %491 = vector.broadcast %490 : vector<2x1xf32> to vector<2x16xf32>
    %492 = arith.mulf %491, %408 : vector<2x16xf32>
    %493 = vector.extract_strided_slice %483 {offsets = [0, 3], sizes = [2, 1], strides = [1, 1]} : vector<2x4xf32> to vector<2x1xf32>
    %494 = vector.broadcast %493 : vector<2x1xf32> to vector<2x16xf32>
    %495 = arith.mulf %494, %411 : vector<2x16xf32>
    %496 = arith.addf %392, %486 : vector<2x16xf32>
    %497 = arith.addf %489, %492 : vector<2x16xf32>
    %498 = arith.addf %496, %497 : vector<2x16xf32>
    %499 = arith.addf %498, %495 : vector<2x16xf32>
    %500 = arith.mulf %420, %499 : vector<2x16xf32>
    %501 = math.tanh %500 : vector<2x16xf32>
    %502 = arith.mulf %420, %501 : vector<2x16xf32>
    %503 = arith.addf %502, %423 : vector<2x16xf32>
    %504 = vector.extract_strided_slice %503 {offsets = [0, 0], sizes = [2, 4], strides = [1, 1]} : vector<2x16xf32> to vector<2x4xf32>
    %505 = vector.extract_strided_slice %503 {offsets = [0, 4], sizes = [2, 4], strides = [1, 1]} : vector<2x16xf32> to vector<2x4xf32>
    %506 = vector.extract_strided_slice %503 {offsets = [0, 8], sizes = [2, 4], strides = [1, 1]} : vector<2x16xf32> to vector<2x4xf32>
    %507 = vector.extract_strided_slice %503 {offsets = [0, 12], sizes = [2, 4], strides = [1, 1]} : vector<2x16xf32> to vector<2x4xf32>
    %508 = arith.mulf %505, %481 : vector<2x4xf32>
    %509 = arith.mulf %504, %506 : vector<2x4xf32>
    %510 = arith.addf %508, %509 : vector<2x4xf32>
    %511 = math.tanh %510 : vector<2x4xf32>
    %512 = arith.mulf %507, %511 : vector<2x4xf32>
    %513 = vector.extract_strided_slice %512 {offsets = [0, 0], sizes = [2, 1], strides = [1, 1]} : vector<2x4xf32> to vector<2x1xf32>
    %514 = vector.broadcast %513 : vector<2x1xf32> to vector<2x16xf32>
    %515 = arith.mulf %514, %402 : vector<2x16xf32>
    %516 = vector.extract_strided_slice %512 {offsets = [0, 1], sizes = [2, 1], strides = [1, 1]} : vector<2x4xf32> to vector<2x1xf32>
    %517 = vector.broadcast %516 : vector<2x1xf32> to vector<2x16xf32>
    %518 = arith.mulf %517, %405 : vector<2x16xf32>
    %519 = vector.extract_strided_slice %512 {offsets = [0, 2], sizes = [2, 1], strides = [1, 1]} : vector<2x4xf32> to vector<2x1xf32>
    %520 = vector.broadcast %519 : vector<2x1xf32> to vector<2x16xf32>
    %521 = arith.mulf %520, %408 : vector<2x16xf32>
    %522 = vector.extract_strided_slice %512 {offsets = [0, 3], sizes = [2, 1], strides = [1, 1]} : vector<2x4xf32> to vector<2x1xf32>
    %523 = vector.broadcast %522 : vector<2x1xf32> to vector<2x16xf32>
    %524 = arith.mulf %523, %411 : vector<2x16xf32>
    %525 = arith.addf %393, %515 : vector<2x16xf32>
    %526 = arith.addf %518, %521 : vector<2x16xf32>
    %527 = arith.addf %525, %526 : vector<2x16xf32>
    %528 = arith.addf %527, %524 : vector<2x16xf32>
    %529 = arith.mulf %420, %528 : vector<2x16xf32>
    %530 = math.tanh %529 : vector<2x16xf32>
    %531 = arith.mulf %420, %530 : vector<2x16xf32>
    %532 = arith.addf %531, %423 : vector<2x16xf32>
    %533 = vector.extract_strided_slice %532 {offsets = [0, 0], sizes = [2, 4], strides = [1, 1]} : vector<2x16xf32> to vector<2x4xf32>
    %534 = vector.extract_strided_slice %532 {offsets = [0, 4], sizes = [2, 4], strides = [1, 1]} : vector<2x16xf32> to vector<2x4xf32>
    %535 = vector.extract_strided_slice %532 {offsets = [0, 8], sizes = [2, 4], strides = [1, 1]} : vector<2x16xf32> to vector<2x4xf32>
    %536 = vector.extract_strided_slice %532 {offsets = [0, 12], sizes = [2, 4], strides = [1, 1]} : vector<2x16xf32> to vector<2x4xf32>
    %537 = arith.mulf %534, %510 : vector<2x4xf32>
    %538 = arith.mulf %533, %535 : vector<2x4xf32>
    %539 = arith.addf %537, %538 : vector<2x4xf32>
    %540 = math.tanh %539 : vector<2x4xf32>
    %541 = arith.mulf %536, %540 : vector<2x4xf32>
    %542 = vector.extract_strided_slice %541 {offsets = [0, 0], sizes = [2, 1], strides = [1, 1]} : vector<2x4xf32> to vector<2x1xf32>
    %543 = vector.broadcast %542 : vector<2x1xf32> to vector<2x16xf32>
    %544 = arith.mulf %543, %402 : vector<2x16xf32>
    %545 = vector.extract_strided_slice %541 {offsets = [0, 1], sizes = [2, 1], strides = [1, 1]} : vector<2x4xf32> to vector<2x1xf32>
    %546 = vector.broadcast %545 : vector<2x1xf32> to vector<2x16xf32>
    %547 = arith.mulf %546, %405 : vector<2x16xf32>
    %548 = vector.extract_strided_slice %541 {offsets = [0, 2], sizes = [2, 1], strides = [1, 1]} : vector<2x4xf32> to vector<2x1xf32>
    %549 = vector.broadcast %548 : vector<2x1xf32> to vector<2x16xf32>
    %550 = arith.mulf %549, %408 : vector<2x16xf32>
    %551 = vector.extract_strided_slice %541 {offsets = [0, 3], sizes = [2, 1], strides = [1, 1]} : vector<2x4xf32> to vector<2x1xf32>
    %552 = vector.broadcast %551 : vector<2x1xf32> to vector<2x16xf32>
    %553 = arith.mulf %552, %411 : vector<2x16xf32>
    %554 = arith.addf %394, %544 : vector<2x16xf32>
    %555 = arith.addf %547, %550 : vector<2x16xf32>
    %556 = arith.addf %554, %555 : vector<2x16xf32>
    %557 = arith.addf %556, %553 : vector<2x16xf32>
    %558 = arith.mulf %420, %557 : vector<2x16xf32>
    %559 = math.tanh %558 : vector<2x16xf32>
    %560 = arith.mulf %420, %559 : vector<2x16xf32>
    %561 = arith.addf %560, %423 : vector<2x16xf32>
    %562 = vector.extract_strided_slice %561 {offsets = [0, 0], sizes = [2, 4], strides = [1, 1]} : vector<2x16xf32> to vector<2x4xf32>
    %563 = vector.extract_strided_slice %561 {offsets = [0, 4], sizes = [2, 4], strides = [1, 1]} : vector<2x16xf32> to vector<2x4xf32>
    %564 = vector.extract_strided_slice %561 {offsets = [0, 8], sizes = [2, 4], strides = [1, 1]} : vector<2x16xf32> to vector<2x4xf32>
    %565 = vector.extract_strided_slice %561 {offsets = [0, 12], sizes = [2, 4], strides = [1, 1]} : vector<2x16xf32> to vector<2x4xf32>
    %566 = arith.mulf %563, %539 : vector<2x4xf32>
    %567 = arith.mulf %562, %564 : vector<2x4xf32>
    %568 = arith.addf %566, %567 : vector<2x4xf32>
    %569 = math.tanh %568 : vector<2x4xf32>
    %570 = arith.mulf %565, %569 : vector<2x4xf32>
    %571 = vector.extract_strided_slice %570 {offsets = [0, 0], sizes = [2, 1], strides = [1, 1]} : vector<2x4xf32> to vector<2x1xf32>
    %572 = vector.broadcast %571 : vector<2x1xf32> to vector<2x16xf32>
    %573 = arith.mulf %572, %402 : vector<2x16xf32>
    %574 = vector.extract_strided_slice %570 {offsets = [0, 1], sizes = [2, 1], strides = [1, 1]} : vector<2x4xf32> to vector<2x1xf32>
    %575 = vector.broadcast %574 : vector<2x1xf32> to vector<2x16xf32>
    %576 = arith.mulf %575, %405 : vector<2x16xf32>
    %577 = vector.extract_strided_slice %570 {offsets = [0, 2], sizes = [2, 1], strides = [1, 1]} : vector<2x4xf32> to vector<2x1xf32>
    %578 = vector.broadcast %577 : vector<2x1xf32> to vector<2x16xf32>
    %579 = arith.mulf %578, %408 : vector<2x16xf32>
    %580 = vector.extract_strided_slice %570 {offsets = [0, 3], sizes = [2, 1], strides = [1, 1]} : vector<2x4xf32> to vector<2x1xf32>
    %581 = vector.broadcast %580 : vector<2x1xf32> to vector<2x16xf32>
    %582 = arith.mulf %581, %411 : vector<2x16xf32>
    %583 = arith.addf %395, %573 : vector<2x16xf32>
    %584 = arith.addf %576, %579 : vector<2x16xf32>
    %585 = arith.addf %583, %584 : vector<2x16xf32>
    %586 = arith.addf %585, %582 : vector<2x16xf32>
    %587 = arith.mulf %420, %586 : vector<2x16xf32>
    %588 = math.tanh %587 : vector<2x16xf32>
    %589 = arith.mulf %420, %588 : vector<2x16xf32>
    %590 = arith.addf %589, %423 : vector<2x16xf32>
    %591 = vector.extract_strided_slice %590 {offsets = [0, 0], sizes = [2, 4], strides = [1, 1]} : vector<2x16xf32> to vector<2x4xf32>
    %592 = vector.extract_strided_slice %590 {offsets = [0, 4], sizes = [2, 4], strides = [1, 1]} : vector<2x16xf32> to vector<2x4xf32>
    %593 = vector.extract_strided_slice %590 {offsets = [0, 8], sizes = [2, 4], strides = [1, 1]} : vector<2x16xf32> to vector<2x4xf32>
    %594 = vector.extract_strided_slice %590 {offsets = [0, 12], sizes = [2, 4], strides = [1, 1]} : vector<2x16xf32> to vector<2x4xf32>
    %595 = arith.mulf %592, %568 : vector<2x4xf32>
    %596 = arith.mulf %591, %593 : vector<2x4xf32>
    %597 = arith.addf %595, %596 : vector<2x4xf32>
    %598 = math.tanh %597 : vector<2x4xf32>
    %599 = arith.mulf %594, %598 : vector<2x4xf32>
    %600 = vector.extract_strided_slice %599 {offsets = [0, 0], sizes = [2, 1], strides = [1, 1]} : vector<2x4xf32> to vector<2x1xf32>
    %601 = vector.broadcast %600 : vector<2x1xf32> to vector<2x16xf32>
    %602 = arith.mulf %601, %402 : vector<2x16xf32>
    %603 = vector.extract_strided_slice %599 {offsets = [0, 1], sizes = [2, 1], strides = [1, 1]} : vector<2x4xf32> to vector<2x1xf32>
    %604 = vector.broadcast %603 : vector<2x1xf32> to vector<2x16xf32>
    %605 = arith.mulf %604, %405 : vector<2x16xf32>
    %606 = vector.extract_strided_slice %599 {offsets = [0, 2], sizes = [2, 1], strides = [1, 1]} : vector<2x4xf32> to vector<2x1xf32>
    %607 = vector.broadcast %606 : vector<2x1xf32> to vector<2x16xf32>
    %608 = arith.mulf %607, %408 : vector<2x16xf32>
    %609 = vector.extract_strided_slice %599 {offsets = [0, 3], sizes = [2, 1], strides = [1, 1]} : vector<2x4xf32> to vector<2x1xf32>
    %610 = vector.broadcast %609 : vector<2x1xf32> to vector<2x16xf32>
    %611 = arith.mulf %610, %411 : vector<2x16xf32>
    %612 = arith.addf %396, %602 : vector<2x16xf32>
    %613 = arith.addf %605, %608 : vector<2x16xf32>
    %614 = arith.addf %612, %613 : vector<2x16xf32>
    %615 = arith.addf %614, %611 : vector<2x16xf32>
    %616 = arith.mulf %420, %615 : vector<2x16xf32>
    %617 = math.tanh %616 : vector<2x16xf32>
    %618 = arith.mulf %420, %617 : vector<2x16xf32>
    %619 = arith.addf %618, %423 : vector<2x16xf32>
    %620 = vector.extract_strided_slice %619 {offsets = [0, 0], sizes = [2, 4], strides = [1, 1]} : vector<2x16xf32> to vector<2x4xf32>
    %621 = vector.extract_strided_slice %619 {offsets = [0, 4], sizes = [2, 4], strides = [1, 1]} : vector<2x16xf32> to vector<2x4xf32>
    %622 = vector.extract_strided_slice %619 {offsets = [0, 8], sizes = [2, 4], strides = [1, 1]} : vector<2x16xf32> to vector<2x4xf32>
    %623 = vector.extract_strided_slice %619 {offsets = [0, 12], sizes = [2, 4], strides = [1, 1]} : vector<2x16xf32> to vector<2x4xf32>
    %624 = arith.mulf %621, %597 : vector<2x4xf32>
    %625 = arith.mulf %620, %622 : vector<2x4xf32>
    %626 = arith.addf %624, %625 : vector<2x4xf32>
    %627 = math.tanh %626 : vector<2x4xf32>
    %628 = arith.mulf %623, %627 : vector<2x4xf32>
    %629 = vector.extract_strided_slice %628 {offsets = [0, 0], sizes = [2, 1], strides = [1, 1]} : vector<2x4xf32> to vector<2x1xf32>
    %630 = vector.broadcast %629 : vector<2x1xf32> to vector<2x16xf32>
    %631 = arith.mulf %630, %402 : vector<2x16xf32>
    %632 = vector.extract_strided_slice %628 {offsets = [0, 1], sizes = [2, 1], strides = [1, 1]} : vector<2x4xf32> to vector<2x1xf32>
    %633 = vector.broadcast %632 : vector<2x1xf32> to vector<2x16xf32>
    %634 = arith.mulf %633, %405 : vector<2x16xf32>
    %635 = vector.extract_strided_slice %628 {offsets = [0, 2], sizes = [2, 1], strides = [1, 1]} : vector<2x4xf32> to vector<2x1xf32>
    %636 = vector.broadcast %635 : vector<2x1xf32> to vector<2x16xf32>
    %637 = arith.mulf %636, %408 : vector<2x16xf32>
    %638 = vector.extract_strided_slice %628 {offsets = [0, 3], sizes = [2, 1], strides = [1, 1]} : vector<2x4xf32> to vector<2x1xf32>
    %639 = vector.broadcast %638 : vector<2x1xf32> to vector<2x16xf32>
    %640 = arith.mulf %639, %411 : vector<2x16xf32>
    %641 = arith.addf %397, %631 : vector<2x16xf32>
    %642 = arith.addf %634, %637 : vector<2x16xf32>
    %643 = arith.addf %641, %642 : vector<2x16xf32>
    %644 = arith.addf %643, %640 : vector<2x16xf32>
    %645 = arith.mulf %420, %644 : vector<2x16xf32>
    %646 = math.tanh %645 : vector<2x16xf32>
    %647 = arith.mulf %420, %646 : vector<2x16xf32>
    %648 = arith.addf %647, %423 : vector<2x16xf32>
    %649 = vector.extract_strided_slice %648 {offsets = [0, 0], sizes = [2, 4], strides = [1, 1]} : vector<2x16xf32> to vector<2x4xf32>
    %650 = vector.extract_strided_slice %648 {offsets = [0, 4], sizes = [2, 4], strides = [1, 1]} : vector<2x16xf32> to vector<2x4xf32>
    %651 = vector.extract_strided_slice %648 {offsets = [0, 8], sizes = [2, 4], strides = [1, 1]} : vector<2x16xf32> to vector<2x4xf32>
    %652 = vector.extract_strided_slice %648 {offsets = [0, 12], sizes = [2, 4], strides = [1, 1]} : vector<2x16xf32> to vector<2x4xf32>
    %653 = arith.mulf %650, %626 : vector<2x4xf32>
    %654 = arith.mulf %649, %651 : vector<2x4xf32>
    %655 = arith.addf %653, %654 : vector<2x4xf32>
    %656 = math.tanh %655 : vector<2x4xf32>
    %657 = arith.mulf %652, %656 : vector<2x4xf32>
    %c0_28 = arith.constant 0 : index
    %c0_29 = arith.constant 0 : index
    %658 = vector.load %arg2[%c0_28, %c0_29] : memref<2x4xf32, #tpu.memory_space<vmem>>, vector<2x4xf32>
    tpu.vector_store %arg2[%c0_28, %c0_29], %657 {strides = array<i32>} : memref<2x4xf32, #tpu.memory_space<vmem>>, vector<2x4xf32>,
    return
  }
}

</mosaic_0001>

<bundles_post_ra>
// kernel: tpu_custom_call.1
= control target key start
LH: loop header
LB: loop body
LE: loop exit
PB: predicated region body
PF: predicated region fallthrough
CT: control target
= control target key end

     0   :  { %vm21_vm0 = vcmask 130048   ;;  %s2992_s0 = inlined_call_operand.vmem [shape: f32[16,18], index: 0, kind: input, shape index: {}]   ;;  %s2993_s1 = inlined_call_operand.vmem [shape: f32[96,64], index: 1, kind: input, shape index: {}]   ;;  %s2994_s2 = inlined_call_operand.hbm [shape: f32[2,4], index: 2, kind: output, shape index: {}]  }
   0x1   :  { %v15_v0 = vld [vmem:[%s2993_s1 + $0x8] sm:$0xff]  ;;  %v14_v1 = vld [vmem:[%s2993_s1] sm:$0xff] }
   0x2   :  { %v2104_v2 = vld [vmem:[%s2992_s0] sm:$0xff]  ;;  %1739 = vmatprep.subr.mxu0 %v15_v0  ;;  %v112_v3 = vld [vmem:[%s2993_s1 + $0x48] sm:$0xff] }
   0x3   :  { %3139 = vst [vmem:[#allocation5_spill] sm:$0xff] %v2104_v2  ;;  %1743 = vmatprep.mubr.msk.f32.mxu0 %vm21_vm0, %v2104_v2  ;;  %v111_v4 = vld [vmem:[%s2993_s1 + $0x40] sm:$0xff]  ;;  %1740 = vmatpush3.msra.mxu0 %v15_v0  ;;  %v13_v5 = vld [vmem:[%s2992_s0 + $0x8] sm:$0xff] }
   0x4   :  { %1746 = vmatprep.subr.mxu1 %v112_v3 }
   0x5   :  { %7 = vsyncpa [#allocation3], 0  ;;  %1741 = vmatprep.subr.mxu0 %v14_v1  ;;  %1747 = vmatpush3.msra.mxu1 %v112_v3  ;;  %v2119_v6 = vld [vmem:[%s2993_s1 + $0x38] sm:$0xff]  ;;  %v2124_v7 = vld [vmem:[%s2993_s1 + $0x30] sm:$0xff]  ;;  %vm118_vm1 = vcmask 523264   ;;  %v3014_v19 = vmov 2  }
   0x6   :  { %3140 = vst [vmem:[#allocation6_spill] sm:$0xff] %v2119_v6  ;;  %1742 = vmatpush3.msra.mxu0 %v14_v1  ;;  %1748 = vmatprep.subr.mxu1 %v111_v4  ;;  %3141 = vst [vmem:[#allocation7_spill] sm:$0xff] %v2124_v7  ;;  %v2133_v8 = vld [vmem:[%s2993_s1 + $0x28] sm:$0xff]  ;;  %v2140_v9 = vld [vmem:[%s2993_s1 + $0x20] sm:$0xff]  ;;  %v3019_v20 = vmov 0   ;;  %v3013_v27 = vmov 3  }
   0x7   :  { %1744 = vmatmul.mubr.msk.f32.vlgmr.msra.gmra.mxu0 %vm21_vm0, %v13_v5  ;;  %1749 = vmatpush3.msra.mxu1 %v111_v4  ;;  %v2147_v10 = vld [vmem:[%s2993_s1 + $0x18] sm:$0xff]  ;;  %v2154_v11 = vld [vmem:[%s2993_s1 + $0x10] sm:$0xff]  ;;  %v3020_v28 = vmov 1   ;;  %v3018_v29 = vmov 4   ;;  %v3012_v30 = vmov 5   ;;  %v3011_v31 = vmov 6  }
   0x8   :  { %1750 = vmatprep.subr.mxu1 %v2119_v6  ;;  %v1716_v12 = vld [vmem:[%s2993_s1 + $0x50] ss:$0 sm:$0xff]  ;;  %1825 = vset.pattern.permute.xlu1 %v3014_v19  ;;  %v1719_v21 = vld [vmem:[%s2993_s1 + $0x51] ss:$0 sm:$0xff]  ;;  %v3010_v32 = vmov 8   ;;  %v3017_v33 = vmov 7  }
   0x9   :  { %1751 = vmatpush3.msra.mxu1 %v2119_v6  ;;  %1823 = vset.pattern.permute.xlu0 %v3019_v20  ;;  %v3008_v34 = vmov 11   ;;  %v3009_v35 = vmov 9   ;;  %v3023_v36 = vmov 14   ;;  %v3016_v37 = vmov 10   ;;  %v1722_v47 = vld [vmem:[%s2993_s1 + $0x52] ss:$0 sm:$0xff] }
   0xa   :  { %1752 = vmatprep.subr.mxu1 %v2124_v7  ;;  %v3036_v38 = vmov 17   ;;  %v3026_v39 = vmov 12   ;;  %v3006_v40 = vmov 20   ;;  %v3028_v41 = vmov 13   ;;  %s2045_s11 = smov 32   ;;  %s2071_s16 = smov 16  }
   0xb   :  { %1753 = vmatpush3.msra.mxu1 %v2124_v7  ;;  %v3004_v42 = vmov 23   ;;  %v3021_v43 = vmov 15   ;;  %v3002_v44 = vmov 26   ;;  %v3032_v45 = vmov 16   ;;  %s2072_s21 = smov 96   ;;  %s2073_s22 = smov 112  }
   0xc   :  { %1754 = vmatprep.subr.mxu1 %v2133_v8  ;;  %v3000_v46 = vmov 29   ;;  %v3007_v48 = vmov 18   ;;  %v3015_v49 = vmov 19   ;;  %v3005_v50 = vmov 21   ;;  %s2076_s25 = smov 4   ;;  %s2077_s26 = smov 8  }
   0xd   :  { %1755 = vmatpush3.msra.mxu1 %v2133_v8  ;;  %v2998_v51 = vmov 22   ;;  %v3003_v52 = vmov 24   ;;  %v2997_v53 = vmov 25   ;;  %v3001_v54 = vmov 27   ;;  %s2079_s29 = smov [#allocation2]  }
   0xe   :  { %1756 = vmatprep.subr.mxu1 %v2140_v9  ;;  %v2996_v55 = vmov 28   ;;  %v2999_v56 = vmov 30   ;;  %v2995_v57 = vmov 31   ;;  %v3030_v58 = vmov 32   ;;  %s1708_s30 = sshll.u32 %s2079_s29, 4  ;;  %s1709_s30 = int_to_ptr.vmem [resolvable:$true] %s1708_s30 }
   0xf   :  { %1757 = vmatpush3.msra.mxu1 %v2140_v9  ;;  %v3034_v59 = vmov 33   ;;  %vm1700_vm5 = vcmask 31750   ;;  %s2000_s3 = scalar_lea.vmem %s1709_s30, 32  ;;  %p2005_p1 = scmp.lt.s32.totalorder %s1709_s30, %s1709_s30 }
  0x10   :  { %1758 = vmatprep.subr.mxu1 %v2147_v10  ;;  %p2001_p0 = scmp.ne.s32.totalorder %s1709_s30, %s2000_s3  ;;  %p2006_p2 = scmp.lt.s32.totalorder %s2000_s3, %s2000_s3 }
  0x11   :  { %1759 = vmatpush3.msra.mxu1 %v2147_v10 }
  0x12   :  { %1760 = vmatprep.subr.mxu1 %v2154_v11  ;;  %p2007_p3 = por %p2006_p2, %p2005_p1 }
  0x13   :  { %1761 = vmatpush3.msra.mxu1 %v2154_v11 }
  0x14   :  { %p2008_p4 = pnand %p2007_p3, %p2001_p0 }
  0xc7   :  { %v1745_v13 = vpop.f32.mrf.mxu0 }
  0xc8   :  { %v100_v14 = vadd.f32 %v1745_v13, %v1716_v12 }
  0xc9   :  { %v94_v15 = vpop.f32.mrf.mxu0 }
  0xca   :  { %v95_v16 = vadd.f32 %v1716_v12, %v94_v15  ;;  %v104_v18 = vmax.f32 %v100_v14, 0.0 }
  0xcc   :  { %v103_v17 = vmax.f32 %v95_v16, 0.0 }
  0xce   :  { %1762 = vmatprep.mubr.msk.f32.mxu1 %vm118_vm1, %v103_v17 }
  0xcf   :  { %1763 = vmatmul.mubr.msk.f32.vlgmr.msra.gmra.mxu1 %vm118_vm1, %v104_v18 }
 0x18f   :  { %v1764_v22 = vpop.f32.mrf.mxu1 }
 0x190   :  { %v2166_v23 = vadd.f32 %v1764_v22, %v1719_v21 }
 0x191   :  { %v191_v24 = vpop.f32.mrf.mxu1 }
 0x192   :  { %3142 = vst [vmem:[#allocation8_spill] sm:$0xff] %v2166_v23  ;;  %v192_v25 = vadd.f32 %v1719_v21, %v191_v24 }
 0x194   :  { %v2168_v26 = vmax.f32 %v192_v25, 0.0 }
 0x196   :  { %242 = vperm.xlu1 %1825, %v2168_v26   ;;  %213 = vperm.xlu0 %1823, %v2168_v26  }
 0x19a   :  { %1826 = vset.pattern.permute.xlu1 %v3013_v27  ;;  %1824 = vset.pattern.permute.xlu0 %v3020_v28 }
 0x19b   :  { %256 = vperm.xlu1 %1826, %v2168_v26   ;;  %228 = vperm.xlu0 %1824, %v2168_v26  }
 0x19f   :  { %1827 = vset.pattern.permute.xlu1 %v3018_v29  ;;  %1828 = vset.pattern.permute.xlu0 %v3012_v30 }
 0x1a0   :  { %270 = vperm.xlu1 %1827, %v2168_v26   ;;  %284 = vperm.xlu0 %1828, %v2168_v26  }
 0x1a4   :  { %1829 = vset.pattern.permute.xlu1 %v3011_v31  ;;  %1831 = vset.pattern.permute.xlu0 %v3010_v32 }
 0x1a5   :  { %298 = vperm.xlu1 %1829, %v2168_v26   ;;  %326 = vperm.xlu0 %1831, %v2168_v26  }
 0x1a9   :  { %1830 = vset.pattern.permute.xlu1 %v3017_v33  ;;  %1834 = vset.pattern.permute.xlu0 %v3008_v34 }
 0x1aa   :  { %312 = vperm.xlu1 %1830, %v2168_v26   ;;  %368 = vperm.xlu0 %1834, %v2168_v26  }
 0x1ae   :  { %1832 = vset.pattern.permute.xlu1 %v3009_v35  ;;  %1837 = vset.pattern.permute.xlu0 %v3023_v36 }
 0x1af   :  { %340 = vperm.xlu1 %1832, %v2168_v26   ;;  %410 = vperm.xlu0 %1837, %v2168_v26  }
 0x1b3   :  { %1833 = vset.pattern.permute.xlu1 %v3016_v37  ;;  %1840 = vset.pattern.permute.xlu0 %v3036_v38 }
 0x1b4   :  { %354 = vperm.xlu1 %1833, %v2168_v26   ;;  %452 = vperm.xlu0 %1840, %v2168_v26  }
 0x1b8   :  { %1835 = vset.pattern.permute.xlu1 %v3026_v39  ;;  %1843 = vset.pattern.permute.xlu0 %v3006_v40 }
 0x1b9   :  { %382 = vperm.xlu1 %1835, %v2168_v26   ;;  %494 = vperm.xlu0 %1843, %v2168_v26  }
 0x1bd   :  { %1836 = vset.pattern.permute.xlu1 %v3028_v41  ;;  %1846 = vset.pattern.permute.xlu0 %v3004_v42 }
 0x1be   :  { %396 = vperm.xlu1 %1836, %v2168_v26   ;;  %536 = vperm.xlu0 %1846, %v2168_v26  }
 0x1c2   :  { %1838 = vset.pattern.permute.xlu1 %v3021_v43  ;;  %1849 = vset.pattern.permute.xlu0 %v3002_v44 }
 0x1c3   :  { %424 = vperm.xlu1 %1838, %v2168_v26   ;;  %578 = vperm.xlu0 %1849, %v2168_v26  }
 0x1c7   :  { %1839 = vset.pattern.permute.xlu1 %v3032_v45  ;;  %1852 = vset.pattern.permute.xlu0 %v3000_v46 }
 0x1c8   :  { %438 = vperm.xlu1 %1839, %v2168_v26   ;;  %620 = vperm.xlu0 %1852, %v2168_v26  }
 0x1cc   :  { %1841 = vset.pattern.permute.xlu1 %v3007_v48  ;;  %724 = vrot.lane.b32.xlu0 %v1722_v47, %s2045_s11 }
 0x1cd   :  { %466 = vperm.xlu1 %1841, %v2168_v26   ;;  %1856 = vset.pattern.permute.xlu0 %v3034_v59 }
 0x1d1   :  { %1842 = vset.pattern.permute.xlu1 %v3015_v49 }
 0x1d2   :  { %480 = vperm.xlu1 %1842, %v2168_v26  }
 0x1d6   :  { %1844 = vset.pattern.permute.xlu1 %v3005_v50 }
 0x1d7   :  { %508 = vperm.xlu1 %1844, %v2168_v26  }
 0x1db   :  { %1845 = vset.pattern.permute.xlu1 %v2998_v51 }
 0x1dc   :  { %522 = vperm.xlu1 %1845, %v2168_v26  }
 0x1e0   :  { %1847 = vset.pattern.permute.xlu1 %v3003_v52 }
 0x1e1   :  { %550 = vperm.xlu1 %1847, %v2168_v26  }
 0x1e5   :  { %1848 = vset.pattern.permute.xlu1 %v2997_v53 }
 0x1e6   :  { %564 = vperm.xlu1 %1848, %v2168_v26  }
 0x1ea   :  { %1850 = vset.pattern.permute.xlu1 %v3001_v54 }
 0x1eb   :  { %592 = vperm.xlu1 %1850, %v2168_v26  }
 0x1ef   :  { %1851 = vset.pattern.permute.xlu1 %v2996_v55 }
 0x1f0   :  { %606 = vperm.xlu1 %1851, %v2168_v26  }
 0x1f4   :  { %1853 = vset.pattern.permute.xlu1 %v2999_v56 }
 0x1f5   :  { %634 = vperm.xlu1 %1853, %v2168_v26  }
 0x1f9   :  { %1854 = vset.pattern.permute.xlu1 %v2995_v57 }
 0x1fa   :  { %648 = vperm.xlu1 %1854, %v2168_v26   ;;  %v3025_v26 = vlaneseq }
 0x1fc   :  { %v222_v55 = vshrl.u32 %v3025_v26, 7 }
 0x1fe   :  { %1855 = vset.pattern.permute.xlu1 %v3030_v58  ;;  %v2279_v51 = vsub.s32 2, %v222_v55  ;;  %v2281_v56 = vsub.s32 0, %v222_v55  ;;  %v2283_v46 = vsub.s32 3, %v222_v55  ;;  %v2285_v54 = vsub.s32 1, %v222_v55 }
 0x1ff   :  { %v2287_v44 = vsub.s32 4, %v222_v55  ;;  %v2291_v42 = vsub.s32 5, %v222_v55  ;;  %v2293_v50 = vsub.s32 6, %v222_v55  ;;  %v2295_v40 = vsub.s32 7, %v222_v55 }
 0x200   :  { %3144 = vst [vmem:[#allocation10_spill] sm:$0xff] %v2279_v51  ;;  %3145 = vst [vmem:[#allocation11_spill] sm:$0xff] %v2281_v56  ;;  %v2301_v34 = vrot.slane %v2154_v11, %v2279_v51  ;;  %v2305_v35 = vrot.slane %v2154_v11, %v2281_v56  ;;  %v2309_v32 = vrot.slane %v2154_v11, %v2283_v46 }
 0x201   :  { %3146 = vst [vmem:[#allocation12_spill] sm:$0xff] %v2285_v54  ;;  %3147 = vst [vmem:[#allocation13_spill] sm:$0xff] %v2291_v42  ;;  %v2313_v31 = vrot.slane %v2154_v11, %v2285_v54  ;;  %v2317_v55 = vrot.slane %v2154_v11, %v2287_v44  ;;  %v2321_v30 = vrot.slane %v2154_v11, %v2291_v42 }
 0x202   :  { %3149 = vst [vmem:[#allocation15_spill] sm:$0xff] %v2301_v34  ;;  %3150 = vst [vmem:[#allocation16_spill] sm:$0xff] %v2305_v35  ;;  %v2325_v27 = vrot.slane %v2154_v11, %v2293_v50  ;;  %v2329_v19 = vrot.slane %v2147_v10, %v2281_v56  ;;  %v2333_v49 = vrot.slane %v2154_v11, %v2295_v40 }
 0x203   :  { %3151 = vst [vmem:[#allocation17_spill] sm:$0xff] %v2309_v32  ;;  %3152 = vst [vmem:[#allocation18_spill] sm:$0xff] %v2321_v30  ;;  %v2337_v37 = vrot.slane %v2147_v10, %v2283_v46  ;;  %v2341_v33 = vrot.slane %v2147_v10, %v2285_v54  ;;  %v2345_v29 = vrot.slane %v2147_v10, %v2293_v50 }
 0x204   :  { %3153 = vst [vmem:[#allocation19_spill] sm:$0xff] %v2333_v49  ;;  %v2349_v20 = vrot.slane %v2147_v10, %v2279_v51  ;;  %v2353_v11 = vrot.slane %v2140_v9, %v2285_v54  ;;  %v2357_v36 = vrot.slane %v2147_v10, %v2287_v44  ;;  %v2361_v26 = vrot.slane %v2140_v9, %v2287_v44 }
 0x205   :  { %3154 = vst [vmem:[#allocation20_spill] sm:$0xff] %v2341_v33  ;;  %v2365_v39 = vrot.slane %v2147_v10, %v2291_v42  ;;  %v2369_v41 = vrot.slane %v2140_v9, %v2295_v40  ;;  %v2373_v58 = vrot.slane %v2147_v10, %v2295_v40  ;;  %v2377_v45 = vrot.slane %v2133_v8, %v2279_v51 }
 0x206   :  { %3155 = vst [vmem:[#allocation21_spill] sm:$0xff] %v2353_v11  ;;  %3156 = vst [vmem:[#allocation22_spill] sm:$0xff] %v2361_v26  ;;  %v2381_v59 = vrot.slane %v2140_v9, %v2281_v56  ;;  %v2385_v38 = vrot.slane %v2133_v8, %v2291_v42  ;;  %v2389_v23 = vrot.slane %v2140_v9, %v2279_v51 }
 0x207   :  { %3157 = vst [vmem:[#allocation23_spill] sm:$0xff] %v2373_v58  ;;  %3158 = vst [vmem:[#allocation24_spill] sm:$0xff] %v2377_v45  ;;  %v2393_v10 = vrot.slane %v2140_v9, %v2283_v46  ;;  %v2397_v6 = vrot.slane %v2140_v9, %v2291_v42  ;;  %v2402_v2 = vrot.slane %v2140_v9, %v2293_v50 }
 0x208   :  { %3159 = vst [vmem:[#allocation25_spill] sm:$0xff] %v2385_v38  ;;  %3160 = vst [vmem:[#allocation26_spill] sm:$0xff] %v2389_v23  ;;  %v2410_v51 = vrot.slane %v2133_v8, %v2285_v54 }
 0x20a   :  { %3162 = vst [vmem:[#allocation28_spill] sm:$0xff] %v2410_v51 }
 0x211   :  { %v2238_v60 = vpop.permute.xlu1 %242  ;;  %v2252_v5 = vpop.permute.xlu0 %213 }
 0x216   :  { %v257_v61 = vpop.permute.xlu1 %256  ;;  %v229_v13 = vpop.permute.xlu0 %228 }
 0x217   :  { %v267_v7 = vmul.f32 %v2309_v32, %v257_v61  ;;  %v239_v38 = vmul.f32 %v2313_v31, %v229_v13  ;;  %v2418_v61 = vrot.slane %v2133_v8, %v2283_v46  ;;  %v253_v32 = vmul.f32 %v2301_v34, %v2238_v60 }
 0x218   :  { %v2436_v60 = vrot.slane %v2133_v8, %v2293_v50 }
 0x219   :  { %3163 = vst [vmem:[#allocation29_spill] sm:$0xff] %v2418_v61 }
 0x21a   :  { %3165 = vst [vmem:[#allocation31_spill] sm:$0xff] %v2436_v60 }
 0x21b   :  { %v2240_v62 = vpop.permute.xlu1 %270  ;;  %v285_v15 = vpop.permute.xlu0 %284 }
 0x21c   :  { %v281_v42 = vmul.f32 %v2317_v55, %v2240_v62  ;;  %v2428_v62 = vrot.slane %v2133_v8, %v2287_v44 }
 0x21e   :  { %3164 = vst [vmem:[#allocation30_spill] sm:$0xff] %v2428_v62 }
 0x220   :  { %v2242_v63 = vpop.permute.xlu1 %298  ;;  %v2260_v17 = vpop.permute.xlu0 %326 }
 0x221   :  { %v309_v34 = vmul.f32 %v2325_v27, %v2242_v63 }
 0x225   :  { %v2244_v0 = vpop.permute.xlu1 %312  ;;  %v2266_v22 = vpop.permute.xlu0 %368 }
 0x22a   :  { %v2246_v1 = vpop.permute.xlu1 %340  ;;  %v2270_v25 = vpop.permute.xlu0 %410 }
 0x22b   :  { %v351_v54 = vmul.f32 %v2341_v33, %v2246_v1  ;;  %v663_v1 = vadd.f32 %v267_v7, %v253_v32  ;;  %v337_v33 = vmul.f32 %v2329_v19, %v2260_v17  ;;  %v379_v7 = vmul.f32 %v2337_v37, %v2266_v22 }
 0x22d   :  { %v669_v32 = vadd.f32 %v351_v54, %v337_v33 }
 0x22f   :  { %v2248_v3 = vpop.permute.xlu1 %354  ;;  %v2274_v57 = vpop.permute.xlu0 %452 }
 0x234   :  { %v2250_v4 = vpop.permute.xlu1 %382  ;;  %v2289_v52 = vpop.permute.xlu0 %494 }
 0x235   :  { %v505_v22 = vmul.f32 %v2361_v26, %v2289_v52 }
 0x239   :  { %v2254_v12 = vpop.permute.xlu1 %396  ;;  %v537_v28 = vpop.permute.xlu0 %536 }
 0x23a   :  { %v547_v33 = vmul.f32 %v2369_v41, %v537_v28 }
 0x23e   :  { %v2256_v14 = vpop.permute.xlu1 %424  ;;  %v579_v13 = vpop.permute.xlu0 %578 }
 0x243   :  { %v2258_v16 = vpop.permute.xlu1 %438  ;;  %v621_v54 = vpop.permute.xlu0 %620 }
 0x248   :  { %v2262_v18 = vpop.permute.xlu1 %466 }
 0x24d   :  { %v2264_v21 = vpop.permute.xlu1 %480 }
 0x252   :  { %v2268_v24 = vpop.permute.xlu1 %508 }
 0x257   :  { %v2272_v47 = vpop.permute.xlu1 %522 }
 0x258   :  { %v533_v63 = vmul.f32 %v2402_v2, %v2272_v47 }
 0x25c   :  { %v2277_v53 = vpop.permute.xlu1 %550 }
 0x25d   :  { %3143 = vst [vmem:[#allocation9_spill] sm:$0xff] %v2277_v53  ;;  %v2406_v53 = vrot.slane %v2133_v8, %v2281_v56  ;;  %v323_v56 = vmul.f32 %v2333_v49, %v2244_v0  ;;  %v2440_v0 = vrot.slane %v2133_v8, %v2295_v40  ;;  %v407_v49 = vmul.f32 %v2365_v39, %v2254_v12 }
 0x25f   :  { %3161 = vst [vmem:[#allocation27_spill] sm:$0xff] %v2406_v53  ;;  %3166 = vst [vmem:[#allocation32_spill] sm:$0xff] %v2440_v0  ;;  %v667_v8 = vadd.f32 %v323_v56, %v309_v34  ;;  %v463_v34 = vmul.f32 %v2353_v11, %v2274_v57 }
 0x261   :  { %v2297_v48 = vpop.permute.xlu1 %564 }
 0x262   :  { %3148 = vst [vmem:[#allocation14_spill] sm:$0xff] %v2297_v48  ;;  %v295_v48 = vmul.f32 %v2321_v30, %v285_v15  ;;  %v225_v15 = vmul.f32 %v2305_v35, %v2252_v5  ;;  %v435_v30 = vmul.f32 %v2373_v58, %v2256_v14  ;;  %v365_v5 = vmul.f32 %v2349_v20, %v2248_v3 }
 0x263   :  { %v421_v58 = vmul.f32 %v2345_v29, %v2270_v25  ;;  %v393_v3 = vmul.f32 %v2357_v36, %v2250_v4 }
 0x264   :  { %v661_v35 = vadd.f32 %v239_v38, %v225_v15  ;;  %v665_v14 = vadd.f32 %v295_v48, %v281_v42  ;;  %v491_v42 = vmul.f32 %v2393_v10, %v2264_v21  ;;  %v519_v48 = vmul.f32 %v2397_v6, %v2268_v24 }
 0x265   :  { %v675_v38 = vadd.f32 %v435_v30, %v421_v58  ;;  %v671_v12 = vadd.f32 %v379_v7, %v365_v5  ;;  %v673_v4 = vadd.f32 %v407_v49, %v393_v3  ;;  %v449_v30 = vmul.f32 %v2381_v59, %v2258_v16  ;;  %v3169_v7 = vld [vmem:[#allocation9_spill] sm:$0xff] }
 0x266   :  { %v593_v43 = vpop.permute.xlu1 %592  ;;  %v477_v58 = vmul.f32 %v2389_v23, %v2262_v18  ;;  %v589_v21 = vmul.f32 %v2377_v45, %v579_v13  ;;  %v683_v24 = vadd.f32 %v547_v33, %v533_v63  ;;  %v681_v52 = vadd.f32 %v519_v48, %v505_v22 }
 0x267   :  { %v603_v56 = vmul.f32 %v2418_v61, %v593_v43  ;;  %v699_v47 = vadd.f32 %v675_v38, %v673_v4  ;;  %v3168_v43 = vld [vmem:[#allocation25_spill] sm:$0xff]  ;;  %v561_v16 = vmul.f32 %v2406_v53, %v3169_v7  ;;  %v695_v63 = vadd.f32 %v667_v8, %v665_v14 }
 0x268   :  { %v631_v15 = vmul.f32 %v3168_v43, %v621_v54  ;;  %v679_v5 = vadd.f32 %v491_v42, %v477_v58  ;;  %v697_v33 = vadd.f32 %v671_v12, %v669_v32  ;;  %v677_v45 = vadd.f32 %v463_v34, %v449_v30 }
 0x269   :  { %v3167_v25 = vld [vmem:[#allocation14_spill] sm:$0xff]  ;;  %v687_v3 = vadd.f32 %v603_v56, %v589_v21  ;;  %v693_v4 = vadd.f32 %v663_v1, %v661_v35  ;;  %v3080_v32 = vmov 36   ;;  %v3078_v35 = vmov 34  }
 0x26a   :  { %v575_v57 = vmul.f32 %v2410_v51, %v3167_v25  ;;  %v703_v25 = vadd.f32 %v683_v24, %v681_v52  ;;  %v711_v54 = vadd.f32 %v699_v47, %v697_v33  ;;  %v701_v42 = vadd.f32 %v679_v5, %v677_v45  ;;  %v1723_v24 = vld [vmem:[%s2993_s1 + $0x53] ss:$0 sm:$0xff]  ;;  %v3172_v47 = vld [vmem:[#allocation5_spill] sm:$0xff] }
 0x26b   :  { %v607_v9 = vpop.permute.xlu1 %606  ;;  %v709_v58 = vadd.f32 %v695_v63, %v693_v4  ;;  %v3076_v45 = vmov 39   ;;  %v3069_v1 = vmov 42   ;;  %v3072_v12 = vmov 37  }
 0x26c   :  { %v617_v28 = vmul.f32 %v2428_v62, %v607_v9  ;;  %v685_v61 = vadd.f32 %v575_v57, %v561_v16  ;;  %v713_v43 = vadd.f32 %v703_v25, %v701_v42  ;;  %v3068_v34 = vmov 45  }
 0x26d   :  { %v717_v56 = vadd.f32 %v711_v54, %v709_v58  ;;  %v3070_v30 = vmov 38   ;;  %v3067_v57 = vmov 40   ;;  %v3065_v5 = vmov 43  }
 0x26e   :  { %v689_v9 = vadd.f32 %v631_v15, %v617_v28  ;;  %v705_v48 = vadd.f32 %v687_v3, %v685_v61  ;;  %v3074_v61 = vmov 35   ;;  %v3171_v28 = vmov 17  }
 0x26f   :  { %v3173_v15 = vmov 33   ;;  %v3064_v52 = vmov 44   ;;  %v3063_v16 = vmov 46   ;;  %v3062_v3 = vmov 47  }
 0x270   :  { %v635_v17 = vpop.permute.xlu1 %634  ;;  %v3175_v63 = vmov 32  }
 0x271   :  { %v645_v18 = vmul.f32 %v2436_v60, %v635_v17  ;;  %v2481_v17 = vpop.permute.xlu0 %724 }
 0x272   :  { %3170 = vst [vmem:[#allocation14_spill] sm:$0xff] %v2481_v17 }
 0x275   :  { %v649_v49 = vpop.permute.xlu1 %648 }
 0x276   :  { %v659_v13 = vmul.f32 %v2440_v0, %v649_v49 }
 0x278   :  { %v691_v38 = vadd.f32 %v659_v13, %v645_v18  ;;  %v3174_v18 = vmov 16   ;;  %v1724_v13 = vld [vmem:[%s2993_s1 + $0x54] ss:$0 sm:$0xff] }
 0x27a   :  { %v707_v22 = vadd.f32 %v691_v38, %v689_v9 }
 0x27c   :  { %v715_v7 = vadd.f32 %v707_v22, %v705_v48 }
 0x27e   :  { %v719_v21 = vadd.f32 %v715_v7, %v713_v43  ;;  %v3066_v43 = vmov 41  }
 0x280   :  { %v721_v49 = vadd.f32 %v719_v21, %v717_v56 }
 0x282   :  { %v727_v14 = vadd.f32 %v2481_v17, %v721_v49  ;;  %v3176_v49 = vld [vmem:[#allocation7_spill] sm:$0xff] }
 0x284   :  { %v729_v8 = vmax.f32 %v727_v14, 0.0  ;;  %v2513_v14 = vrot.slane %v3176_v49, %v2293_v50 }
 0x286   :  { %755 = vperm.xlu0 %1856, %v729_v8   ;;  %740 = vperm.xlu1 %1855, %v729_v8   ;;  %3177 = vst [vmem:[#allocation9_spill] sm:$0xff] %v2513_v14 }
 0x28a   :  { %1859 = vset.pattern.permute.xlu0 %v3080_v32  ;;  %1857 = vset.pattern.permute.xlu1 %v3078_v35 }
 0x28b   :  { %797 = vperm.xlu0 %1859, %v729_v8   ;;  %769 = vperm.xlu1 %1857, %v729_v8  }
 0x28f   :  { %1862 = vset.pattern.permute.xlu0 %v3076_v45  ;;  %1858 = vset.pattern.permute.xlu1 %v3074_v61 }
 0x290   :  { %839 = vperm.xlu0 %1862, %v729_v8   ;;  %783 = vperm.xlu1 %1858, %v729_v8  }
 0x294   :  { %1865 = vset.pattern.permute.xlu0 %v3069_v1  ;;  %1860 = vset.pattern.permute.xlu1 %v3072_v12  ;;  %v3189_v1 = vld [vmem:[#allocation10_spill] sm:$0xff] }
 0x295   :  { %881 = vperm.xlu0 %1865, %v729_v8   ;;  %811 = vperm.xlu1 %1860, %v729_v8  }
 0x299   :  { %1868 = vset.pattern.permute.xlu0 %v3068_v34  ;;  %1861 = vset.pattern.permute.xlu1 %v3070_v30  ;;  %v2541_v34 = vrot.slane %v3176_v49, %v2287_v44  ;;  %v2545_v30 = vrot.slane %v3176_v49, %v3189_v1 }
 0x29a   :  { %923 = vperm.xlu0 %1868, %v729_v8   ;;  %825 = vperm.xlu1 %1861, %v729_v8  }
 0x29b   :  { %3188 = vst [vmem:[#allocation33_spill] sm:$0xff] %v2541_v34  ;;  %3190 = vst [vmem:[#allocation10_spill] sm:$0xff] %v2545_v30 }
 0x29e   :  { %1863 = vset.pattern.permute.xlu1 %v3067_v57  ;;  %995 = vrot.lane.b32.xlu0 %v1723_v24, %s2045_s11  ;;  %v3179_v24 = vld [vmem:[#allocation13_spill] sm:$0xff] }
 0x29f   :  { %853 = vperm.xlu1 %1863, %v729_v8   ;;  %1872 = vset.pattern.permute.xlu0 %v3171_v28 }
 0x2a2   :  { %1023 = vperm.xlu0 %1872, %v3172_v47  }
 0x2a3   :  { %1864 = vset.pattern.permute.xlu1 %v3066_v43  ;;  %v3186_v43 = vld [vmem:[#allocation11_spill] sm:$0xff] }
 0x2a4   :  { %867 = vperm.xlu1 %1864, %v729_v8   ;;  %v2537_v57 = vrot.slane %v3176_v49, %v3186_v43 }
 0x2a6   :  { %1874 = vset.pattern.permute.xlu0 %v3173_v15  ;;  %3187 = vst [vmem:[#allocation11_spill] sm:$0xff] %v2537_v57 }
 0x2a8   :  { %1866 = vset.pattern.permute.xlu1 %v3065_v5 }
 0x2a9   :  { %895 = vperm.xlu1 %1866, %v729_v8  }
 0x2ad   :  { %1867 = vset.pattern.permute.xlu1 %v3064_v52  ;;  %v3184_v52 = vld [vmem:[#allocation12_spill] sm:$0xff] }
 0x2ae   :  { %909 = vperm.xlu1 %1867, %v729_v8   ;;  %v2533_v5 = vrot.slane %v3176_v49, %v3184_v52 }
 0x2b0   :  { %3185 = vst [vmem:[#allocation12_spill] sm:$0xff] %v2533_v5 }
 0x2b2   :  { %1869 = vset.pattern.permute.xlu1 %v3063_v16 }
 0x2b3   :  { %937 = vperm.xlu1 %1869, %v729_v8  }
 0x2b7   :  { %1870 = vset.pattern.permute.xlu1 %v3062_v3  ;;  %v3182_v3 = vld [vmem:[#allocation6_spill] sm:$0xff] }
 0x2b8   :  { %951 = vperm.xlu1 %1870, %v729_v8   ;;  %v2517_v8 = vrot.slane %v3176_v49, %v2283_v46  ;;  %v2529_v16 = vrot.slane %v3182_v3, %v2283_v46  ;;  %v2549_v12 = vrot.slane %v3182_v3, %v3189_v1  ;;  %v2554_v45 = vrot.slane %v3182_v3, %v3184_v52 }
 0x2b9   :  { %v2558_v35 = vrot.slane %v3182_v3, %v2287_v44  ;;  %v2564_v0 = vrot.slane %v3182_v3, %v3179_v24  ;;  %v2574_v53 = vrot.slane %v3182_v3, %v2293_v50 }
 0x2ba   :  { %3178 = vst [vmem:[#allocation5_spill] sm:$0xff] %v2517_v8  ;;  %3183 = vst [vmem:[#allocation6_spill] sm:$0xff] %v2529_v16 }
 0x2bb   :  { %3191 = vst [vmem:[#allocation34_spill] sm:$0xff] %v2549_v12  ;;  %3192 = vst [vmem:[#allocation35_spill] sm:$0xff] %v2554_v45 }
 0x2bc   :  { %1871 = vset.pattern.permute.xlu1 %v3174_v18  ;;  %3193 = vst [vmem:[#allocation36_spill] sm:$0xff] %v2558_v35  ;;  %3194 = vst [vmem:[#allocation37_spill] sm:$0xff] %v2564_v0 }
 0x2bd   :  { %1009 = vperm.xlu1 %1871, %v3172_v47   ;;  %v2521_v47 = vrot.slane %v3176_v49, %v3179_v24  ;;  %3196 = vst [vmem:[#allocation39_spill] sm:$0xff] %v2574_v53 }
 0x2bf   :  { %3180 = vst [vmem:[#allocation7_spill] sm:$0xff] %v2521_v47 }
 0x2c1   :  { %1166 = vrot.lane.b32.xlu1 %v1724_v13, %s2071_s16  ;;  %v2525_v13 = vrot.slane %v3176_v49, %v2295_v40 }
 0x2c2   :  { %1873 = vset.pattern.permute.xlu1 %v3175_v63 }
 0x2c3   :  { %3181 = vst [vmem:[#allocation13_spill] sm:$0xff] %v2525_v13 }
 0x301   :  { %v741_v33 = vpop.permute.xlu1 %740  ;;  %v756_v54 = vpop.permute.xlu0 %755 }
 0x306   :  { %v770_v25 = vpop.permute.xlu1 %769  ;;  %v798_v48 = vpop.permute.xlu0 %797 }
 0x307   :  { %v780_v26 = vmul.f32 %v2545_v30, %v770_v25 }
 0x30b   :  { %v784_v9 = vpop.permute.xlu1 %783  ;;  %v840_v58 = vpop.permute.xlu0 %839 }
 0x30c   :  { %v794_v17 = vmul.f32 %v2517_v8, %v784_v9  ;;  %v2578_v9 = vrot.slane %v3182_v3, %v2295_v40  ;;  %v808_v8 = vmul.f32 %v2541_v34, %v798_v48 }
 0x30e   :  { %3197 = vst [vmem:[#allocation40_spill] sm:$0xff] %v2578_v9  ;;  %v966_v23 = vadd.f32 %v794_v17, %v780_v26 }
 0x310   :  { %v812_v38 = vpop.permute.xlu1 %811  ;;  %v882_v21 = vpop.permute.xlu0 %881 }
 0x311   :  { %v822_v49 = vmul.f32 %v2521_v47, %v812_v38  ;;  %v766_v38 = vmul.f32 %v2533_v5, %v756_v54  ;;  %v752_v47 = vmul.f32 %v2537_v57, %v741_v33  ;;  %v3255_v57 = vld [vmem:[#allocation18_spill] sm:$0xff] }
 0x313   :  { %v968_v11 = vadd.f32 %v822_v49, %v808_v8  ;;  %v964_v25 = vadd.f32 %v766_v38, %v752_v47  ;;  %v3205_v49 = vmov 39   ;;  %v3206_v38 = vmov 35  }
 0x315   :  { %v826_v4 = vpop.permute.xlu1 %825  ;;  %v924_v60 = vpop.permute.xlu0 %923 }
 0x316   :  { %v836_v61 = vmul.f32 %v2513_v14, %v826_v4  ;;  %v2568_v4 = vrot.slane %v3182_v3, %v3186_v43  ;;  %v850_v14 = vmul.f32 %v2525_v13, %v840_v58  ;;  %v892_v58 = vmul.f32 %v2549_v12, %v882_v21  ;;  %v3254_v12 = vld [vmem:[#allocation17_spill] sm:$0xff] }
 0x317   :  { %v934_v3 = vmul.f32 %v2564_v0, %v924_v60 }
 0x318   :  { %3195 = vst [vmem:[#allocation38_spill] sm:$0xff] %v2568_v4  ;;  %v970_v13 = vadd.f32 %v850_v14, %v836_v61 }
 0x319   :  { %v2591_v8 = vpop.permute.xlu0 %995 }
 0x31a   :  { %v854_v42 = vpop.permute.xlu1 %853  ;;  %v982_v30 = vadd.f32 %v970_v13, %v968_v11  ;;  %3198 = vst [vmem:[#allocation41_spill] sm:$0xff] %v2591_v8 }
 0x31b   :  { %v864_v54 = vmul.f32 %v2568_v4, %v854_v42 }
 0x31f   :  { %v868_v22 = vpop.permute.xlu1 %867 }
 0x324   :  { %v896_v7 = vpop.permute.xlu1 %895 }
 0x325   :  { %v906_v62 = vmul.f32 %v2529_v16, %v896_v7  ;;  %v878_v7 = vmul.f32 %v2554_v45, %v868_v22  ;;  %v980_v22 = vadd.f32 %v966_v23, %v964_v25  ;;  %v3208_v25 = vmov 13  }
 0x327   :  { %v974_v5 = vadd.f32 %v906_v62, %v892_v58  ;;  %v972_v21 = vadd.f32 %v878_v7, %v864_v54  ;;  %v988_v26 = vadd.f32 %v982_v30, %v980_v22  ;;  %v1002_v30 = vld [vmem:[%s2993_s1 + $0x58] sm:$0x3]  ;;  %v1024_v58 = vpop.permute.xlu0 %1023 }
 0x328   :  { %v2611_v47 = vrot.slane %v1002_v30, %v3184_v52  ;;  %v2614_v13 = vrot.slane %v1002_v30, %v3186_v43 }
 0x329   :  { %v910_v56 = vpop.permute.xlu1 %909  ;;  %v984_v45 = vadd.f32 %v974_v5, %v972_v21 }
 0x32a   :  { %v920_v16 = vmul.f32 %v2558_v35, %v910_v56  ;;  %3203 = vst [vmem:[#allocation44_spill] sm:$0xff] %v2611_v47  ;;  %3204 = vst [vmem:[#allocation45_spill] sm:$0xff] %v2614_v13  ;;  %v1034_v54 = vmul.f32 %v2611_v47, %v1024_v58  ;;  %v1036_v58 = vld [vmem:[%s2993_s1 + $0x58] sm:$0xff] }
 0x32c   :  { %v976_v61 = vadd.f32 %v934_v3, %v920_v16 }
 0x32e   :  { %v938_v32 = vpop.permute.xlu1 %937 }
 0x32f   :  { %v948_v33 = vmul.f32 %v2574_v53, %v938_v32  ;;  %v3201_v32 = vmov 36   ;;  %v3222_v53 = vlaneseq }
 0x333   :  { %v952_v51 = vpop.permute.xlu1 %951 }
 0x334   :  { %v962_v48 = vmul.f32 %v2578_v9, %v952_v51  ;;  %v1183_v51 = vld [vmem:[%s2993_s1 + $0x58] sm:$0xf]  ;;  %s2075_s1 = smov 120  }
 0x335   :  { %v2598_v11 = vrot.slane %v1183_v51, %v3184_v52  ;;  %v2601_v23 = vrot.slane %v1183_v51, %v3189_v1 }
 0x336   :  { %v978_v14 = vadd.f32 %v962_v48, %v948_v33  ;;  %v3207_v48 = vmov 37  }
 0x337   :  { %3199 = vst [vmem:[#allocation42_spill] sm:$0xff] %v2598_v11  ;;  %3200 = vst [vmem:[#allocation43_spill] sm:$0xff] %v2601_v23  ;;  %v1208_v5 = vmul.f32 0.0, %v2598_v11  ;;  %v1209_v16 = vmul.f32 0.0, %v2601_v23 }
 0x338   :  { %v986_v56 = vadd.f32 %v978_v14, %v976_v61  ;;  %v1010_v7 = vpop.permute.xlu1 %1009  ;;  %v3210_v14 = vmov 38  }
 0x339   :  { %v1216_v3 = vadd.f32 %v1209_v16, %v1208_v5  ;;  %v1020_v33 = vmul.f32 %v2614_v13, %v1010_v7 }
 0x33a   :  { %v990_v17 = vadd.f32 %v986_v56, %v984_v45  ;;  %v3202_v45 = vmov 34   ;;  %v2628_v56 = vrot.slane %v1183_v51, %v3186_v43 }
 0x33b   :  { %v1159_v21 = vadd.f32 %v1034_v54, %v1020_v33  ;;  %v2649_v54 = vrot.slane %v1036_v58, %v3186_v43  ;;  %v2652_v33 = vrot.slane %v1036_v58, %v3189_v1 }
 0x33c   :  { %v992_v60 = vadd.f32 %v990_v17, %v988_v26  ;;  %v2623_v61 = vpop.permute.xlu1 %1166  ;;  %3211 = vst [vmem:[#allocation47_spill] sm:$0xff] %v2628_v56  ;;  %v1207_v26 = vmul.f32 0.0, %v2628_v56  ;;  %v2633_v17 = vrot.slane %v1183_v51, %v2283_v46  ;;  %v2643_v51 = vrot.slane %v1036_v58, %v2283_v46 }
 0x33d   :  { %3209 = vst [vmem:[#allocation46_spill] sm:$0xff] %v2623_v61  ;;  %v1169_v22 = vadd.f32 %v2623_v61, %v1159_v21  ;;  %3216 = vst [vmem:[#allocation51_spill] sm:$0xff] %v2649_v54  ;;  %v2655_v21 = vrot.slane %v1036_v58, %v3179_v24 }
 0x33e   :  { %v998_v42 = vadd.f32 %v2591_v8, %v992_v60  ;;  %3212 = vst [vmem:[#allocation48_spill] sm:$0xff] %v2633_v17  ;;  %v3213_v60 = vmov 12   ;;  %3214 = vst [vmem:[#allocation49_spill] sm:$0xff] %v2643_v51 }
 0x33f   :  { %3217 = vst [vmem:[#allocation52_spill] sm:$0xff] %v2652_v33  ;;  %3218 = vst [vmem:[#allocation53_spill] sm:$0xff] %v2655_v21 }
 0x340   :  { %v1000_v62 = vmax.f32 %v998_v42, 0.0  ;;  %v1210_v42 = vmul.f32 0.0, %v2633_v17 }
 0x342   :  { %1054 = vperm.xlu0 %1874, %v1000_v62   ;;  %1039 = vperm.xlu1 %1873, %v1000_v62  }
 0x346   :  { %1877 = vset.pattern.permute.xlu0 %v3201_v32  ;;  %1875 = vset.pattern.permute.xlu1 %v3202_v45 }
 0x347   :  { %1096 = vperm.xlu0 %1877, %v1000_v62   ;;  %1068 = vperm.xlu1 %1875, %v1000_v62  }
 0x34b   :  { %1880 = vset.pattern.permute.xlu0 %v3205_v49  ;;  %1876 = vset.pattern.permute.xlu1 %v3206_v38 }
 0x34c   :  { %1138 = vperm.xlu0 %1880, %v1000_v62   ;;  %1082 = vperm.xlu1 %1876, %v1000_v62  }
 0x350   :  { %1878 = vset.pattern.permute.xlu1 %v3207_v48  ;;  %1218 = vrot.lane.b32.xlu0 %v1216_v3, %s2072_s21  ;;  %v2646_v3 = vrot.slane %v1036_v58, %v3184_v52  ;;  %v2665_v52 = vrot.slane %v1036_v58, %v2293_v50 }
 0x351   :  { %1110 = vperm.xlu1 %1878, %v1000_v62   ;;  %1882 = vset.pattern.permute.xlu0 %v3208_v25 }
 0x352   :  { %3215 = vst [vmem:[#allocation50_spill] sm:$0xff] %v2646_v3  ;;  %3221 = vst [vmem:[#allocation56_spill] sm:$0xff] %v2665_v52 }
 0x355   :  { %1879 = vset.pattern.permute.xlu1 %v3210_v14 }
 0x356   :  { %1124 = vperm.xlu1 %1879, %v1000_v62  }
 0x35a   :  { %1175 = vrot.lane.b32.xlu1 %v1169_v22, %s2073_s22 }
 0x35b   :  { %1881 = vset.pattern.permute.xlu1 %v3213_v60 }
 0x35e   :  { %1212 = vrot.lane.b32.xlu1 %v1207_v26, %s2072_s21  ;;  %v2658_v26 = vrot.slane %v1036_v58, %v2287_v44 }
 0x360   :  { %3219 = vst [vmem:[#allocation54_spill] sm:$0xff] %v2658_v26 }
 0x362   :  { %1223 = vrot.lane.b32.xlu1 %v1210_v42, %s2072_s21  ;;  %v2661_v42 = vrot.slane %v1036_v58, %v2295_v40 }
 0x364   :  { %3220 = vst [vmem:[#allocation55_spill] sm:$0xff] %v2661_v42 }
 0x3bd   :  { %v1040_v62 = vpop.permute.xlu1 %1039  ;;  %v1055_v5 = vpop.permute.xlu0 %1054 }
 0x3be   :  { %v1065_v61 = vmul.f32 %v2646_v3, %v1055_v5  ;;  %v1051_v1 = vmul.f32 %v2649_v54, %v1040_v62  ;;  %v1201_v5 = vand.u32 127, %v3222_v53 }
 0x3c0   :  { %vm1202_vm2 = vcmp.ge.s32.totalorder %v1201_v5, 8  ;;  %vm1203_vm3 = vcmp.lt.s32.totalorder %v1201_v5, 12 }
 0x3c1   :  { %vm1204_vm4 = vmand %vm1202_vm2, %vm1203_vm3 }
 0x3c2   :  { %v1069_v30 = vpop.permute.xlu1 %1068  ;;  %v1097_v7 = vpop.permute.xlu0 %1096 }
 0x3c3   :  { %v1079_v24 = vmul.f32 %v2652_v33, %v1069_v30  ;;  %v1107_v44 = vmul.f32 %v2658_v26, %v1097_v7 }
 0x3c7   :  { %v1083_v16 = vpop.permute.xlu1 %1082  ;;  %v1139_v43 = vpop.permute.xlu0 %1138 }
 0x3c8   :  { %v1093_v46 = vmul.f32 %v2643_v51, %v1083_v16  ;;  %v1149_v40 = vmul.f32 %v2661_v42, %v1139_v43  ;;  %v1151_v51 = vadd.f32 %v1065_v61, %v1051_v1  ;;  %v2074_v61 = vmov 0.5  }
 0x3ca   :  { %v1153_v8 = vadd.f32 %v1093_v46, %v1079_v24 }
 0x3cb   :  { %v1219_v7 = vpop.permute.xlu0 %1218 }
 0x3cc   :  { %v1111_v22 = vpop.permute.xlu1 %1110  ;;  %v1161_v3 = vadd.f32 %v1153_v8, %v1151_v51  ;;  %v2681_v51 = vsel %vm1204_vm4, 0.0, %v2074_v61 }
 0x3cd   :  { %v1121_v47 = vmul.f32 %v2655_v21, %v1111_v22  ;;  %3224 = vst [vmem:[#allocation58_spill] sm:$0xff] %v2681_v51 }
 0x3cf   :  { %v1155_v50 = vadd.f32 %v1121_v47, %v1107_v44  ;;  %v2678_v47 = vsel %vm1204_vm4, 1.0, %v2074_v61 }
 0x3d0   :  { %3223 = vst [vmem:[#allocation57_spill] sm:$0xff] %v2678_v47 }
 0x3d1   :  { %v1125_v13 = vpop.permute.xlu1 %1124 }
 0x3d2   :  { %v1135_v16 = vmul.f32 %v2665_v52, %v1125_v13 }
 0x3d4   :  { %v1157_v58 = vadd.f32 %v1149_v40, %v1135_v16 }
 0x3d5   :  { %v1176_v9 = vpop.permute.xlu1 %1175 }
 0x3d6   :  { %v1163_v62 = vadd.f32 %v1157_v58, %v1155_v50 }
 0x3d8   :  { %v1171_v54 = vadd.f32 %v1163_v62, %v1161_v3  ;;  %v3225_v62 = vmov 14  }
 0x3d9   :  { %v1213_v30 = vpop.permute.xlu1 %1212 }
 0x3da   :  { %v2675_v22 = vadd.f32 %v1176_v9, %v1171_v54 }
 0x3dc   :  { %v1215_v43 = vadd.f32 %v1213_v30, %v2675_v22  ;;  %v3226_v30 = vmov 15  }
 0x3dd   :  { %v1224_v46 = vpop.permute.xlu1 %1223 }
 0x3de   :  { %v1221_v13 = vadd.f32 %v1219_v7, %v1215_v43 }
 0x3e0   :  { %v1226_v1 = vadd.f32 %v1224_v46, %v1221_v13 }
 0x3e2   :  { %v1227_v53 = vmul.f32 %v1226_v1, %v2678_v47 }
 0x3e4   :  { %1967 = vtanh.f32 %v1227_v53 }
 0x3f1   :  { %v1968_v8 = vpop.eup %1967 }
 0x3f2   :  { %v1229_v3 = vmul.f32 %v1968_v8, %v2678_v47 }
 0x3f4   :  { %v1230_v9 = vadd.f32 %v1229_v3, %v2681_v51 }
 0x3f6   :  { %1233 = vrot.lane.b32.xlu0 %v1230_v9, %s2075_s1  ;;  %v1231_v44 = vmul.f32 0.0, %v1230_v9 }
 0x468   :  { %v1234_v54 = vpop.permute.xlu0 %1233 }
 0x469   :  { %v1236_v24 = vmul.f32 %v1234_v54, %v1230_v9 }
 0x46b   :  { %1238 = vrot.lane.b32.xlu1 %v1236_v24, %s2076_s25 }
 0x4dd   :  { %v1239_v40 = vpop.permute.xlu1 %1238 }
 0x4de   :  { %v1241_v16 = vadd.f32 %v1239_v40, %v1231_v44 }
 0x4e0   :  { %1969 = vtanh.f32 %v1241_v16 }
 0x4ed   :  { %v1970_v50 = vpop.eup %1969 }
 0x4ee   :  { %1244 = vrot.lane.b32.xlu0 %v1970_v50, %s2077_s26 }
 0x560   :  { %v1245_v58 = vpop.permute.xlu0 %1244 }
 0x561   :  { %v1247_v5 = vmul.f32 %v1245_v58, %v1230_v9 }
 0x563   :  { %1255 = vperm.xlu0 %1882, %v1247_v5   ;;  %1250 = vperm.xlu1 %1881, %v1247_v5  }
 0x567   :  { %1883 = vset.pattern.permute.xlu1 %v3225_v62  ;;  %1885 = vset.pattern.permute.xlu0 %v3213_v60 }
 0x568   :  { %1260 = vperm.xlu1 %1883, %v1247_v5  }
 0x56c   :  { %1884 = vset.pattern.permute.xlu1 %v3226_v30 }
 0x56d   :  { %1265 = vperm.xlu1 %1884, %v1247_v5  }
 0x571   :  { %1886 = vset.pattern.permute.xlu1 %v3208_v25 }
 0x5de   :  { %v1251_v7 = vpop.permute.xlu1 %1250  ;;  %v1256_v46 = vpop.permute.xlu0 %1255 }
 0x5df   :  { %v1253_v43 = vmul.f32 %v1251_v7, %v2628_v56  ;;  %v1258_v1 = vmul.f32 %v1256_v46, %v2598_v11 }
 0x5e1   :  { %v1270_v13 = vrot.slane %v1253_v43, 6 }
 0x5e3   :  { %1271 = vrot.lane.b32.xlu0 %v1270_v13, %s2072_s21  ;;  %v1261_v61 = vpop.permute.xlu1 %1260 }
 0x5e4   :  { %v1263_v53 = vmul.f32 %v1261_v61, %v2601_v23 }
 0x5e6   :  { %v1275_v8 = vadd.f32 %v1263_v53, %v1258_v1 }
 0x5e8   :  { %v1266_v3 = vpop.permute.xlu1 %1265  ;;  %v1277_v9 = vrot.slane %v1275_v8, 6  ;;  %v1293_v8 = vrot.slane %v1241_v16, 6 }
 0x5e9   :  { %v1268_v54 = vmul.f32 %v1266_v3, %v2633_v17 }
 0x5ea   :  { %1278 = vrot.lane.b32.xlu1 %v1277_v9, %s2072_s21 }
 0x5eb   :  { %v1283_v24 = vrot.slane %v1268_v54, 6 }
 0x5ed   :  { %1284 = vrot.lane.b32.xlu0 %v1283_v24, %s2072_s21 }
 0x655   :  { %v1272_v44 = vpop.permute.xlu0 %1271 }
 0x656   :  { %v1274_v40 = vadd.f32 %v1272_v44, %v2675_v22 }
 0x65c   :  { %v1279_v50 = vpop.permute.xlu1 %1278 }
 0x65d   :  { %v1281_v58 = vadd.f32 %v1279_v50, %v1274_v40 }
 0x65f   :  { %v1285_v5 = vpop.permute.xlu0 %1284 }
 0x660   :  { %v1287_v7 = vadd.f32 %v1285_v5, %v1281_v58 }
 0x662   :  { %v1288_v43 = vmul.f32 %v1287_v7, %v2678_v47 }
 0x664   :  { %1971 = vtanh.f32 %v1288_v43 }
 0x671   :  { %v1972_v46 = vpop.eup %1971 }
 0x672   :  { %v1290_v13 = vmul.f32 %v1972_v46, %v2678_v47 }
 0x674   :  { %v1291_v61 = vadd.f32 %v1290_v13, %v2681_v51 }
 0x676   :  { %1297 = vrot.lane.b32.xlu1 %v1291_v61, %s2075_s1  ;;  %v1295_v3 = vmul.f32 %v1293_v8, %v1291_v61 }
 0x6e8   :  { %v1298_v1 = vpop.permute.xlu1 %1297 }
 0x6e9   :  { %v1300_v53 = vmul.f32 %v1298_v1, %v1291_v61 }
 0x6eb   :  { %1302 = vrot.lane.b32.xlu0 %v1300_v53, %s2076_s25 }
 0x75d   :  { %v1303_v9 = vpop.permute.xlu0 %1302 }
 0x75e   :  { %v1305_v54 = vadd.f32 %v1303_v9, %v1295_v3 }
 0x760   :  { %1973 = vtanh.f32 %v1305_v54 }
 0x76d   :  { %v1974_v24 = vpop.eup %1973 }
 0x76e   :  { %1308 = vrot.lane.b32.xlu1 %v1974_v24, %s2077_s26 }
 0x7e0   :  { %v1309_v44 = vpop.permute.xlu1 %1308 }
 0x7e1   :  { %v1311_v40 = vmul.f32 %v1309_v44, %v1291_v61 }
 0x7e3   :  { %1319 = vperm.xlu1 %1886, %v1311_v40   ;;  %1314 = vperm.xlu0 %1885, %v1311_v40  }
 0x7e7   :  { %1887 = vset.pattern.permute.xlu1 %v3225_v62  ;;  %1888 = vset.pattern.permute.xlu0 %v3226_v30 }
 0x7e8   :  { %1324 = vperm.xlu1 %1887, %v1311_v40   ;;  %1329 = vperm.xlu0 %1888, %v1311_v40  }
 0x7ec   :  { %1890 = vset.pattern.permute.xlu1 %v3208_v25  ;;  %1889 = vset.pattern.permute.xlu0 %v3213_v60 }
 0x85e   :  { %v1320_v16 = vpop.permute.xlu1 %1319  ;;  %v1315_v50 = vpop.permute.xlu0 %1314 }
 0x85f   :  { %v1317_v58 = vmul.f32 %v1315_v50, %v2628_v56  ;;  %v1322_v46 = vmul.f32 %v1320_v16, %v2598_v11 }
 0x861   :  { %v1334_v5 = vrot.slane %v1317_v58, 6 }
 0x863   :  { %v1325_v7 = vpop.permute.xlu1 %1324  ;;  %1335 = vrot.lane.b32.xlu1 %v1334_v5, %s2072_s21  ;;  %v1330_v43 = vpop.permute.xlu0 %1329 }
 0x864   :  { %v1327_v13 = vmul.f32 %v1325_v7, %v2601_v23  ;;  %v1332_v61 = vmul.f32 %v1330_v43, %v2633_v17 }
 0x866   :  { %v1339_v1 = vadd.f32 %v1327_v13, %v1322_v46  ;;  %v1347_v53 = vrot.slane %v1332_v61, 6  ;;  %v1357_v13 = vrot.slane %v1305_v54, 6  ;;  %v3227_v54 = vmov 1  }
 0x868   :  { %v1341_v8 = vrot.slane %v1339_v1, 6  ;;  %1348 = vrot.lane.b32.xlu0 %v1347_v53, %s2072_s21 }
 0x86a   :  { %1342 = vrot.lane.b32.xlu1 %v1341_v8, %s2072_s21 }
 0x8d5   :  { %v1336_v3 = vpop.permute.xlu1 %1335 }
 0x8d6   :  { %v1338_v9 = vadd.f32 %v1336_v3, %v2675_v22 }
 0x8da   :  { %v1349_v40 = vpop.permute.xlu0 %1348 }
 0x8dc   :  { %v1343_v24 = vpop.permute.xlu1 %1342 }
 0x8dd   :  { %v1345_v44 = vadd.f32 %v1343_v24, %v1338_v9  ;;  %v3228_v24 = vmov 0  }
 0x8df   :  { %v1351_v50 = vadd.f32 %v1349_v40, %v1345_v44 }
 0x8e1   :  { %v1352_v16 = vmul.f32 %v1351_v50, %v2678_v47 }
 0x8e3   :  { %1975 = vtanh.f32 %v1352_v16 }
 0x8f0   :  { %v1976_v58 = vpop.eup %1975 }
 0x8f1   :  { %v1354_v5 = vmul.f32 %v1976_v58, %v2678_v47 }
 0x8f3   :  { %v1355_v7 = vadd.f32 %v1354_v5, %v2681_v51 }
 0x8f5   :  { %1361 = vrot.lane.b32.xlu1 %v1355_v7, %s2075_s1  ;;  %v1359_v61 = vmul.f32 %v1357_v13, %v1355_v7 }
 0x967   :  { %v1362_v43 = vpop.permute.xlu1 %1361 }
 0x968   :  { %v1364_v46 = vmul.f32 %v1362_v43, %v1355_v7 }
 0x96a   :  { %1366 = vrot.lane.b32.xlu0 %v1364_v46, %s2076_s25 }
 0x9dc   :  { %v1367_v1 = vpop.permute.xlu0 %1366 }
 0x9dd   :  { %v2723_v53 = vadd.f32 %v1367_v1, %v1359_v61 }
 0x9df   :  { %1977 = vtanh.f32 %v2723_v53 }
 0x9ec   :  { %v1978_v8 = vpop.eup %1977 }
 0x9ed   :  { %1372 = vrot.lane.b32.xlu1 %v1978_v8, %s2077_s26  ;;  %v3229_v8 = vld [vmem:[#allocation8_spill] sm:$0xff] }
 0xa5f   :  { %v1373_v3 = vpop.permute.xlu1 %1372 }
 0xa60   :  { %v1375_v9 = vmul.f32 %v1373_v3, %v1355_v7  ;;  %v2738_v3 = vmax.f32 %v3229_v8, 0.0  ;;  %v3236_v8 = vmov 5  }
 0xa62   :  { %1383 = vperm.xlu1 %1890, %v1375_v9   ;;  %1378 = vperm.xlu0 %1889, %v1375_v9  }
 0xa66   :  { %1891 = vset.pattern.permute.xlu1 %v3225_v62  ;;  %1892 = vset.pattern.permute.xlu0 %v3226_v30 }
 0xa67   :  { %1388 = vperm.xlu1 %1891, %v1375_v9   ;;  %1393 = vperm.xlu0 %1892, %v1375_v9   ;;  %v3230_v9 = vmov 4  }
 0xa6b   :  { %1894 = vset.pattern.permute.xlu0 %v3227_v54  ;;  %1893 = vset.pattern.permute.xlu1 %v3228_v24  ;;  %v3231_v54 = vmov 7   ;;  %v3232_v24 = vmov 10  }
 0xadd   :  { %v1384_v44 = vpop.permute.xlu1 %1383  ;;  %v1379_v40 = vpop.permute.xlu0 %1378 }
 0xade   :  { %v1381_v50 = vmul.f32 %v1379_v40, %v2628_v56  ;;  %v1386_v7 = vmul.f32 %v1384_v44, %v2598_v11  ;;  %v3233_v44 = vmov 19  }
 0xae0   :  { %v1398_v16 = vrot.slane %v1381_v50, 6 }
 0xae2   :  { %v1389_v58 = vpop.permute.xlu1 %1388  ;;  %1399 = vrot.lane.b32.xlu1 %v1398_v16, %s2072_s21  ;;  %v1394_v5 = vpop.permute.xlu0 %1393 }
 0xae3   :  { %v1391_v43 = vmul.f32 %v1389_v58, %v2601_v23  ;;  %v1396_v46 = vmul.f32 %v1394_v5, %v2633_v17 }
 0xae5   :  { %v1403_v13 = vadd.f32 %v1391_v43, %v1386_v7  ;;  %v1411_v61 = vrot.slane %v1396_v46, 6 }
 0xae7   :  { %v1405_v1 = vrot.slane %v1403_v13, 6  ;;  %1412 = vrot.lane.b32.xlu0 %v1411_v61, %s2072_s21 }
 0xae9   :  { %1406 = vrot.lane.b32.xlu1 %v1405_v1, %s2072_s21  ;;  %v3234_v1 = vmov 2  }
 0xaeb   :  { %232 = vperm.xlu0 %1894, %v2738_v3  }
 0xaef   :  { %1897 = vset.pattern.permute.xlu0 %v3230_v9  ;;  %v3237_v9 = vmov 6  }
 0xaf0   :  { %274 = vperm.xlu0 %1897, %v2738_v3  }
 0xaf4   :  { %1900 = vset.pattern.permute.xlu0 %v3231_v54  ;;  %v3238_v54 = vmov 8  }
 0xaf5   :  { %316 = vperm.xlu0 %1900, %v2738_v3  }
 0xaf9   :  { %1903 = vset.pattern.permute.xlu0 %v3232_v24  ;;  %v3239_v24 = vmov 9  }
 0xafa   :  { %358 = vperm.xlu0 %1903, %v2738_v3  }
 0xafe   :  { %1906 = vset.pattern.permute.xlu0 %v3208_v25  ;;  %v3258_v25 = vld [vmem:[#allocation23_spill] sm:$0xff] }
 0xaff   :  { %400 = vperm.xlu0 %1906, %v2738_v3  }
 0xb03   :  { %1909 = vset.pattern.permute.xlu0 %v3174_v18 }
 0xb04   :  { %442 = vperm.xlu0 %1909, %v2738_v3  }
 0xb08   :  { %1912 = vset.pattern.permute.xlu0 %v3233_v44  ;;  %v3240_v44 = vmov 11  }
 0xb54   :  { %v1400_v40 = vpop.permute.xlu1 %1399 }
 0xb55   :  { %v1402_v50 = vadd.f32 %v1400_v40, %v2675_v22  ;;  %v3235_v22 = vmov 3   ;;  %v3241_v40 = vmov 18  }
 0xb59   :  { %v1413_v5 = vpop.permute.xlu0 %1412 }
 0xb5b   :  { %v1407_v16 = vpop.permute.xlu1 %1406 }
 0xb5c   :  { %v1409_v58 = vadd.f32 %v1407_v16, %v1402_v50  ;;  %v3242_v50 = vmov 20   ;;  %v3243_v16 = vmov 21  }
 0xb5e   :  { %v1415_v7 = vadd.f32 %v1413_v5, %v1409_v58  ;;  %v3244_v58 = vmov 23   ;;  %v3245_v5 = vmov 24  }
 0xb60   :  { %v1416_v43 = vmul.f32 %v1415_v7, %v2678_v47  ;;  %v3246_v7 = vmov 26  }
 0xb62   :  { %1979 = vtanh.f32 %v1416_v43  ;;  %v3247_v43 = vmov 27  }
 0xb6f   :  { %v1980_v46 = vpop.eup %1979 }
 0xb70   :  { %v1418_v13 = vmul.f32 %v1980_v46, %v2678_v47  ;;  %v3248_v46 = vmov 29  }
 0xb72   :  { %v2757_v61 = vadd.f32 %v1418_v13, %v2681_v51  ;;  %v3249_v13 = vmov 30  }
 0xb74   :  { %1425 = vrot.lane.b32.xlu1 %v2757_v61, %s2075_s1 }
 0xb78   :  { %218 = vperm.xlu1 %1893, %v2738_v3  }
 0xb7c   :  { %1895 = vset.pattern.permute.xlu1 %v3234_v1 }
 0xb7d   :  { %246 = vperm.xlu1 %1895, %v2738_v3  }
 0xb81   :  { %1896 = vset.pattern.permute.xlu1 %v3235_v22 }
 0xb82   :  { %260 = vperm.xlu1 %1896, %v2738_v3  }
 0xb86   :  { %1898 = vset.pattern.permute.xlu1 %v3236_v8  ;;  %v3250_v8 = vmov 22  }
 0xb87   :  { %288 = vperm.xlu1 %1898, %v2738_v3  }
 0xb8b   :  { %1899 = vset.pattern.permute.xlu1 %v3237_v9  ;;  %v3251_v9 = vmov 25  }
 0xb8c   :  { %302 = vperm.xlu1 %1899, %v2738_v3  }
 0xb90   :  { %1901 = vset.pattern.permute.xlu1 %v3238_v54  ;;  %v3252_v54 = vmov 28  }
 0xb91   :  { %330 = vperm.xlu1 %1901, %v2738_v3  }
 0xb95   :  { %1902 = vset.pattern.permute.xlu1 %v3239_v24  ;;  %v3253_v24 = vmov 31  }
 0xb96   :  { %344 = vperm.xlu1 %1902, %v2738_v3  }
 0xb9a   :  { %1904 = vset.pattern.permute.xlu1 %v3240_v44 }
 0xb9b   :  { %372 = vperm.xlu1 %1904, %v2738_v3  }
 0xb9f   :  { %1905 = vset.pattern.permute.xlu1 %v3213_v60  ;;  %v3257_v60 = vld [vmem:[#allocation20_spill] sm:$0xff] }
 0xba0   :  { %386 = vperm.xlu1 %1905, %v2738_v3  }
 0xba4   :  { %1907 = vset.pattern.permute.xlu1 %v3225_v62 }
 0xba5   :  { %414 = vperm.xlu1 %1907, %v2738_v3  }
 0xba9   :  { %1908 = vset.pattern.permute.xlu1 %v3226_v30  ;;  %v3256_v30 = vld [vmem:[#allocation19_spill] sm:$0xff] }
 0xbaa   :  { %428 = vperm.xlu1 %1908, %v2738_v3  }
 0xbae   :  { %1910 = vset.pattern.permute.xlu1 %v3171_v28 }
 0xbaf   :  { %456 = vperm.xlu1 %1910, %v2738_v3  }
 0xbb3   :  { %1911 = vset.pattern.permute.xlu1 %v3241_v40 }
 0xbb4   :  { %470 = vperm.xlu1 %1911, %v2738_v3  }
 0xbb8   :  { %1913 = vset.pattern.permute.xlu1 %v3242_v50 }
 0xbb9   :  { %498 = vperm.xlu1 %1913, %v2738_v3  }
 0xbbd   :  { %1914 = vset.pattern.permute.xlu1 %v3243_v16 }
 0xbbe   :  { %512 = vperm.xlu1 %1914, %v2738_v3  }
 0xbc2   :  { %1916 = vset.pattern.permute.xlu1 %v3244_v58 }
 0xbc3   :  { %540 = vperm.xlu1 %1916, %v2738_v3  }
 0xbc7   :  { %1917 = vset.pattern.permute.xlu1 %v3245_v5 }
 0xbc8   :  { %554 = vperm.xlu1 %1917, %v2738_v3  }
 0xbcc   :  { %1919 = vset.pattern.permute.xlu1 %v3246_v7 }
 0xbcd   :  { %582 = vperm.xlu1 %1919, %v2738_v3  }
 0xbd1   :  { %1920 = vset.pattern.permute.xlu1 %v3247_v43 }
 0xbd2   :  { %596 = vperm.xlu1 %1920, %v2738_v3  }
 0xbd6   :  { %1922 = vset.pattern.permute.xlu1 %v3248_v46 }
 0xbd7   :  { %624 = vperm.xlu1 %1922, %v2738_v3  }
 0xbdb   :  { %1923 = vset.pattern.permute.xlu1 %v3249_v13 }
 0xbdc   :  { %638 = vperm.xlu1 %1923, %v2738_v3  }
 0xbe0   :  { %1925 = vset.pattern.permute.xlu1 %v3175_v63 }
 0xbe6   :  { %v1426_v1 = vpop.permute.xlu1 %1425 }
 0xbe7   :  { %v1428_v22 = vmul.f32 %v1426_v1, %v2757_v61 }
 0xbe9   :  { %1430 = vrot.lane.b32.xlu0 %v1428_v22, %s2076_s25  ;;  %v233_v22 = vpop.permute.xlu0 %232 }
 0xbea   :  { %v240_v0 = vmul.f32 %v2313_v31, %v233_v22  ;;  %v3259_v31 = vld [vmem:[#allocation15_spill] sm:$0xff] }
 0xbed   :  { %484 = vperm.xlu0 %1912, %v2738_v3  }
 0xbf1   :  { %1915 = vset.pattern.permute.xlu0 %v3250_v8 }
 0xbf2   :  { %526 = vperm.xlu0 %1915, %v2738_v3  }
 0xbf3   :  { %v219_v44 = vpop.permute.xlu1 %218 }
 0xbf6   :  { %1918 = vset.pattern.permute.xlu0 %v3251_v9  ;;  %v275_v9 = vpop.permute.xlu0 %274 }
 0xbf7   :  { %568 = vperm.xlu0 %1918, %v2738_v3   ;;  %v282_v35 = vmul.f32 %v2317_v55, %v275_v9 }
 0xbf8   :  { %v247_v40 = vpop.permute.xlu1 %246 }
 0xbf9   :  { %v254_v22 = vmul.f32 %v3259_v31, %v247_v40 }
 0xbfb   :  { %1921 = vset.pattern.permute.xlu0 %v3252_v54 }
 0xbfc   :  { %610 = vperm.xlu0 %1921, %v2738_v3  }
 0xbfd   :  { %v261_v50 = vpop.permute.xlu1 %260 }
 0xbfe   :  { %v268_v34 = vmul.f32 %v3254_v12, %v261_v50 }
 0xc00   :  { %1924 = vset.pattern.permute.xlu0 %v3253_v24  ;;  %v317_v24 = vpop.permute.xlu0 %316 }
 0xc01   :  { %652 = vperm.xlu0 %1924, %v2738_v3   ;;  %v324_v63 = vmul.f32 %v3256_v30, %v317_v24 }
 0xc02   :  { %v289_v16 = vpop.permute.xlu1 %288 }
 0xc04   :  { %v359_v3 = vpop.permute.xlu0 %358 }
 0xc05   :  { %1926 = vset.pattern.permute.xlu0 %v3173_v15  ;;  %v296_v15 = vmul.f32 %v3255_v57, %v289_v16  ;;  %v366_v48 = vmul.f32 %v2349_v20, %v359_v3 }
 0xc07   :  { %v303_v58 = vpop.permute.xlu1 %302  ;;  %v666_v16 = vadd.f32 %v296_v15, %v282_v35  ;;  %v3264_v15 = vld [vmem:[#allocation22_spill] sm:$0xff] }
 0xc08   :  { %v401_v26 = vpop.permute.xlu0 %400  ;;  %v310_v62 = vmul.f32 %v2325_v27, %v303_v58 }
 0xc09   :  { %v408_v38 = vmul.f32 %v2365_v39, %v401_v26 }
 0xc0a   :  { %v668_v39 = vadd.f32 %v324_v63, %v310_v62  ;;  %v3265_v63 = vld [vmem:[#allocation27_spill] sm:$0xff] }
 0xc0c   :  { %v331_v5 = vpop.permute.xlu1 %330  ;;  %v443_v52 = vpop.permute.xlu0 %442 }
 0xc0d   :  { %v450_v12 = vmul.f32 %v2381_v59, %v443_v52  ;;  %v338_v57 = vmul.f32 %v2329_v19, %v331_v5  ;;  %v3262_v5 = vld [vmem:[#allocation21_spill] sm:$0xff] }
 0xc11   :  { %v345_v7 = vpop.permute.xlu1 %344 }
 0xc12   :  { %v352_v28 = vmul.f32 %v3257_v60, %v345_v7  ;;  %v3260_v60 = vld [vmem:[#allocation16_spill] sm:$0xff] }
 0xc13   :  { %v226_v50 = vmul.f32 %v3260_v60, %v219_v44 }
 0xc14   :  { %v670_v26 = vadd.f32 %v352_v28, %v338_v57  ;;  %v1421_v57 = vrot.slane %v2723_v53, 6 }
 0xc16   :  { %v373_v43 = vpop.permute.xlu1 %372 }
 0xc17   :  { %v380_v55 = vmul.f32 %v2337_v37, %v373_v43 }
 0xc19   :  { %v672_v7 = vadd.f32 %v380_v55, %v366_v48  ;;  %v3267_v48 = vld [vmem:[#allocation30_spill] sm:$0xff] }
 0xc1b   :  { %v387_v46 = vpop.permute.xlu1 %386  ;;  %v698_v24 = vadd.f32 %v672_v7, %v670_v26  ;;  %v3274_v7 = vmov 42  }
 0xc1c   :  { %v394_v30 = vmul.f32 %v2357_v36, %v387_v46  ;;  %v3261_v36 = vld [vmem:[#allocation28_spill] sm:$0xff]  ;;  %v3270_v46 = vld [vmem:[#allocation31_spill] sm:$0xff] }
 0xc20   :  { %v415_v13 = vpop.permute.xlu1 %414 }
 0xc21   :  { %v422_v27 = vmul.f32 %v2345_v29, %v415_v13  ;;  %v674_v29 = vadd.f32 %v408_v38, %v394_v30 }
 0xc25   :  { %v429_v1 = vpop.permute.xlu1 %428 }
 0xc26   :  { %v436_v18 = vmul.f32 %v3258_v25, %v429_v1  ;;  %v664_v25 = vadd.f32 %v268_v34, %v254_v22  ;;  %v3263_v34 = vld [vmem:[#allocation26_spill] sm:$0xff] }
 0xc28   :  { %v676_v40 = vadd.f32 %v436_v18, %v422_v27  ;;  %v3266_v18 = vld [vmem:[#allocation29_spill] sm:$0xff] }
 0xc2a   :  { %v457_v8 = vpop.permute.xlu1 %456 }
 0xc2b   :  { %v464_v44 = vmul.f32 %v3262_v5, %v457_v8  ;;  %v3279_v5 = vmov 40  }
 0xc2f   :  { %v471_v54 = vpop.permute.xlu1 %470 }
 0xc30   :  { %v478_v35 = vmul.f32 %v3263_v34, %v471_v54  ;;  %v662_v54 = vadd.f32 %v240_v0, %v226_v50  ;;  %v3281_v34 = vmov 41  }
 0xc34   :  { %v499_v51 = vpop.permute.xlu1 %498 }
 0xc39   :  { %v513_v47 = vpop.permute.xlu1 %512 }
 0xc3a   :  { %v520_v37 = vmul.f32 %v2397_v6, %v513_v47 }
 0xc3e   :  { %v541_v21 = vpop.permute.xlu1 %540 }
 0xc3f   :  { %v548_v59 = vmul.f32 %v2369_v41, %v541_v21  ;;  %v700_v41 = vadd.f32 %v676_v40, %v674_v29  ;;  %v1999_v29 = vld [vmem:[%s2992_s0 + $0x8] sm:$0xff]  ;;  %s2078_s0 = smov 116  }
 0xc41   :  { %v712_v30 = vadd.f32 %v700_v41, %v698_v24  ;;  %v3288_v41 = vmov 14  }
 0xc43   :  { %v555_v33 = vpop.permute.xlu1 %554 }
 0xc44   :  { %v562_v28 = vmul.f32 %v3265_v63, %v555_v33  ;;  %v696_v33 = vadd.f32 %v668_v39, %v666_v16  ;;  %v3272_v39 = vld [vmem:[#allocation14_spill] sm:$0xff]  ;;  %v3286_v63 = vmov 17  }
 0xc48   :  { %v583_v17 = vpop.permute.xlu1 %582 }
 0xc4d   :  { %v597_v56 = vpop.permute.xlu1 %596 }
 0xc4e   :  { %v604_v62 = vmul.f32 %v3266_v18, %v597_v56  ;;  %v678_v56 = vadd.f32 %v464_v44, %v450_v12  ;;  %v3280_v44 = vmov 13  }
 0xc52   :  { %v625_v14 = vpop.permute.xlu1 %624 }
 0xc5b   :  { %v2815_v42 = vpop.permute.xlu0 %1430 }
 0xc68   :  { %v485_v23 = vpop.permute.xlu0 %484 }
 0xc69   :  { %v492_v19 = vmul.f32 %v2393_v10, %v485_v23  ;;  %v3268_v10 = vld [vmem:[#allocation24_spill] sm:$0xff] }
 0xc6a   :  { %v590_v23 = vmul.f32 %v3268_v10, %v583_v17  ;;  %v694_v17 = vadd.f32 %v664_v25, %v662_v54  ;;  %v3292_v54 = vld [vmem:[#allocation9_spill] sm:$0xff] }
 0xc6b   :  { %v680_v1 = vadd.f32 %v492_v19, %v478_v35  ;;  %v3276_v19 = vmov 45   ;;  %v3282_v35 = vmov 43  }
 0xc6c   :  { %v688_v3 = vadd.f32 %v604_v62, %v590_v23  ;;  %v3290_v23 = vmov 15  }
 0xc6d   :  { %v527_v11 = vpop.permute.xlu0 %526 }
 0xc6e   :  { %v534_v20 = vmul.f32 %v2402_v2, %v527_v11  ;;  %v506_v2 = vmul.f32 %v3264_v15, %v499_v51  ;;  %v639_v11 = vpop.permute.xlu1 %638  ;;  %v3271_v51 = vld [vmem:[#allocation32_spill] sm:$0xff]  ;;  %v3283_v15 = vmov 44  }
 0xc6f   :  { %v646_v13 = vmul.f32 %v3270_v46, %v639_v11  ;;  %v3285_v11 = vmov 47  }
 0xc70   :  { %v684_v6 = vadd.f32 %v548_v59, %v534_v20  ;;  %v682_v21 = vadd.f32 %v520_v37, %v506_v2  ;;  %v1423_v20 = vmul.f32 %v1421_v57, %v2757_v61  ;;  %v3275_v59 = vmov 37  }
 0xc71   :  { %v3284_v2 = vmov 46  }
 0xc72   :  { %v569_v4 = vpop.permute.xlu0 %568  ;;  %v704_v31 = vadd.f32 %v684_v6, %v682_v21  ;;  %v2852_v0 = vadd.f32 %v2815_v42, %v1423_v20  ;;  %v3273_v42 = vmov 35   ;;  %v3289_v21 = vmov 32   ;;  %v3298_v20 = vld [vmem:[#allocation11_spill] sm:$0xff] }
 0xc73   :  { %v576_v52 = vmul.f32 %v3261_v36, %v569_v4  ;;  %v3269_v4 = vld [vmem:[#allocation25_spill] sm:$0xff]  ;;  %v3277_v36 = vmov 38  }
 0xc74   :  { %v632_v38 = vmul.f32 %v3269_v4, %v625_v14  ;;  %v702_v14 = vadd.f32 %v680_v1, %v678_v56  ;;  %1981 = vtanh.f32 %v2852_v0  ;;  %v3293_v56 = vld [vmem:[#allocation5_spill] sm:$0xff] }
 0xc75   :  { %v686_v8 = vadd.f32 %v576_v52, %v562_v28  ;;  %v3278_v52 = vmov 16   ;;  %v3287_v28 = vmov 12  }
 0xc76   :  { %v714_v40 = vadd.f32 %v704_v31, %v702_v14  ;;  %v3294_v31 = vld [vmem:[#allocation7_spill] sm:$0xff] }
 0xc77   :  { %v611_v58 = vpop.permute.xlu0 %610  ;;  %v706_v27 = vadd.f32 %v688_v3, %v686_v8 }
 0xc78   :  { %v618_v47 = vmul.f32 %v3267_v48, %v611_v58  ;;  %v710_v58 = vadd.f32 %v696_v33, %v694_v17 }
 0xc7a   :  { %v690_v22 = vadd.f32 %v632_v38, %v618_v47  ;;  %v718_v12 = vadd.f32 %v712_v30, %v710_v58  ;;  %v3296_v30 = vld [vmem:[#allocation6_spill] sm:$0xff] }
 0xc7c   :  { %v653_v43 = vpop.permute.xlu0 %652 }
 0xc7d   :  { %v660_v9 = vmul.f32 %v3271_v51, %v653_v43  ;;  %v3291_v43 = vmov 33  }
 0xc7f   :  { %v692_v55 = vadd.f32 %v660_v9, %v646_v13 }
 0xc81   :  { %v708_v60 = vadd.f32 %v692_v55, %v690_v22  ;;  %v1982_v26 = vpop.eup %1981  ;;  %v3295_v55 = vld [vmem:[#allocation13_spill] sm:$0xff] }
 0xc83   :  { %v716_v37 = vadd.f32 %v708_v60, %v706_v27  ;;  %v3297_v27 = vld [vmem:[#allocation12_spill] sm:$0xff] }
 0xc85   :  { %v720_v50 = vadd.f32 %v716_v37, %v714_v40  ;;  %v3299_v40 = vld [vmem:[#allocation33_spill] sm:$0xff] }
 0xc87   :  { %v722_v16 = vadd.f32 %v720_v50, %v718_v12  ;;  %v3300_v12 = vld [vmem:[#allocation10_spill] sm:$0xff] }
 0xc89   :  { %v728_v53 = vadd.f32 %v3272_v39, %v722_v16  ;;  %v3301_v16 = vld [vmem:[#allocation34_spill] sm:$0xff] }
 0xc8b   :  { %v730_v25 = vmax.f32 %v728_v53, 0.0 }
 0xc8d   :  { %759 = vperm.xlu0 %1926, %v730_v25   ;;  %745 = vperm.xlu1 %1925, %v730_v25  }
 0xc91   :  { %1929 = vset.pattern.permute.xlu0 %v3201_v32  ;;  %1927 = vset.pattern.permute.xlu1 %v3202_v45 }
 0xc92   :  { %801 = vperm.xlu0 %1929, %v730_v25   ;;  %773 = vperm.xlu1 %1927, %v730_v25  }
 0xc96   :  { %1932 = vset.pattern.permute.xlu0 %v3205_v49  ;;  %1436 = vrot.lane.b32.xlu1 %v1982_v26, %s2077_s26 }
 0xc97   :  { %843 = vperm.xlu0 %1932, %v730_v25   ;;  %1928 = vset.pattern.permute.xlu1 %v3273_v42 }
 0xc9a   :  { %787 = vperm.xlu1 %1928, %v730_v25  }
 0xc9b   :  { %1935 = vset.pattern.permute.xlu0 %v3274_v7  ;;  %v3303_v7 = vld [vmem:[#allocation36_spill] sm:$0xff] }
 0xc9c   :  { %885 = vperm.xlu0 %1935, %v730_v25  }
 0xc9e   :  { %1930 = vset.pattern.permute.xlu1 %v3275_v59 }
 0xc9f   :  { %815 = vperm.xlu1 %1930, %v730_v25  }
 0xca0   :  { %1938 = vset.pattern.permute.xlu0 %v3276_v19 }
 0xca1   :  { %927 = vperm.xlu0 %1938, %v730_v25  }
 0xca3   :  { %1931 = vset.pattern.permute.xlu1 %v3277_v36 }
 0xca4   :  { %829 = vperm.xlu1 %1931, %v730_v25  }
 0xca5   :  { %1941 = vset.pattern.permute.xlu0 %v3278_v52 }
 0xca6   :  { %1013 = vperm.xlu0 %1941, %v1999_v29  }
 0xca8   :  { %1933 = vset.pattern.permute.xlu1 %v3279_v5  ;;  %v3304_v5 = vld [vmem:[#allocation37_spill] sm:$0xff] }
 0xca9   :  { %857 = vperm.xlu1 %1933, %v730_v25  }
 0xcaa   :  { %1944 = vset.pattern.permute.xlu0 %v3280_v44 }
 0xcad   :  { %1934 = vset.pattern.permute.xlu1 %v3281_v34 }
 0xcae   :  { %871 = vperm.xlu1 %1934, %v730_v25  }
 0xcb2   :  { %1936 = vset.pattern.permute.xlu1 %v3282_v35 }
 0xcb3   :  { %899 = vperm.xlu1 %1936, %v730_v25  }
 0xcb7   :  { %1937 = vset.pattern.permute.xlu1 %v3283_v15  ;;  %v3305_v15 = vld [vmem:[#allocation38_spill] sm:$0xff] }
 0xcb8   :  { %913 = vperm.xlu1 %1937, %v730_v25  }
 0xcbc   :  { %1939 = vset.pattern.permute.xlu1 %v3284_v2 }
 0xcbd   :  { %941 = vperm.xlu1 %1939, %v730_v25  }
 0xcc1   :  { %1940 = vset.pattern.permute.xlu1 %v3285_v11 }
 0xcc2   :  { %955 = vperm.xlu1 %1940, %v730_v25   ;;  %v3302_v25 = vld [vmem:[#allocation35_spill] sm:$0xff] }
 0xcc6   :  { %1942 = vset.pattern.permute.xlu1 %v3286_v63  ;;  %v3306_v63 = vld [vmem:[#allocation39_spill] sm:$0xff] }
 0xcc7   :  { %1027 = vperm.xlu1 %1942, %v1999_v29  }
 0xccb   :  { %1943 = vset.pattern.permute.xlu1 %v3287_v28 }
 0xd08   :  { %v746_v18 = vpop.permute.xlu1 %745  ;;  %v760_v38 = vpop.permute.xlu0 %759 }
 0xd09   :  { %v767_v60 = vmul.f32 %v3297_v27, %v760_v38  ;;  %v753_v58 = vmul.f32 %v3298_v20, %v746_v18  ;;  %v3314_v27 = vld [vmem:[#allocation43_spill] sm:$0xff] }
 0xd0d   :  { %v774_v62 = vpop.permute.xlu1 %773  ;;  %v802_v13 = vpop.permute.xlu0 %801 }
 0xd0e   :  { %v809_v37 = vmul.f32 %v3299_v40, %v802_v13  ;;  %v781_v50 = vmul.f32 %v3300_v12, %v774_v62  ;;  %v965_v62 = vadd.f32 %v767_v60, %v753_v58  ;;  %v3315_v40 = vld [vmem:[#allocation48_spill] sm:$0xff] }
 0xd11   :  { %v1437_v6 = vpop.permute.xlu1 %1436 }
 0xd12   :  { %v1439_v48 = vmul.f32 %v1437_v6, %v2757_v61  ;;  %v844_v61 = vpop.permute.xlu0 %843  ;;  %v3307_v6 = vld [vmem:[#allocation40_spill] sm:$0xff] }
 0xd13   :  { %v851_v57 = vmul.f32 %v3295_v55, %v844_v61 }
 0xd14   :  { %1447 = vperm.xlu0 %1944, %v1439_v48   ;;  %1442 = vperm.xlu1 %1943, %v1439_v48  }
 0xd15   :  { %v788_v47 = vpop.permute.xlu1 %787 }
 0xd16   :  { %v795_v3 = vmul.f32 %v3293_v56, %v788_v47 }
 0xd17   :  { %v886_v9 = vpop.permute.xlu0 %885 }
 0xd18   :  { %1945 = vset.pattern.permute.xlu1 %v3288_v41  ;;  %1947 = vset.pattern.permute.xlu0 %v3289_v21  ;;  %v893_v39 = vmul.f32 %v3301_v16, %v886_v9  ;;  %v967_v52 = vadd.f32 %v795_v3, %v781_v50  ;;  %v3310_v3 = vld [vmem:[#allocation44_spill] sm:$0xff] }
 0xd19   :  { %1452 = vperm.xlu1 %1945, %v1439_v48  }
 0xd1a   :  { %v816_v10 = vpop.permute.xlu1 %815  ;;  %v981_v38 = vadd.f32 %v967_v52, %v965_v62  ;;  %v3316_v52 = vld [vmem:[#allocation55_spill] sm:$0xff]  ;;  %v3322_v62 = vld [vmem:[#allocation50_spill] sm:$0xff] }
 0xd1b   :  { %v823_v22 = vmul.f32 %v3294_v31, %v816_v10 }
 0xd1c   :  { %v928_v17 = vpop.permute.xlu0 %927 }
 0xd1d   :  { %1946 = vset.pattern.permute.xlu1 %v3290_v23  ;;  %v969_v29 = vadd.f32 %v823_v22, %v809_v37  ;;  %v935_v34 = vmul.f32 %v3304_v5, %v928_v17  ;;  %v3312_v22 = vld [vmem:[#allocation47_spill] sm:$0xff]  ;;  %v3317_v5 = vld [vmem:[#allocation49_spill] sm:$0xff] }
 0xd1e   :  { %1457 = vperm.xlu1 %1946, %v1439_v48  }
 0xd1f   :  { %v830_v4 = vpop.permute.xlu1 %829 }
 0xd20   :  { %v837_v33 = vmul.f32 %v3292_v54, %v830_v4 }
 0xd22   :  { %1948 = vset.pattern.permute.xlu1 %v3291_v43  ;;  %v971_v53 = vadd.f32 %v851_v57, %v837_v33 }
 0xd24   :  { %v858_v46 = vpop.permute.xlu1 %857  ;;  %v983_v47 = vadd.f32 %v971_v53, %v969_v29 }
 0xd25   :  { %v865_v2 = vmul.f32 %v3305_v15, %v858_v46  ;;  %v1014_v46 = vpop.permute.xlu0 %1013 }
 0xd29   :  { %v872_v1 = vpop.permute.xlu1 %871 }
 0xd2a   :  { %v879_v26 = vmul.f32 %v3302_v25, %v872_v1  ;;  %v989_v1 = vadd.f32 %v983_v47, %v981_v38 }
 0xd2c   :  { %v973_v21 = vadd.f32 %v879_v26, %v865_v2  ;;  %v3319_v2 = vld [vmem:[#allocation56_spill] sm:$0xff] }
 0xd2e   :  { %v900_v8 = vpop.permute.xlu1 %899 }
 0xd2f   :  { %v907_v14 = vmul.f32 %v3296_v30, %v900_v8  ;;  %v3313_v30 = vld [vmem:[#allocation42_spill] sm:$0xff] }
 0xd31   :  { %v975_v11 = vadd.f32 %v907_v14, %v893_v39 }
 0xd33   :  { %v914_v51 = vpop.permute.xlu1 %913  ;;  %v985_v43 = vadd.f32 %v975_v11, %v973_v21  ;;  %v3323_v21 = vld [vmem:[#allocation54_spill] sm:$0xff] }
 0xd34   :  { %v921_v19 = vmul.f32 %v3303_v7, %v914_v51  ;;  %v3308_v51 = vld [vmem:[#allocation41_spill] sm:$0xff] }
 0xd36   :  { %v977_v10 = vadd.f32 %v935_v34, %v921_v19 }
 0xd38   :  { %v942_v24 = vpop.permute.xlu1 %941 }
 0xd39   :  { %v949_v18 = vmul.f32 %v3306_v63, %v942_v24  ;;  %v3309_v24 = vld [vmem:[#allocation45_spill] sm:$0xff] }
 0xd3a   :  { %v1021_v56 = vmul.f32 %v3309_v24, %v1014_v46  ;;  %v3320_v63 = vld [vmem:[#allocation53_spill] sm:$0xff] }
 0xd3d   :  { %v956_v35 = vpop.permute.xlu1 %955 }
 0xd3e   :  { %v963_v48 = vmul.f32 %v3307_v6, %v956_v35  ;;  %v3318_v35 = vld [vmem:[#allocation52_spill] sm:$0xff]  ;;  %v3321_v6 = vld [vmem:[#allocation51_spill] sm:$0xff] }
 0xd40   :  { %v979_v4 = vadd.f32 %v963_v48, %v949_v18 }
 0xd42   :  { %v987_v13 = vadd.f32 %v979_v4, %v977_v10  ;;  %v1028_v33 = vpop.permute.xlu1 %1027 }
 0xd43   :  { %v1035_v31 = vmul.f32 %v3310_v3, %v1028_v33 }
 0xd44   :  { %v991_v61 = vadd.f32 %v987_v13, %v985_v43 }
 0xd46   :  { %v993_v8 = vadd.f32 %v991_v61, %v989_v1 }
 0xd48   :  { %v999_v9 = vadd.f32 %v3308_v51, %v993_v8 }
 0xd4a   :  { %v1001_v54 = vmax.f32 %v999_v9, 0.0 }
 0xd4c   :  { %1058 = vperm.xlu1 %1948, %v1001_v54   ;;  %1044 = vperm.xlu0 %1947, %v1001_v54  }
 0xd50   :  { %1949 = vset.pattern.permute.xlu1 %v3202_v45  ;;  %1950 = vset.pattern.permute.xlu0 %v3273_v42  ;;  %v1160_v45 = vadd.f32 %v1035_v31, %v1021_v56  ;;  %v3324_v31 = vld [vmem:[#allocation57_spill] sm:$0xff] }
 0xd51   :  { %1072 = vperm.xlu1 %1949, %v1001_v54   ;;  %1086 = vperm.xlu0 %1950, %v1001_v54  }
 0xd55   :  { %1951 = vset.pattern.permute.xlu1 %v3201_v32  ;;  %1953 = vset.pattern.permute.xlu0 %v3277_v36  ;;  %v3311_v32 = vld [vmem:[#allocation46_spill] sm:$0xff] }
 0xd56   :  { %1100 = vperm.xlu1 %1951, %v1001_v54   ;;  %1128 = vperm.xlu0 %1953, %v1001_v54   ;;  %v1170_v42 = vadd.f32 %v3311_v32, %v1160_v45 }
 0xd5a   :  { %1952 = vset.pattern.permute.xlu1 %v3275_v59  ;;  %1955 = vset.pattern.permute.xlu0 %v3287_v28 }
 0xd5b   :  { %1114 = vperm.xlu1 %1952, %v1001_v54  }
 0xd5f   :  { %1954 = vset.pattern.permute.xlu1 %v3205_v49 }
 0xd60   :  { %1142 = vperm.xlu1 %1954, %v1001_v54  }
 0xd64   :  { %1177 = vrot.lane.b32.xlu1 %v1170_v42, %s2073_s22 }
 0xd65   :  { %1956 = vset.pattern.permute.xlu1 %v3280_v44 }
 0xd8f   :  { %v1443_v36 = vpop.permute.xlu1 %1442  ;;  %v1448_v57 = vpop.permute.xlu0 %1447 }
 0xd90   :  { %v1445_v55 = vmul.f32 %v1443_v36, %v3312_v22  ;;  %v1450_v14 = vmul.f32 %v1448_v57, %v3313_v30  ;;  %v3325_v36 = vld [vmem:[#allocation58_spill] sm:$0xff] }
 0xd92   :  { %v1462_v17 = vrot.slane %v1445_v55, 6 }
 0xd94   :  { %1463 = vrot.lane.b32.xlu0 %v1462_v17, %s2072_s21  ;;  %v1453_v59 = vpop.permute.xlu1 %1452 }
 0xd95   :  { %v1455_v60 = vmul.f32 %v1453_v59, %v3314_v27  ;;  %v1485_v59 = vrot.slane %v2852_v0, 6 }
 0xd97   :  { %v1467_v49 = vadd.f32 %v1455_v60, %v1450_v14 }
 0xd99   :  { %v1469_v20 = vrot.slane %v1467_v49, 6  ;;  %v1458_v58 = vpop.permute.xlu1 %1457 }
 0xd9a   :  { %v1460_v37 = vmul.f32 %v1458_v58, %v3315_v40 }
 0xd9b   :  { %1470 = vrot.lane.b32.xlu1 %v1469_v20, %s2072_s21 }
 0xd9c   :  { %v1475_v12 = vrot.slane %v1460_v37, 6 }
 0xd9e   :  { %1476 = vrot.lane.b32.xlu0 %v1475_v12, %s2072_s21 }
 0xdc7   :  { %v1059_v50 = vpop.permute.xlu1 %1058  ;;  %v1045_v53 = vpop.permute.xlu0 %1044 }
 0xdc8   :  { %v1052_v48 = vmul.f32 %v3321_v6, %v1045_v53  ;;  %v1066_v47 = vmul.f32 %v3322_v62, %v1059_v50 }
 0xdca   :  { %v1152_v13 = vadd.f32 %v1066_v47, %v1052_v48 }
 0xdcc   :  { %v1073_v16 = vpop.permute.xlu1 %1072  ;;  %v1087_v26 = vpop.permute.xlu0 %1086 }
 0xdcd   :  { %v1094_v34 = vmul.f32 %v3317_v5, %v1087_v26  ;;  %v1080_v15 = vmul.f32 %v3318_v35, %v1073_v16 }
 0xdcf   :  { %v1154_v38 = vadd.f32 %v1094_v34, %v1080_v15 }
 0xdd1   :  { %v1101_v39 = vpop.permute.xlu1 %1100  ;;  %v1129_v19 = vpop.permute.xlu0 %1128  ;;  %v1162_v61 = vadd.f32 %v1154_v38, %v1152_v13 }
 0xdd2   :  { %v1136_v11 = vmul.f32 %v3319_v2, %v1129_v19  ;;  %v1108_v10 = vmul.f32 %v3323_v21, %v1101_v39 }
 0xdd6   :  { %v1115_v25 = vpop.permute.xlu1 %1114 }
 0xdd7   :  { %v1122_v18 = vmul.f32 %v3320_v63, %v1115_v25 }
 0xdd9   :  { %v1156_v43 = vadd.f32 %v1122_v18, %v1108_v10 }
 0xddb   :  { %v1143_v7 = vpop.permute.xlu1 %1142 }
 0xddc   :  { %v1150_v29 = vmul.f32 %v3316_v52, %v1143_v7 }
 0xdde   :  { %v1158_v4 = vadd.f32 %v1150_v29, %v1136_v11 }
 0xddf   :  { %v1178_v51 = vpop.permute.xlu1 %1177 }
 0xde0   :  { %v1164_v1 = vadd.f32 %v1158_v4, %v1156_v43 }
 0xde2   :  { %v1172_v8 = vadd.f32 %v1164_v1, %v1162_v61 }
 0xde4   :  { %v2927_v54 = vadd.f32 %v1178_v51, %v1172_v8 }
 0xe06   :  { %v1464_v9 = vpop.permute.xlu0 %1463 }
 0xe07   :  { %v1466_v46 = vadd.f32 %v1464_v9, %v2927_v54 }
 0xe0d   :  { %v1471_v33 = vpop.permute.xlu1 %1470 }
 0xe0e   :  { %v1473_v24 = vadd.f32 %v1471_v33, %v1466_v46 }
 0xe10   :  { %v1477_v56 = vpop.permute.xlu0 %1476 }
 0xe11   :  { %v1479_v3 = vadd.f32 %v1477_v56, %v1473_v24 }
 0xe13   :  { %v1480_v45 = vmul.f32 %v1479_v3, %v3324_v31 }
 0xe15   :  { %1983 = vtanh.f32 %v1480_v45 }
 0xe22   :  { %v1984_v32 = vpop.eup %1983 }
 0xe23   :  { %v1482_v42 = vmul.f32 %v1984_v32, %v3324_v31 }
 0xe25   :  { %v1483_v55 = vadd.f32 %v1482_v42, %v3325_v36 }
 0xe27   :  { %1489 = vrot.lane.b32.xlu1 %v1483_v55, %s2075_s1  ;;  %v1487_v14 = vmul.f32 %v1485_v59, %v1483_v55 }
 0xe99   :  { %v1490_v57 = vpop.permute.xlu1 %1489 }
 0xe9a   :  { %v1492_v17 = vmul.f32 %v1490_v57, %v1483_v55 }
 0xe9c   :  { %1494 = vrot.lane.b32.xlu0 %v1492_v17, %s2076_s25 }
 0xf0e   :  { %v1495_v60 = vpop.permute.xlu0 %1494 }
 0xf0f   :  { %v1497_v49 = vadd.f32 %v1495_v60, %v1487_v14 }
 0xf11   :  { %1985 = vtanh.f32 %v1497_v49  ;;  %v1549_v21 = vrot.slane %v1497_v49, 6 }
 0xf1e   :  { %v1986_v20 = vpop.eup %1985 }
 0xf1f   :  { %1500 = vrot.lane.b32.xlu1 %v1986_v20, %s2077_s26 }
 0xf91   :  { %v1501_v58 = vpop.permute.xlu1 %1500 }
 0xf92   :  { %v1503_v37 = vmul.f32 %v1501_v58, %v1483_v55 }
 0xf94   :  { %1511 = vperm.xlu1 %1956, %v1503_v37   ;;  %1506 = vperm.xlu0 %1955, %v1503_v37  }
 0xf98   :  { %1957 = vset.pattern.permute.xlu1 %v3288_v41  ;;  %1958 = vset.pattern.permute.xlu0 %v3290_v23 }
 0xf99   :  { %1516 = vperm.xlu1 %1957, %v1503_v37   ;;  %1521 = vperm.xlu0 %1958, %v1503_v37  }
 0xf9d   :  { %1960 = vset.pattern.permute.xlu1 %v3280_v44  ;;  %1959 = vset.pattern.permute.xlu0 %v3287_v28 }
0x100f   :  { %v1512_v0 = vpop.permute.xlu1 %1511  ;;  %v1507_v12 = vpop.permute.xlu0 %1506 }
0x1010   :  { %v1509_v50 = vmul.f32 %v1507_v12, %v3312_v22  ;;  %v1514_v25 = vmul.f32 %v1512_v0, %v3313_v30 }
0x1012   :  { %v1526_v16 = vrot.slane %v1509_v50, 6 }
0x1014   :  { %v1517_v39 = vpop.permute.xlu1 %1516  ;;  %1527 = vrot.lane.b32.xlu1 %v1526_v16, %s2072_s21  ;;  %v1522_v53 = vpop.permute.xlu0 %1521 }
0x1015   :  { %v1519_v26 = vmul.f32 %v1517_v39, %v3314_v27  ;;  %v1524_v7 = vmul.f32 %v1522_v53, %v3315_v40 }
0x1017   :  { %v1531_v19 = vadd.f32 %v1519_v26, %v1514_v25  ;;  %v1539_v52 = vrot.slane %v1524_v7, 6 }
0x1019   :  { %v1533_v29 = vrot.slane %v1531_v19, 6  ;;  %1540 = vrot.lane.b32.xlu0 %v1539_v52, %s2072_s21 }
0x101b   :  { %1534 = vrot.lane.b32.xlu1 %v1533_v29, %s2072_s21 }
0x1086   :  { %v1528_v5 = vpop.permute.xlu1 %1527 }
0x1087   :  { %v1530_v34 = vadd.f32 %v1528_v5, %v2927_v54 }
0x108b   :  { %v1541_v2 = vpop.permute.xlu0 %1540 }
0x108d   :  { %v1535_v35 = vpop.permute.xlu1 %1534 }
0x108e   :  { %v1537_v15 = vadd.f32 %v1535_v35, %v1530_v34 }
0x1090   :  { %v1543_v11 = vadd.f32 %v1541_v2, %v1537_v15 }
0x1092   :  { %v1544_v63 = vmul.f32 %v1543_v11, %v3324_v31 }
0x1094   :  { %1987 = vtanh.f32 %v1544_v63 }
0x10a1   :  { %v1988_v18 = vpop.eup %1987 }
0x10a2   :  { %v1546_v6 = vmul.f32 %v1988_v18, %v3324_v31 }
0x10a4   :  { %v1547_v48 = vadd.f32 %v1546_v6, %v3325_v36 }
0x10a6   :  { %1553 = vrot.lane.b32.xlu1 %v1547_v48, %s2075_s1  ;;  %v1551_v10 = vmul.f32 %v1549_v21, %v1547_v48 }
0x1118   :  { %v1554_v62 = vpop.permute.xlu1 %1553 }
0x1119   :  { %v1556_v47 = vmul.f32 %v1554_v62, %v1547_v48 }
0x111b   :  { %1558 = vrot.lane.b32.xlu0 %v1556_v47, %s2076_s25 }
0x118d   :  { %v1559_v4 = vpop.permute.xlu0 %1558 }
0x118e   :  { %v1561_v38 = vadd.f32 %v1559_v4, %v1551_v10 }
0x1190   :  { %1989 = vtanh.f32 %v1561_v38  ;;  %v1613_v0 = vrot.slane %v1561_v38, 6 }
0x119d   :  { %v1990_v43 = vpop.eup %1989 }
0x119e   :  { %1564 = vrot.lane.b32.xlu1 %v1990_v43, %s2077_s26 }
0x1210   :  { %v1565_v13 = vpop.permute.xlu1 %1564 }
0x1211   :  { %v1567_v1 = vmul.f32 %v1565_v13, %v1547_v48 }
0x1213   :  { %1575 = vperm.xlu1 %1960, %v1567_v1   ;;  %1570 = vperm.xlu0 %1959, %v1567_v1  }
0x1217   :  { %1961 = vset.pattern.permute.xlu1 %v3288_v41  ;;  %1962 = vset.pattern.permute.xlu0 %v3290_v23 }
0x1218   :  { %1580 = vperm.xlu1 %1961, %v1567_v1   ;;  %1585 = vperm.xlu0 %1962, %v1567_v1  }
0x121c   :  { %1964 = vset.pattern.permute.xlu1 %v3280_v44  ;;  %1963 = vset.pattern.permute.xlu0 %v3287_v28 }
0x128e   :  { %v1576_v61 = vpop.permute.xlu1 %1575  ;;  %v1571_v8 = vpop.permute.xlu0 %1570 }
0x128f   :  { %v1573_v51 = vmul.f32 %v1571_v8, %v3312_v22  ;;  %v1578_v24 = vmul.f32 %v1576_v61, %v3313_v30 }
0x1291   :  { %v1590_v9 = vrot.slane %v1573_v51, 6 }
0x1293   :  { %v1581_v46 = vpop.permute.xlu1 %1580  ;;  %1591 = vrot.lane.b32.xlu1 %v1590_v9, %s2072_s21  ;;  %v1586_v33 = vpop.permute.xlu0 %1585 }
0x1294   :  { %v1583_v56 = vmul.f32 %v1581_v46, %v3314_v27  ;;  %v1588_v3 = vmul.f32 %v1586_v33, %v3315_v40 }
0x1296   :  { %v1595_v45 = vadd.f32 %v1583_v56, %v1578_v24  ;;  %v1603_v32 = vrot.slane %v1588_v3, 6 }
0x1298   :  { %v1597_v44 = vrot.slane %v1595_v45, 6  ;;  %1604 = vrot.lane.b32.xlu0 %v1603_v32, %s2072_s21 }
0x129a   :  { %1598 = vrot.lane.b32.xlu1 %v1597_v44, %s2072_s21 }
0x1305   :  { %v1592_v28 = vpop.permute.xlu1 %1591 }
0x1306   :  { %v1594_v42 = vadd.f32 %v1592_v28, %v2927_v54 }
0x130a   :  { %v1605_v17 = vpop.permute.xlu0 %1604 }
0x130c   :  { %v1599_v55 = vpop.permute.xlu1 %1598 }
0x130d   :  { %v1601_v57 = vadd.f32 %v1599_v55, %v1594_v42 }
0x130f   :  { %v1607_v59 = vadd.f32 %v1605_v17, %v1601_v57 }
0x1311   :  { %v1608_v14 = vmul.f32 %v1607_v59, %v3324_v31 }
0x1313   :  { %1991 = vtanh.f32 %v1608_v14 }
0x1320   :  { %v1992_v60 = vpop.eup %1991 }
0x1321   :  { %v1610_v49 = vmul.f32 %v1992_v60, %v3324_v31 }
0x1323   :  { %v1611_v20 = vadd.f32 %v1610_v49, %v3325_v36 }
0x1325   :  { %1617 = vrot.lane.b32.xlu1 %v1611_v20, %s2075_s1  ;;  %v1615_v12 = vmul.f32 %v1613_v0, %v1611_v20 }
0x1397   :  { %v1618_v58 = vpop.permute.xlu1 %1617 }
0x1398   :  { %v1620_v37 = vmul.f32 %v1618_v58, %v1611_v20 }
0x139a   :  { %1622 = vrot.lane.b32.xlu0 %v1620_v37, %s2076_s25 }
0x140c   :  { %v1623_v50 = vpop.permute.xlu0 %1622 }
0x140d   :  { %v1625_v16 = vadd.f32 %v1623_v50, %v1615_v12 }
0x140f   :  { %1993 = vtanh.f32 %v1625_v16  ;;  %v1677_v10 = vrot.slane %v1625_v16, 6 }
0x141c   :  { %v1994_v39 = vpop.eup %1993 }
0x141d   :  { %1628 = vrot.lane.b32.xlu1 %v1994_v39, %s2077_s26 }
0x148f   :  { %v1629_v53 = vpop.permute.xlu1 %1628 }
0x1490   :  { %v1631_v25 = vmul.f32 %v1629_v53, %v1611_v20 }
0x1492   :  { %1639 = vperm.xlu1 %1964, %v1631_v25   ;;  %1634 = vperm.xlu0 %1963, %v1631_v25  }
0x1496   :  { %1965 = vset.pattern.permute.xlu1 %v3288_v41  ;;  %1966 = vset.pattern.permute.xlu0 %v3290_v23 }
0x1497   :  { %1644 = vperm.xlu1 %1965, %v1631_v25   ;;  %1649 = vperm.xlu0 %1966, %v1631_v25  }
0x150d   :  { %v1640_v26 = vpop.permute.xlu1 %1639  ;;  %v1635_v7 = vpop.permute.xlu0 %1634 }
0x150e   :  { %v1637_v19 = vmul.f32 %v1635_v7, %v3312_v22  ;;  %v1642_v34 = vmul.f32 %v1640_v26, %v3313_v30 }
0x1510   :  { %v1654_v52 = vrot.slane %v1637_v19, 6 }
0x1512   :  { %v1645_v29 = vpop.permute.xlu1 %1644  ;;  %1655 = vrot.lane.b32.xlu1 %v1654_v52, %s2072_s21  ;;  %v1650_v5 = vpop.permute.xlu0 %1649 }
0x1513   :  { %v1647_v35 = vmul.f32 %v1645_v29, %v3314_v27  ;;  %v1652_v15 = vmul.f32 %v1650_v5, %v3315_v40 }
0x1515   :  { %v1659_v41 = vadd.f32 %v1647_v35, %v1642_v34  ;;  %v1667_v2 = vrot.slane %v1652_v15, 6 }
0x1517   :  { %v1661_v23 = vrot.slane %v1659_v41, 6  ;;  %1668 = vrot.lane.b32.xlu0 %v1667_v2, %s2072_s21 }
0x1519   :  { %1662 = vrot.lane.b32.xlu1 %v1661_v23, %s2072_s21 }
0x1584   :  { %v1656_v11 = vpop.permute.xlu1 %1655 }
0x1585   :  { %v1658_v22 = vadd.f32 %v1656_v11, %v2927_v54 }
0x1589   :  { %v1669_v6 = vpop.permute.xlu0 %1668 }
0x158b   :  { %v1663_v63 = vpop.permute.xlu1 %1662 }
0x158c   :  { %v1665_v18 = vadd.f32 %v1663_v63, %v1658_v22 }
0x158e   :  { %v1671_v48 = vadd.f32 %v1669_v6, %v1665_v18 }
0x1590   :  { %v1672_v30 = vmul.f32 %v1671_v48, %v3324_v31 }
0x1592   :  { %1995 = vtanh.f32 %v1672_v30 }
0x159f   :  { %v1996_v27 = vpop.eup %1995 }
0x15a0   :  { %v1674_v40 = vmul.f32 %v1996_v27, %v3324_v31 }
0x15a2   :  { %v1675_v62 = vadd.f32 %v1674_v40, %v3325_v36 }
0x15a4   :  { %1681 = vrot.lane.b32.xlu1 %v1675_v62, %s2075_s1  ;;  %v1679_v54 = vmul.f32 %v1677_v10, %v1675_v62 }
0x1616   :  { %v1682_v47 = vpop.permute.xlu1 %1681 }
0x1617   :  { %v1684_v21 = vmul.f32 %v1682_v47, %v1675_v62 }
0x1619   :  { %1686 = vrot.lane.b32.xlu0 %v1684_v21, %s2076_s25 }
0x168b   :  { %v1687_v4 = vpop.permute.xlu0 %1686 }
0x168c   :  { %v1689_v38 = vadd.f32 %v1687_v4, %v1679_v54 }
0x168e   :  { %1997 = vtanh.f32 %v1689_v38 }
0x169b   :  { %v1998_v43 = vpop.eup %1997 }
0x169c   :  { %1692 = vrot.lane.b32.xlu1 %v1998_v43, %s2077_s26 }
0x170e   :  { %v1693_v13 = vpop.permute.xlu1 %1692 }
0x170f   :  { %v1695_v1 = vmul.f32 %v1693_v13, %v1675_v62 }
0x1711   :  { %1697 = vrot.lane.b32.xlu0 %v1695_v1, %s2078_s0 }
0x1783   :  { %v1698_v31 = vpop.permute.xlu0 %1697 }
0x1784   :  { %1701 = vst.msk [vmem:[#allocation2 - $0x6] sm:$0xc0] %vm1700_vm5, %v1698_v31 }
0x1785   :  { %2011 = shalt.err (!%p2008_p4)
}
0x1786   :  { %1711 = dma.vmem_to_hbm [thread:$0]  %s1709_s30, 32, %s2994_s2, [#allocation3]  }
0x1787   :  { %2020 = dma.done.wait [#allocation3], 32  }
0x1788   :  { %2021 = vsyncadd [#allocation3], 4294967264 }
0x1789   :  { %1715 = vsyncpa [#allocation3], 1 }

</bundles_post_ra>
